<compile_context>
chip_gen: v7x
topology: tpu7x:2x2x1
jax: 0.10.0
libtpu: 0.0.40
codegen_flags: <defaults>
</compile_context>

<pallas_src>
import jax
import jax.numpy as jnp
from jax.experimental import pallas as pl
from jax.experimental.pallas import tpu as pltpu

# ----------------------- small BERT-like config ------------------------------
B = 2            # batch (number of sentences)
S = 8            # padded sequence length (<= max_len=25)
H = 64           # hidden size (BERT-base would be 768)
NH = 4           # attention heads
DH = H // NH     # per-head dim
I = 128          # FFN intermediate size
L = 2            # number of encoder layers
VOCAB = 100      # toy vocab
MAX_LEN = 25
OUT = 100        # classifier output_dim (module default)
OUT_PAD = 128    # lane-dense padded classifier width (sliced back to OUT)
LN_EPS = 1e-12

# TODO(synk): BertTokenizer (string -> ids) has no Pallas equivalent; token ids
# are generated deterministically in-script instead.


# ------------------------------ kernel helpers --------------------------------
def _layernorm(x, gamma, beta):
    # f32 VPU math on all generations (v5e has no bf16 VPU path).
    mu = jnp.mean(x, axis=-1, keepdims=True)
    var = jnp.mean((x - mu) ** 2, axis=-1, keepdims=True)
    return (x - mu) * jax.lax.rsqrt(var + LN_EPS) * gamma + beta


def fused_bert_kernel(lens_ref,                       # SMEM (B,) int32  [scalar prefetch]
                      x_ref, eg_ref, eb_ref,          # embeddings + emb LN params
                      wqkv_ref, bqkv_ref,             # fused QKV projection
                      wo_ref, bo_ref, g1_ref, b1_ref,
                      wi_ref, bi_ref, wo2_ref, bo2_ref, g2_ref, b2_ref,
                      cw_ref, cb_ref,                 # classifier (padded to OUT_PAD)
                      o_ref):                         # (B, OUT_PAD) f32 logits
    f32 = jnp.float32
    bf16 = jnp.bfloat16

    # Embedding LayerNorm.
    x = _layernorm(x_ref[...], eg_ref[...], eb_ref[...])          # (B, S, H) f32

    # Additive key-padding mask from SMEM scalars (no mask tensor DMA).
    # NOTE: only key columns are masked; padded query rows still compute
    # attention, which is harmless since only the [CLS] row is consumed.
    k_pos = jax.lax.broadcasted_iota(jnp.int32, (1, 1, S), 2)      # lane iota
    add_mask = jnp.concatenate(
        [jnp.where(k_pos < lens_ref[b], 0.0, -1e9) for b in range(B)],
        axis=0).astype(f32)                                        # (B, 1, S)

    scale = 1.0 / (DH ** 0.5)

    # Static layer loop: all L layers' weights are resident in VMEM.
    for l in range(L):
        x2 = x.reshape(B * S, H)                                   # (16, 64)
        xb = x2.astype(bf16)

        # Single fused Q/K/V projection: (16, 64) @ (64, 192).
        qkv = (jnp.dot(xb, wqkv_ref[l], preferred_element_type=f32)
               + bqkv_ref[l]).reshape(B, S, 3 * H)                 # (B, S, 3H) f32

        wo_l = wo_ref[l]                                           # (H, H) bf16
        attn = jnp.zeros((B * S, H), f32)
        for h in range(NH):                                        # static head loop
            q_sl = slice(h * DH, (h + 1) * DH)
            k_sl = slice(H + h * DH, H + (h + 1) * DH)
            v_sl = slice(2 * H + h * DH, 2 * H + (h + 1) * DH)
            qh = qkv[:, :, q_sl].astype(bf16)                      # (B, S, DH)
            kh = qkv[:, :, k_sl].astype(bf16)
            vh = qkv[:, :, v_sl].astype(bf16)
            s = jnp.einsum('bqd,bkd->bqk', qh, kh,
                           preferred_element_type=f32) * scale + add_mask
            s = s - jnp.max(s, axis=-1, keepdims=True)
            p = jnp.exp(s)                                         # f32 softmax
            p = p * pl.reciprocal(jnp.sum(p, axis=-1, keepdims=True), approx=True)
            ctx = jnp.einsum('bqk,bkd->bqd', p.astype(bf16), vh,
                             preferred_element_type=f32)           # (B, S, DH)
            # Accumulate this head's slice of the output projection — avoids
            # the lane-shuffle concat of 16-wide head slices.
            attn = attn + jnp.dot(ctx.reshape(B * S, DH).astype(bf16),
                                  wo_l[q_sl, :], preferred_element_type=f32)

        attn_out = (attn + bo_ref[l]).reshape(B, S, H)
        h1 = _layernorm(x + attn_out, g1_ref[l], b1_ref[l])

        # Feed-forward.
        h1b = h1.reshape(B * S, H).astype(bf16)
        ff = jnp.dot(h1b, wi_ref[l], preferred_element_type=f32) + bi_ref[l]
        # TODO(synk): HF BertModel default act is the exact (erf) GELU; the tanh
        # approximation is used here (erf has no guaranteed Mosaic lowering).
        ff = jax.nn.gelu(ff, approximate=True)
        ff = jnp.dot(ff.astype(bf16), wo2_ref[l],
                     preferred_element_type=f32) + bo2_ref[l]
        x = _layernorm(h1 + ff.reshape(B, S, H), g2_ref[l], b2_ref[l])

    # [CLS] rows -> classifier, still inside the same kernel (no HBM round-trip
    # of the full hidden state, no extra launch).
    cls = x[:, 0:1, :].reshape(B, H)                               # sublane slice
    o_ref[...] = (jnp.dot(cls.astype(bf16), cw_ref[...],
                          preferred_element_type=f32) + cb_ref[...])


# ------------------------------- pallas wrapper --------------------------------
def _full_spec(shape):
    nd = len(shape)
    # index_map receives (grid_idx, scalar_prefetch_ref) with num_scalar_prefetch=1.
    return pl.BlockSpec(shape, lambda i, lens, _n=nd: (0,) * _n)


def linguistic_bert_forward(token_ids, seq_lens, params):
    """token_ids: (B, S) int32, seq_lens: (B,) int32 -> logits (B, OUT)."""
    # Embedding lookups (glue, plain JAX gathers).
    x = (params["word_emb"][token_ids]
         + params["pos_emb"][:S][None, :, :]
         + params["type_emb"][0][None, None, :]).astype(jnp.float32)

    tensor_inputs = [
        x, params["emb_ln_g"], params["emb_ln_b"],
        params["wqkv"], params["bqkv"],
        params["wo"], params["bo"],
        params["ln1_g"], params["ln1_b"],
        params["wi"], params["bi"], params["wo2"], params["bo2"],
        params["ln2_g"], params["ln2_b"],
        params["cls_w"], params["cls_b"],
    ]
    in_specs = [_full_spec(t.shape) for t in tensor_inputs]

    logits_pad = pl.pallas_call(
        fused_bert_kernel,
        out_shape=jax.ShapeDtypeStruct((B, OUT_PAD), jnp.float32),
        grid_spec=pltpu.PrefetchScalarGridSpec(
            num_scalar_prefetch=1,          # seq_lens -> SMEM
            grid=(1,),
            in_specs=in_specs,
            out_specs=_full_spec((B, OUT_PAD))),
        compiler_params=pltpu.CompilerParams(
            dimension_semantics=("arbitrary",)),
    )(seq_lens, *tensor_inputs)

    return logits_pad[:, :OUT]              # slice lane padding back to OUT=100


# ------------------------------ parameter init --------------------------------
def init_params(key):
    def nrm(k, shape, scale=0.02):
        return scale * jax.random.normal(k, shape, dtype=jnp.float32)

    bf16 = jnp.bfloat16
    ks = jax.random.split(key, 12)
    p = {}
    p["word_emb"] = nrm(ks[0], (VOCAB, H))
    p["pos_emb"] = nrm(ks[1], (MAX_LEN, H))
    p["type_emb"] = nrm(ks[2], (2, H))
    p["emb_ln_g"] = jnp.ones((1, H), jnp.float32)
    p["emb_ln_b"] = jnp.zeros((1, H), jnp.float32)

    # Layer weights stacked along a leading L axis; matmul weights in bf16
    # (MXU operands, halves DMA bytes), biases / LN params in f32.
    # Q, K, V weights fused into one (H, 3H) matrix per layer.
    p["wqkv"] = jnp.concatenate(
        [nrm(ks[3], (L, H, H)), nrm(ks[4], (L, H, H)), nrm(ks[5], (L, H, H))],
        axis=-1).astype(bf16)                                      # (L, H, 3H)
    p["bqkv"] = jnp.zeros((L, 1, 3 * H), jnp.float32)
    p["wo"] = nrm(ks[6], (L, H, H)).astype(bf16)
    p["bo"] = jnp.zeros((L, 1, H), jnp.float32)
    p["ln1_g"] = jnp.ones((L, 1, H), jnp.float32)
    p["ln1_b"] = jnp.zeros((L, 1, H), jnp.float32)
    p["wi"] = nrm(ks[7], (L, H, I)).astype(bf16)
    p["bi"] = jnp.zeros((L, 1, I), jnp.float32)
    p["wo2"] = nrm(ks[8], (L, I, H)).astype(bf16)
    p["bo2"] = jnp.zeros((L, 1, H), jnp.float32)
    p["ln2_g"] = jnp.ones((L, 1, H), jnp.float32)
    p["ln2_b"] = jnp.zeros((L, 1, H), jnp.float32)

    # Classifier padded to 128 lanes (extra columns are zero; sliced off later).
    cw = nrm(ks[9], (H, OUT))
    p["cls_w"] = jnp.pad(cw, ((0, 0), (0, OUT_PAD - OUT))).astype(bf16)
    p["cls_b"] = jnp.zeros((1, OUT_PAD), jnp.float32)
    return p


# ------------------------------------ main -------------------------------------
if __name__ == "__main__":
    root = jax.random.PRNGKey(0)
    k_param, k_tok = jax.random.split(root)

    params = init_params(k_param)

    # Deterministic "tokenized sentences": id 1 == [CLS] at position 0.
    token_ids = jax.random.randint(k_tok, (B, S), minval=2, maxval=VOCAB,
                                   dtype=jnp.int32)
    token_ids = token_ids.at[:, 0].set(1)
    seq_lens = jnp.array([S, 5], dtype=jnp.int32)   # second sentence padded

    forward = jax.jit(linguistic_bert_forward)      # gathers + kernel + slice in one program
    logits = forward(token_ids, seq_lens, params)
    logits = jax.block_until_ready(logits)
    assert logits.shape == (B, OUT) and logits.dtype == jnp.float32
    print("KERNEL_OK")
</pallas_src>

<mosaic_0001>
module attributes {stable_mosaic.version = 11 : i64} {
  func.func @fused_bert_kernel(%arg0: i32, %arg1: memref<2xi32, #tpu.memory_space<smem>>, %arg2: memref<2x8x64xf32, #tpu.memory_space<vmem>>, %arg3: memref<1x64xf32, #tpu.memory_space<vmem>>, %arg4: memref<1x64xf32, #tpu.memory_space<vmem>>, %arg5: memref<2x64x192xbf16, #tpu.memory_space<vmem>>, %arg6: memref<2x1x192xf32, #tpu.memory_space<vmem>>, %arg7: memref<2x64x64xbf16, #tpu.memory_space<vmem>>, %arg8: memref<2x1x64xf32, #tpu.memory_space<vmem>>, %arg9: memref<2x1x64xf32, #tpu.memory_space<vmem>>, %arg10: memref<2x1x64xf32, #tpu.memory_space<vmem>>, %arg11: memref<2x64x128xbf16, #tpu.memory_space<vmem>>, %arg12: memref<2x1x128xf32, #tpu.memory_space<vmem>>, %arg13: memref<2x128x64xbf16, #tpu.memory_space<vmem>>, %arg14: memref<2x1x64xf32, #tpu.memory_space<vmem>>, %arg15: memref<2x1x64xf32, #tpu.memory_space<vmem>>, %arg16: memref<2x1x64xf32, #tpu.memory_space<vmem>>, %arg17: memref<64x128xbf16, #tpu.memory_space<vmem>>, %arg18: memref<1x128xf32, #tpu.memory_space<vmem>>, %arg19: memref<2x128xf32, #tpu.memory_space<vmem>>) attributes {dimension_semantics = [#tpu.dimension_semantics<arbitrary>], iteration_bounds = array<i64: 1>, scalar_prefetch = 1 : i64, scratch_operands = 0 : i64, tpu.core_type = #tpu.core_type<tc>, window_params = [{pipeline_mode = #tpu.pipeline_mode<synchronous>, transform_indices = @transform_0, window_bounds = array<i64: 2, 8, 64>}, {pipeline_mode = #tpu.pipeline_mode<synchronous>, transform_indices = @transform_1, window_bounds = array<i64: 1, 64>}, {pipeline_mode = #tpu.pipeline_mode<synchronous>, transform_indices = @transform_2, window_bounds = array<i64: 1, 64>}, {pipeline_mode = #tpu.pipeline_mode<synchronous>, transform_indices = @transform_3, window_bounds = array<i64: 2, 64, 192>}, {pipeline_mode = #tpu.pipeline_mode<synchronous>, transform_indices = @transform_4, window_bounds = array<i64: 2, 1, 192>}, {pipeline_mode = #tpu.pipeline_mode<synchronous>, transform_indices = @transform_5, window_bounds = array<i64: 2, 64, 64>}, {pipeline_mode = #tpu.pipeline_mode<synchronous>, transform_indices = @transform_6, window_bounds = array<i64: 2, 1, 64>}, {pipeline_mode = #tpu.pipeline_mode<synchronous>, transform_indices = @transform_7, window_bounds = array<i64: 2, 1, 64>}, {pipeline_mode = #tpu.pipeline_mode<synchronous>, transform_indices = @transform_8, window_bounds = array<i64: 2, 1, 64>}, {pipeline_mode = #tpu.pipeline_mode<synchronous>, transform_indices = @transform_9, window_bounds = array<i64: 2, 64, 128>}, {pipeline_mode = #tpu.pipeline_mode<synchronous>, transform_indices = @transform_10, window_bounds = array<i64: 2, 1, 128>}, {pipeline_mode = #tpu.pipeline_mode<synchronous>, transform_indices = @transform_11, window_bounds = array<i64: 2, 128, 64>}, {pipeline_mode = #tpu.pipeline_mode<synchronous>, transform_indices = @transform_12, window_bounds = array<i64: 2, 1, 64>}, {pipeline_mode = #tpu.pipeline_mode<synchronous>, transform_indices = @transform_13, window_bounds = array<i64: 2, 1, 64>}, {pipeline_mode = #tpu.pipeline_mode<synchronous>, transform_indices = @transform_14, window_bounds = array<i64: 2, 1, 64>}, {pipeline_mode = #tpu.pipeline_mode<synchronous>, transform_indices = @transform_15, window_bounds = array<i64: 64, 128>}, {pipeline_mode = #tpu.pipeline_mode<synchronous>, transform_indices = @transform_16, window_bounds = array<i64: 1, 128>}, {pipeline_mode = #tpu.pipeline_mode<synchronous>, transform_indices = @transform_17, window_bounds = array<i64: 2, 128>}]} {
    %c0 = arith.constant 0 : index
    %c0_0 = arith.constant 0 : index
    %c0_1 = arith.constant 0 : index
    %0 = vector.load %arg2[%c0, %c0_0, %c0_1] : memref<2x8x64xf32, #tpu.memory_space<vmem>>, vector<2x8x64xf32>
    %c0_2 = arith.constant 0 : index
    %c0_3 = arith.constant 0 : index
    %1 = vector.load %arg3[%c0_2, %c0_3] : memref<1x64xf32, #tpu.memory_space<vmem>>, vector<1x64xf32>
    %c0_4 = arith.constant 0 : index
    %c0_5 = arith.constant 0 : index
    %2 = vector.load %arg4[%c0_4, %c0_5] : memref<1x64xf32, #tpu.memory_space<vmem>>, vector<1x64xf32>
    %cst = arith.constant dense<0.000000e+00> : vector<2x8xf32>
    %3 = vector.multi_reduction <add>, %0, %cst [2] : vector<2x8x64xf32> to vector<2x8xf32>
    %4 = vector.shape_cast %3 : vector<2x8xf32> to vector<2x8x1xf32>
    %cst_6 = arith.constant 6.400000e+01 : f32
    %5 = vector.broadcast %cst_6 : f32 to vector<2x8x1xf32>
    %6 = arith.divf %4, %5 : vector<2x8x1xf32>
    %7 = vector.broadcast %6 : vector<2x8x1xf32> to vector<2x8x64xf32>
    %8 = arith.subf %0, %7 : vector<2x8x64xf32>
    %9 = arith.mulf %8, %8 : vector<2x8x64xf32>
    %cst_7 = arith.constant dense<0.000000e+00> : vector<2x8xf32>
    %10 = vector.multi_reduction <add>, %9, %cst_7 [2] : vector<2x8x64xf32> to vector<2x8xf32>
    %11 = vector.shape_cast %10 : vector<2x8xf32> to vector<2x8x1xf32>
    %cst_8 = arith.constant 6.400000e+01 : f32
    %12 = vector.broadcast %cst_8 : f32 to vector<2x8x1xf32>
    %13 = arith.divf %11, %12 : vector<2x8x1xf32>
    %14 = vector.broadcast %6 : vector<2x8x1xf32> to vector<2x8x64xf32>
    %15 = arith.subf %0, %14 : vector<2x8x64xf32>
    %cst_9 = arith.constant 9.99999996E-13 : f32
    %16 = vector.broadcast %cst_9 : f32 to vector<2x8x1xf32>
    %17 = arith.addf %13, %16 : vector<2x8x1xf32>
    %18 = math.rsqrt %17 : vector<2x8x1xf32>
    %19 = vector.broadcast %18 : vector<2x8x1xf32> to vector<2x8x64xf32>
    %20 = arith.mulf %15, %19 : vector<2x8x64xf32>
    %21 = vector.shape_cast %1 : vector<1x64xf32> to vector<1x1x64xf32>
    %22 = vector.broadcast %21 : vector<1x1x64xf32> to vector<2x8x64xf32>
    %23 = arith.mulf %20, %22 : vector<2x8x64xf32>
    %24 = vector.shape_cast %2 : vector<1x64xf32> to vector<1x1x64xf32>
    %25 = vector.broadcast %24 : vector<1x1x64xf32> to vector<2x8x64xf32>
    %26 = arith.addf %23, %25 : vector<2x8x64xf32>
    %27 = tpu.iota {dimensions = array<i32: 2>} : vector<1x1x8xi32>
    %c0_10 = arith.constant 0 : index
    %28 = memref.load %arg1[%c0_10] : memref<2xi32, #tpu.memory_space<smem>>
    %29 = vector.broadcast %28 : i32 to vector<1x1x8xi32>
    %30 = arith.cmpi slt, %27, %29 : vector<1x1x8xi32>
    %cst_11 = arith.constant 0.000000e+00 : f32
    %cst_12 = arith.constant -1.000000e+09 : f32
    %31 = vector.broadcast %cst_11 : f32 to vector<1x1x8xf32>
    %32 = vector.broadcast %cst_12 : f32 to vector<1x1x8xf32>
    %33 = arith.select %30, %31, %32 : vector<1x1x8xi1>, vector<1x1x8xf32>
    %c1 = arith.constant 1 : index
    %34 = memref.load %arg1[%c1] : memref<2xi32, #tpu.memory_space<smem>>
    %35 = vector.broadcast %34 : i32 to vector<1x1x8xi32>
    %36 = arith.cmpi slt, %27, %35 : vector<1x1x8xi32>
    %cst_13 = arith.constant 0.000000e+00 : f32
    %cst_14 = arith.constant -1.000000e+09 : f32
    %37 = vector.broadcast %cst_13 : f32 to vector<1x1x8xf32>
    %38 = vector.broadcast %cst_14 : f32 to vector<1x1x8xf32>
    %39 = arith.select %36, %37, %38 : vector<1x1x8xi1>, vector<1x1x8xf32>
    %40 = tpu.concatenate %33, %39 in 0 : vector<1x1x8xf32>, vector<1x1x8xf32> -> vector<2x1x8xf32>
    %41 = vector.shape_cast %26 : vector<2x8x64xf32> to vector<16x64xf32>
    %42 = arith.truncf %41 : vector<16x64xf32> to vector<16x64xbf16>
    %c0_15 = arith.constant 0 : index
    %c0_16 = arith.constant 0 : index
    %c0_17 = arith.constant 0 : index
    %43 = vector.load %arg5[%c0_15, %c0_16, %c0_17] : memref<2x64x192xbf16, #tpu.memory_space<vmem>>, vector<1x64x192xbf16>
    %44 = vector.shape_cast %43 : vector<1x64x192xbf16> to vector<64x192xbf16>
    %cst_18 = arith.constant dense<0.000000e+00> : vector<16x192xf32>
    %45 = tpu.matmul %42, %44, %cst_18 {dimension_numbers = #tpu.dot_dimension_numbers<[1], [0], [0], [1], [0, 0, 1, 1], [], []>} : vector<16x64xbf16>, vector<64x192xbf16>, vector<16x192xf32> -> vector<16x192xf32>
    %c0_19 = arith.constant 0 : index
    %c0_20 = arith.constant 0 : index
    %c0_21 = arith.constant 0 : index
    %46 = vector.load %arg6[%c0_19, %c0_20, %c0_21] : memref<2x1x192xf32, #tpu.memory_space<vmem>>, vector<1x1x192xf32>
    %47 = vector.shape_cast %46 : vector<1x1x192xf32> to vector<1x192xf32>
    %48 = vector.broadcast %47 : vector<1x192xf32> to vector<16x192xf32>
    %49 = arith.addf %45, %48 : vector<16x192xf32>
    %50 = vector.shape_cast %49 : vector<16x192xf32> to vector<2x8x192xf32>
    %c0_22 = arith.constant 0 : index
    %c0_23 = arith.constant 0 : index
    %c0_24 = arith.constant 0 : index
    %51 = vector.load %arg7[%c0_22, %c0_23, %c0_24] : memref<2x64x64xbf16, #tpu.memory_space<vmem>>, vector<1x64x64xbf16>
    %52 = vector.shape_cast %51 : vector<1x64x64xbf16> to vector<64x64xbf16>
    %cst_25 = arith.constant 0.000000e+00 : f32
    %53 = vector.broadcast %cst_25 : f32 to vector<16x64xf32>
    %54 = vector.extract_strided_slice %50 {offsets = [0, 0, 0], sizes = [2, 8, 16], strides = [1, 1, 1]} : vector<2x8x192xf32> to vector<2x8x16xf32>
    %55 = arith.truncf %54 : vector<2x8x16xf32> to vector<2x8x16xbf16>
    %56 = vector.extract_strided_slice %50 {offsets = [0, 0, 64], sizes = [2, 8, 16], strides = [1, 1, 1]} : vector<2x8x192xf32> to vector<2x8x16xf32>
    %57 = arith.truncf %56 : vector<2x8x16xf32> to vector<2x8x16xbf16>
    %58 = vector.extract_strided_slice %50 {offsets = [0, 0, 128], sizes = [2, 8, 16], strides = [1, 1, 1]} : vector<2x8x192xf32> to vector<2x8x16xf32>
    %59 = arith.truncf %58 : vector<2x8x16xf32> to vector<2x8x16xbf16>
    "tpu.trace_start"() <{level = 10 : i32, message = "bqd,bkd->bqk"}> : () -> ()
    %cst_26 = arith.constant dense<0.000000e+00> : vector<2x8x8xf32>
    %60 = tpu.matmul %55, %57, %cst_26 {dimension_numbers = #tpu.dot_dimension_numbers<[2], [2], [1], [1], [0, 0, 0, 1, 1, 1], [0], [0]>} : vector<2x8x16xbf16>, vector<2x8x16xbf16>, vector<2x8x8xf32> -> vector<2x8x8xf32>
    "tpu.trace_stop"() : () -> ()
    %cst_27 = arith.constant 2.500000e-01 : f32
    %61 = vector.broadcast %cst_27 : f32 to vector<2x8x8xf32>
    %62 = arith.mulf %60, %61 : vector<2x8x8xf32>
    %63 = vector.broadcast %40 : vector<2x1x8xf32> to vector<2x8x8xf32>
    %64 = arith.addf %62, %63 : vector<2x8x8xf32>
    %cst_28 = arith.constant dense<0xFF800000> : vector<2x8xf32>
    %65 = vector.multi_reduction <maximumf>, %64, %cst_28 [2] : vector<2x8x8xf32> to vector<2x8xf32>
    %66 = vector.shape_cast %65 : vector<2x8xf32> to vector<2x8x1xf32>
    %67 = vector.broadcast %66 : vector<2x8x1xf32> to vector<2x8x8xf32>
    %68 = arith.subf %64, %67 : vector<2x8x8xf32>
    %69 = math.exp %68 : vector<2x8x8xf32>
    %cst_29 = arith.constant dense<0.000000e+00> : vector<2x8xf32>
    %70 = vector.multi_reduction <add>, %69, %cst_29 [2] : vector<2x8x8xf32> to vector<2x8xf32>
    %71 = vector.shape_cast %70 : vector<2x8xf32> to vector<2x8x1xf32>
    %72 = tpu.reciprocal %71 {approx = true} : vector<2x8x1xf32> -> vector<2x8x1xf32>
    %73 = vector.broadcast %72 : vector<2x8x1xf32> to vector<2x8x8xf32>
    %74 = arith.mulf %69, %73 : vector<2x8x8xf32>
    %75 = arith.truncf %74 : vector<2x8x8xf32> to vector<2x8x8xbf16>
    "tpu.trace_start"() <{level = 10 : i32, message = "bqk,bkd->bqd"}> : () -> ()
    %cst_30 = arith.constant dense<0.000000e+00> : vector<2x8x16xf32>
    %76 = tpu.matmul %75, %59, %cst_30 {dimension_numbers = #tpu.dot_dimension_numbers<[2], [1], [1], [2], [0, 0, 0, 1, 1, 2], [0], [0]>} : vector<2x8x8xbf16>, vector<2x8x16xbf16>, vector<2x8x16xf32> -> vector<2x8x16xf32>
    "tpu.trace_stop"() : () -> ()
    %77 = vector.shape_cast %76 : vector<2x8x16xf32> to vector<16x16xf32>
    %78 = arith.truncf %77 : vector<16x16xf32> to vector<16x16xbf16>
    %79 = vector.extract_strided_slice %52 {offsets = [0, 0], sizes = [16, 64], strides = [1, 1]} : vector<64x64xbf16> to vector<16x64xbf16>
    %cst_31 = arith.constant dense<0.000000e+00> : vector<16x64xf32>
    %80 = tpu.matmul %78, %79, %cst_31 {dimension_numbers = #tpu.dot_dimension_numbers<[1], [0], [0], [1], [0, 0, 1, 1], [], []>} : vector<16x16xbf16>, vector<16x64xbf16>, vector<16x64xf32> -> vector<16x64xf32>
    %81 = arith.addf %53, %80 : vector<16x64xf32>
    %82 = vector.extract_strided_slice %50 {offsets = [0, 0, 16], sizes = [2, 8, 16], strides = [1, 1, 1]} : vector<2x8x192xf32> to vector<2x8x16xf32>
    %83 = arith.truncf %82 : vector<2x8x16xf32> to vector<2x8x16xbf16>
    %84 = vector.extract_strided_slice %50 {offsets = [0, 0, 80], sizes = [2, 8, 16], strides = [1, 1, 1]} : vector<2x8x192xf32> to vector<2x8x16xf32>
    %85 = arith.truncf %84 : vector<2x8x16xf32> to vector<2x8x16xbf16>
    %86 = vector.extract_strided_slice %50 {offsets = [0, 0, 144], sizes = [2, 8, 16], strides = [1, 1, 1]} : vector<2x8x192xf32> to vector<2x8x16xf32>
    %87 = arith.truncf %86 : vector<2x8x16xf32> to vector<2x8x16xbf16>
    "tpu.trace_start"() <{level = 10 : i32, message = "bqd,bkd->bqk"}> : () -> ()
    %cst_32 = arith.constant dense<0.000000e+00> : vector<2x8x8xf32>
    %88 = tpu.matmul %83, %85, %cst_32 {dimension_numbers = #tpu.dot_dimension_numbers<[2], [2], [1], [1], [0, 0, 0, 1, 1, 1], [0], [0]>} : vector<2x8x16xbf16>, vector<2x8x16xbf16>, vector<2x8x8xf32> -> vector<2x8x8xf32>
    "tpu.trace_stop"() : () -> ()
    %cst_33 = arith.constant 2.500000e-01 : f32
    %89 = vector.broadcast %cst_33 : f32 to vector<2x8x8xf32>
    %90 = arith.mulf %88, %89 : vector<2x8x8xf32>
    %91 = vector.broadcast %40 : vector<2x1x8xf32> to vector<2x8x8xf32>
    %92 = arith.addf %90, %91 : vector<2x8x8xf32>
    %cst_34 = arith.constant dense<0xFF800000> : vector<2x8xf32>
    %93 = vector.multi_reduction <maximumf>, %92, %cst_34 [2] : vector<2x8x8xf32> to vector<2x8xf32>
    %94 = vector.shape_cast %93 : vector<2x8xf32> to vector<2x8x1xf32>
    %95 = vector.broadcast %94 : vector<2x8x1xf32> to vector<2x8x8xf32>
    %96 = arith.subf %92, %95 : vector<2x8x8xf32>
    %97 = math.exp %96 : vector<2x8x8xf32>
    %cst_35 = arith.constant dense<0.000000e+00> : vector<2x8xf32>
    %98 = vector.multi_reduction <add>, %97, %cst_35 [2] : vector<2x8x8xf32> to vector<2x8xf32>
    %99 = vector.shape_cast %98 : vector<2x8xf32> to vector<2x8x1xf32>
    %100 = tpu.reciprocal %99 {approx = true} : vector<2x8x1xf32> -> vector<2x8x1xf32>
    %101 = vector.broadcast %100 : vector<2x8x1xf32> to vector<2x8x8xf32>
    %102 = arith.mulf %97, %101 : vector<2x8x8xf32>
    %103 = arith.truncf %102 : vector<2x8x8xf32> to vector<2x8x8xbf16>
    "tpu.trace_start"() <{level = 10 : i32, message = "bqk,bkd->bqd"}> : () -> ()
    %cst_36 = arith.constant dense<0.000000e+00> : vector<2x8x16xf32>
    %104 = tpu.matmul %103, %87, %cst_36 {dimension_numbers = #tpu.dot_dimension_numbers<[2], [1], [1], [2], [0, 0, 0, 1, 1, 2], [0], [0]>} : vector<2x8x8xbf16>, vector<2x8x16xbf16>, vector<2x8x16xf32> -> vector<2x8x16xf32>
    "tpu.trace_stop"() : () -> ()
    %105 = vector.shape_cast %104 : vector<2x8x16xf32> to vector<16x16xf32>
    %106 = arith.truncf %105 : vector<16x16xf32> to vector<16x16xbf16>
    %107 = vector.extract_strided_slice %52 {offsets = [16, 0], sizes = [16, 64], strides = [1, 1]} : vector<64x64xbf16> to vector<16x64xbf16>
    %cst_37 = arith.constant dense<0.000000e+00> : vector<16x64xf32>
    %108 = tpu.matmul %106, %107, %cst_37 {dimension_numbers = #tpu.dot_dimension_numbers<[1], [0], [0], [1], [0, 0, 1, 1], [], []>} : vector<16x16xbf16>, vector<16x64xbf16>, vector<16x64xf32> -> vector<16x64xf32>
    %109 = arith.addf %81, %108 : vector<16x64xf32>
    %110 = vector.extract_strided_slice %50 {offsets = [0, 0, 32], sizes = [2, 8, 16], strides = [1, 1, 1]} : vector<2x8x192xf32> to vector<2x8x16xf32>
    %111 = arith.truncf %110 : vector<2x8x16xf32> to vector<2x8x16xbf16>
    %112 = vector.extract_strided_slice %50 {offsets = [0, 0, 96], sizes = [2, 8, 16], strides = [1, 1, 1]} : vector<2x8x192xf32> to vector<2x8x16xf32>
    %113 = arith.truncf %112 : vector<2x8x16xf32> to vector<2x8x16xbf16>
    %114 = vector.extract_strided_slice %50 {offsets = [0, 0, 160], sizes = [2, 8, 16], strides = [1, 1, 1]} : vector<2x8x192xf32> to vector<2x8x16xf32>
    %115 = arith.truncf %114 : vector<2x8x16xf32> to vector<2x8x16xbf16>
    "tpu.trace_start"() <{level = 10 : i32, message = "bqd,bkd->bqk"}> : () -> ()
    %cst_38 = arith.constant dense<0.000000e+00> : vector<2x8x8xf32>
    %116 = tpu.matmul %111, %113, %cst_38 {dimension_numbers = #tpu.dot_dimension_numbers<[2], [2], [1], [1], [0, 0, 0, 1, 1, 1], [0], [0]>} : vector<2x8x16xbf16>, vector<2x8x16xbf16>, vector<2x8x8xf32> -> vector<2x8x8xf32>
    "tpu.trace_stop"() : () -> ()
    %cst_39 = arith.constant 2.500000e-01 : f32
    %117 = vector.broadcast %cst_39 : f32 to vector<2x8x8xf32>
    %118 = arith.mulf %116, %117 : vector<2x8x8xf32>
    %119 = vector.broadcast %40 : vector<2x1x8xf32> to vector<2x8x8xf32>
    %120 = arith.addf %118, %119 : vector<2x8x8xf32>
    %cst_40 = arith.constant dense<0xFF800000> : vector<2x8xf32>
    %121 = vector.multi_reduction <maximumf>, %120, %cst_40 [2] : vector<2x8x8xf32> to vector<2x8xf32>
    %122 = vector.shape_cast %121 : vector<2x8xf32> to vector<2x8x1xf32>
    %123 = vector.broadcast %122 : vector<2x8x1xf32> to vector<2x8x8xf32>
    %124 = arith.subf %120, %123 : vector<2x8x8xf32>
    %125 = math.exp %124 : vector<2x8x8xf32>
    %cst_41 = arith.constant dense<0.000000e+00> : vector<2x8xf32>
    %126 = vector.multi_reduction <add>, %125, %cst_41 [2] : vector<2x8x8xf32> to vector<2x8xf32>
    %127 = vector.shape_cast %126 : vector<2x8xf32> to vector<2x8x1xf32>
    %128 = tpu.reciprocal %127 {approx = true} : vector<2x8x1xf32> -> vector<2x8x1xf32>
    %129 = vector.broadcast %128 : vector<2x8x1xf32> to vector<2x8x8xf32>
    %130 = arith.mulf %125, %129 : vector<2x8x8xf32>
    %131 = arith.truncf %130 : vector<2x8x8xf32> to vector<2x8x8xbf16>
    "tpu.trace_start"() <{level = 10 : i32, message = "bqk,bkd->bqd"}> : () -> ()
    %cst_42 = arith.constant dense<0.000000e+00> : vector<2x8x16xf32>
    %132 = tpu.matmul %131, %115, %cst_42 {dimension_numbers = #tpu.dot_dimension_numbers<[2], [1], [1], [2], [0, 0, 0, 1, 1, 2], [0], [0]>} : vector<2x8x8xbf16>, vector<2x8x16xbf16>, vector<2x8x16xf32> -> vector<2x8x16xf32>
    "tpu.trace_stop"() : () -> ()
    %133 = vector.shape_cast %132 : vector<2x8x16xf32> to vector<16x16xf32>
    %134 = arith.truncf %133 : vector<16x16xf32> to vector<16x16xbf16>
    %135 = vector.extract_strided_slice %52 {offsets = [32, 0], sizes = [16, 64], strides = [1, 1]} : vector<64x64xbf16> to vector<16x64xbf16>
    %cst_43 = arith.constant dense<0.000000e+00> : vector<16x64xf32>
    %136 = tpu.matmul %134, %135, %cst_43 {dimension_numbers = #tpu.dot_dimension_numbers<[1], [0], [0], [1], [0, 0, 1, 1], [], []>} : vector<16x16xbf16>, vector<16x64xbf16>, vector<16x64xf32> -> vector<16x64xf32>
    %137 = arith.addf %109, %136 : vector<16x64xf32>
    %138 = vector.extract_strided_slice %50 {offsets = [0, 0, 48], sizes = [2, 8, 16], strides = [1, 1, 1]} : vector<2x8x192xf32> to vector<2x8x16xf32>
    %139 = arith.truncf %138 : vector<2x8x16xf32> to vector<2x8x16xbf16>
    %140 = vector.extract_strided_slice %50 {offsets = [0, 0, 112], sizes = [2, 8, 16], strides = [1, 1, 1]} : vector<2x8x192xf32> to vector<2x8x16xf32>
    %141 = arith.truncf %140 : vector<2x8x16xf32> to vector<2x8x16xbf16>
    %142 = vector.extract_strided_slice %50 {offsets = [0, 0, 176], sizes = [2, 8, 16], strides = [1, 1, 1]} : vector<2x8x192xf32> to vector<2x8x16xf32>
    %143 = arith.truncf %142 : vector<2x8x16xf32> to vector<2x8x16xbf16>
    "tpu.trace_start"() <{level = 10 : i32, message = "bqd,bkd->bqk"}> : () -> ()
    %cst_44 = arith.constant dense<0.000000e+00> : vector<2x8x8xf32>
    %144 = tpu.matmul %139, %141, %cst_44 {dimension_numbers = #tpu.dot_dimension_numbers<[2], [2], [1], [1], [0, 0, 0, 1, 1, 1], [0], [0]>} : vector<2x8x16xbf16>, vector<2x8x16xbf16>, vector<2x8x8xf32> -> vector<2x8x8xf32>
    "tpu.trace_stop"() : () -> ()
    %cst_45 = arith.constant 2.500000e-01 : f32
    %145 = vector.broadcast %cst_45 : f32 to vector<2x8x8xf32>
    %146 = arith.mulf %144, %145 : vector<2x8x8xf32>
    %147 = vector.broadcast %40 : vector<2x1x8xf32> to vector<2x8x8xf32>
    %148 = arith.addf %146, %147 : vector<2x8x8xf32>
    %cst_46 = arith.constant dense<0xFF800000> : vector<2x8xf32>
    %149 = vector.multi_reduction <maximumf>, %148, %cst_46 [2] : vector<2x8x8xf32> to vector<2x8xf32>
    %150 = vector.shape_cast %149 : vector<2x8xf32> to vector<2x8x1xf32>
    %151 = vector.broadcast %150 : vector<2x8x1xf32> to vector<2x8x8xf32>
    %152 = arith.subf %148, %151 : vector<2x8x8xf32>
    %153 = math.exp %152 : vector<2x8x8xf32>
    %cst_47 = arith.constant dense<0.000000e+00> : vector<2x8xf32>
    %154 = vector.multi_reduction <add>, %153, %cst_47 [2] : vector<2x8x8xf32> to vector<2x8xf32>
    %155 = vector.shape_cast %154 : vector<2x8xf32> to vector<2x8x1xf32>
    %156 = tpu.reciprocal %155 {approx = true} : vector<2x8x1xf32> -> vector<2x8x1xf32>
    %157 = vector.broadcast %156 : vector<2x8x1xf32> to vector<2x8x8xf32>
    %158 = arith.mulf %153, %157 : vector<2x8x8xf32>
    %159 = arith.truncf %158 : vector<2x8x8xf32> to vector<2x8x8xbf16>
    "tpu.trace_start"() <{level = 10 : i32, message = "bqk,bkd->bqd"}> : () -> ()
    %cst_48 = arith.constant dense<0.000000e+00> : vector<2x8x16xf32>
    %160 = tpu.matmul %159, %143, %cst_48 {dimension_numbers = #tpu.dot_dimension_numbers<[2], [1], [1], [2], [0, 0, 0, 1, 1, 2], [0], [0]>} : vector<2x8x8xbf16>, vector<2x8x16xbf16>, vector<2x8x16xf32> -> vector<2x8x16xf32>
    "tpu.trace_stop"() : () -> ()
    %161 = vector.shape_cast %160 : vector<2x8x16xf32> to vector<16x16xf32>
    %162 = arith.truncf %161 : vector<16x16xf32> to vector<16x16xbf16>
    %163 = vector.extract_strided_slice %52 {offsets = [48, 0], sizes = [16, 64], strides = [1, 1]} : vector<64x64xbf16> to vector<16x64xbf16>
    %cst_49 = arith.constant dense<0.000000e+00> : vector<16x64xf32>
    %164 = tpu.matmul %162, %163, %cst_49 {dimension_numbers = #tpu.dot_dimension_numbers<[1], [0], [0], [1], [0, 0, 1, 1], [], []>} : vector<16x16xbf16>, vector<16x64xbf16>, vector<16x64xf32> -> vector<16x64xf32>
    %165 = arith.addf %137, %164 : vector<16x64xf32>
    %c0_50 = arith.constant 0 : index
    %c0_51 = arith.constant 0 : index
    %c0_52 = arith.constant 0 : index
    %166 = vector.load %arg8[%c0_50, %c0_51, %c0_52] : memref<2x1x64xf32, #tpu.memory_space<vmem>>, vector<1x1x64xf32>
    %167 = vector.shape_cast %166 : vector<1x1x64xf32> to vector<1x64xf32>
    %168 = vector.broadcast %167 : vector<1x64xf32> to vector<16x64xf32>
    %169 = arith.addf %165, %168 : vector<16x64xf32>
    %170 = vector.shape_cast %169 : vector<16x64xf32> to vector<2x8x64xf32>
    %171 = arith.addf %26, %170 : vector<2x8x64xf32>
    %c0_53 = arith.constant 0 : index
    %c0_54 = arith.constant 0 : index
    %c0_55 = arith.constant 0 : index
    %172 = vector.load %arg9[%c0_53, %c0_54, %c0_55] : memref<2x1x64xf32, #tpu.memory_space<vmem>>, vector<1x1x64xf32>
    %173 = vector.shape_cast %172 : vector<1x1x64xf32> to vector<1x64xf32>
    %c0_56 = arith.constant 0 : index
    %c0_57 = arith.constant 0 : index
    %c0_58 = arith.constant 0 : index
    %174 = vector.load %arg10[%c0_56, %c0_57, %c0_58] : memref<2x1x64xf32, #tpu.memory_space<vmem>>, vector<1x1x64xf32>
    %175 = vector.shape_cast %174 : vector<1x1x64xf32> to vector<1x64xf32>
    %cst_59 = arith.constant dense<0.000000e+00> : vector<2x8xf32>
    %176 = vector.multi_reduction <add>, %171, %cst_59 [2] : vector<2x8x64xf32> to vector<2x8xf32>
    %177 = vector.shape_cast %176 : vector<2x8xf32> to vector<2x8x1xf32>
    %cst_60 = arith.constant 6.400000e+01 : f32
    %178 = vector.broadcast %cst_60 : f32 to vector<2x8x1xf32>
    %179 = arith.divf %177, %178 : vector<2x8x1xf32>
    %180 = vector.broadcast %179 : vector<2x8x1xf32> to vector<2x8x64xf32>
    %181 = arith.subf %171, %180 : vector<2x8x64xf32>
    %182 = arith.mulf %181, %181 : vector<2x8x64xf32>
    %cst_61 = arith.constant dense<0.000000e+00> : vector<2x8xf32>
    %183 = vector.multi_reduction <add>, %182, %cst_61 [2] : vector<2x8x64xf32> to vector<2x8xf32>
    %184 = vector.shape_cast %183 : vector<2x8xf32> to vector<2x8x1xf32>
    %cst_62 = arith.constant 6.400000e+01 : f32
    %185 = vector.broadcast %cst_62 : f32 to vector<2x8x1xf32>
    %186 = arith.divf %184, %185 : vector<2x8x1xf32>
    %187 = vector.broadcast %179 : vector<2x8x1xf32> to vector<2x8x64xf32>
    %188 = arith.subf %171, %187 : vector<2x8x64xf32>
    %cst_63 = arith.constant 9.99999996E-13 : f32
    %189 = vector.broadcast %cst_63 : f32 to vector<2x8x1xf32>
    %190 = arith.addf %186, %189 : vector<2x8x1xf32>
    %191 = math.rsqrt %190 : vector<2x8x1xf32>
    %192 = vector.broadcast %191 : vector<2x8x1xf32> to vector<2x8x64xf32>
    %193 = arith.mulf %188, %192 : vector<2x8x64xf32>
    %194 = vector.shape_cast %173 : vector<1x64xf32> to vector<1x1x64xf32>
    %195 = vector.broadcast %194 : vector<1x1x64xf32> to vector<2x8x64xf32>
    %196 = arith.mulf %193, %195 : vector<2x8x64xf32>
    %197 = vector.shape_cast %175 : vector<1x64xf32> to vector<1x1x64xf32>
    %198 = vector.broadcast %197 : vector<1x1x64xf32> to vector<2x8x64xf32>
    %199 = arith.addf %196, %198 : vector<2x8x64xf32>
    %200 = vector.shape_cast %199 : vector<2x8x64xf32> to vector<16x64xf32>
    %201 = arith.truncf %200 : vector<16x64xf32> to vector<16x64xbf16>
    %c0_64 = arith.constant 0 : index
    %c0_65 = arith.constant 0 : index
    %c0_66 = arith.constant 0 : index
    %202 = vector.load %arg11[%c0_64, %c0_65, %c0_66] : memref<2x64x128xbf16, #tpu.memory_space<vmem>>, vector<1x64x128xbf16>
    %203 = vector.shape_cast %202 : vector<1x64x128xbf16> to vector<64x128xbf16>
    %cst_67 = arith.constant dense<0.000000e+00> : vector<16x128xf32>
    %204 = tpu.matmul %201, %203, %cst_67 {dimension_numbers = #tpu.dot_dimension_numbers<[1], [0], [0], [1], [0, 0, 1, 1], [], []>} : vector<16x64xbf16>, vector<64x128xbf16>, vector<16x128xf32> -> vector<16x128xf32>
    %c0_68 = arith.constant 0 : index
    %c0_69 = arith.constant 0 : index
    %c0_70 = arith.constant 0 : index
    %205 = vector.load %arg12[%c0_68, %c0_69, %c0_70] : memref<2x1x128xf32, #tpu.memory_space<vmem>>, vector<1x1x128xf32>
    %206 = vector.shape_cast %205 : vector<1x1x128xf32> to vector<1x128xf32>
    %207 = vector.broadcast %206 : vector<1x128xf32> to vector<16x128xf32>
    %208 = arith.addf %204, %207 : vector<16x128xf32>
    %209 = arith.mulf %208, %208 : vector<16x128xf32>
    %210 = arith.mulf %208, %209 : vector<16x128xf32>
    %cst_71 = arith.constant 4.471500e-02 : f32
    %211 = vector.broadcast %cst_71 : f32 to vector<16x128xf32>
    %212 = arith.mulf %211, %210 : vector<16x128xf32>
    %213 = arith.addf %208, %212 : vector<16x128xf32>
    %cst_72 = arith.constant 0.797884583 : f32
    %214 = vector.broadcast %cst_72 : f32 to vector<16x128xf32>
    %215 = arith.mulf %214, %213 : vector<16x128xf32>
    %216 = math.tanh %215 : vector<16x128xf32>
    %cst_73 = arith.constant 1.000000e+00 : f32
    %217 = vector.broadcast %cst_73 : f32 to vector<16x128xf32>
    %218 = arith.addf %217, %216 : vector<16x128xf32>
    %cst_74 = arith.constant 5.000000e-01 : f32
    %219 = vector.broadcast %cst_74 : f32 to vector<16x128xf32>
    %220 = arith.mulf %219, %218 : vector<16x128xf32>
    %221 = arith.mulf %208, %220 : vector<16x128xf32>
    %222 = arith.truncf %221 : vector<16x128xf32> to vector<16x128xbf16>
    %c0_75 = arith.constant 0 : index
    %c0_76 = arith.constant 0 : index
    %c0_77 = arith.constant 0 : index
    %223 = vector.load %arg13[%c0_75, %c0_76, %c0_77] : memref<2x128x64xbf16, #tpu.memory_space<vmem>>, vector<1x128x64xbf16>
    %224 = vector.shape_cast %223 : vector<1x128x64xbf16> to vector<128x64xbf16>
    %cst_78 = arith.constant dense<0.000000e+00> : vector<16x64xf32>
    %225 = tpu.matmul %222, %224, %cst_78 {dimension_numbers = #tpu.dot_dimension_numbers<[1], [0], [0], [1], [0, 0, 1, 1], [], []>} : vector<16x128xbf16>, vector<128x64xbf16>, vector<16x64xf32> -> vector<16x64xf32>
    %c0_79 = arith.constant 0 : index
    %c0_80 = arith.constant 0 : index
    %c0_81 = arith.constant 0 : index
    %226 = vector.load %arg14[%c0_79, %c0_80, %c0_81] : memref<2x1x64xf32, #tpu.memory_space<vmem>>, vector<1x1x64xf32>
    %227 = vector.shape_cast %226 : vector<1x1x64xf32> to vector<1x64xf32>
    %228 = vector.broadcast %227 : vector<1x64xf32> to vector<16x64xf32>
    %229 = arith.addf %225, %228 : vector<16x64xf32>
    %230 = vector.shape_cast %229 : vector<16x64xf32> to vector<2x8x64xf32>
    %231 = arith.addf %199, %230 : vector<2x8x64xf32>
    %c0_82 = arith.constant 0 : index
    %c0_83 = arith.constant 0 : index
    %c0_84 = arith.constant 0 : index
    %232 = vector.load %arg15[%c0_82, %c0_83, %c0_84] : memref<2x1x64xf32, #tpu.memory_space<vmem>>, vector<1x1x64xf32>
    %233 = vector.shape_cast %232 : vector<1x1x64xf32> to vector<1x64xf32>
    %c0_85 = arith.constant 0 : index
    %c0_86 = arith.constant 0 : index
    %c0_87 = arith.constant 0 : index
    %234 = vector.load %arg16[%c0_85, %c0_86, %c0_87] : memref<2x1x64xf32, #tpu.memory_space<vmem>>, vector<1x1x64xf32>
    %235 = vector.shape_cast %234 : vector<1x1x64xf32> to vector<1x64xf32>
    %cst_88 = arith.constant dense<0.000000e+00> : vector<2x8xf32>
    %236 = vector.multi_reduction <add>, %231, %cst_88 [2] : vector<2x8x64xf32> to vector<2x8xf32>
    %237 = vector.shape_cast %236 : vector<2x8xf32> to vector<2x8x1xf32>
    %cst_89 = arith.constant 6.400000e+01 : f32
    %238 = vector.broadcast %cst_89 : f32 to vector<2x8x1xf32>
    %239 = arith.divf %237, %238 : vector<2x8x1xf32>
    %240 = vector.broadcast %239 : vector<2x8x1xf32> to vector<2x8x64xf32>
    %241 = arith.subf %231, %240 : vector<2x8x64xf32>
    %242 = arith.mulf %241, %241 : vector<2x8x64xf32>
    %cst_90 = arith.constant dense<0.000000e+00> : vector<2x8xf32>
    %243 = vector.multi_reduction <add>, %242, %cst_90 [2] : vector<2x8x64xf32> to vector<2x8xf32>
    %244 = vector.shape_cast %243 : vector<2x8xf32> to vector<2x8x1xf32>
    %cst_91 = arith.constant 6.400000e+01 : f32
    %245 = vector.broadcast %cst_91 : f32 to vector<2x8x1xf32>
    %246 = arith.divf %244, %245 : vector<2x8x1xf32>
    %247 = vector.broadcast %239 : vector<2x8x1xf32> to vector<2x8x64xf32>
    %248 = arith.subf %231, %247 : vector<2x8x64xf32>
    %cst_92 = arith.constant 9.99999996E-13 : f32
    %249 = vector.broadcast %cst_92 : f32 to vector<2x8x1xf32>
    %250 = arith.addf %246, %249 : vector<2x8x1xf32>
    %251 = math.rsqrt %250 : vector<2x8x1xf32>
    %252 = vector.broadcast %251 : vector<2x8x1xf32> to vector<2x8x64xf32>
    %253 = arith.mulf %248, %252 : vector<2x8x64xf32>
    %254 = vector.shape_cast %233 : vector<1x64xf32> to vector<1x1x64xf32>
    %255 = vector.broadcast %254 : vector<1x1x64xf32> to vector<2x8x64xf32>
    %256 = arith.mulf %253, %255 : vector<2x8x64xf32>
    %257 = vector.shape_cast %235 : vector<1x64xf32> to vector<1x1x64xf32>
    %258 = vector.broadcast %257 : vector<1x1x64xf32> to vector<2x8x64xf32>
    %259 = arith.addf %256, %258 : vector<2x8x64xf32>
    %260 = vector.shape_cast %259 : vector<2x8x64xf32> to vector<16x64xf32>
    %261 = arith.truncf %260 : vector<16x64xf32> to vector<16x64xbf16>
    %c1_93 = arith.constant 1 : index
    %c0_94 = arith.constant 0 : index
    %c0_95 = arith.constant 0 : index
    %262 = vector.load %arg5[%c1_93, %c0_94, %c0_95] : memref<2x64x192xbf16, #tpu.memory_space<vmem>>, vector<1x64x192xbf16>
    %263 = vector.shape_cast %262 : vector<1x64x192xbf16> to vector<64x192xbf16>
    %cst_96 = arith.constant dense<0.000000e+00> : vector<16x192xf32>
    %264 = tpu.matmul %261, %263, %cst_96 {dimension_numbers = #tpu.dot_dimension_numbers<[1], [0], [0], [1], [0, 0, 1, 1], [], []>} : vector<16x64xbf16>, vector<64x192xbf16>, vector<16x192xf32> -> vector<16x192xf32>
    %c1_97 = arith.constant 1 : index
    %c0_98 = arith.constant 0 : index
    %c0_99 = arith.constant 0 : index
    %265 = vector.load %arg6[%c1_97, %c0_98, %c0_99] : memref<2x1x192xf32, #tpu.memory_space<vmem>>, vector<1x1x192xf32>
    %266 = vector.shape_cast %265 : vector<1x1x192xf32> to vector<1x192xf32>
    %267 = vector.broadcast %266 : vector<1x192xf32> to vector<16x192xf32>
    %268 = arith.addf %264, %267 : vector<16x192xf32>
    %269 = vector.shape_cast %268 : vector<16x192xf32> to vector<2x8x192xf32>
    %c1_100 = arith.constant 1 : index
    %c0_101 = arith.constant 0 : index
    %c0_102 = arith.constant 0 : index
    %270 = vector.load %arg7[%c1_100, %c0_101, %c0_102] : memref<2x64x64xbf16, #tpu.memory_space<vmem>>, vector<1x64x64xbf16>
    %271 = vector.shape_cast %270 : vector<1x64x64xbf16> to vector<64x64xbf16>
    %cst_103 = arith.constant 0.000000e+00 : f32
    %272 = vector.broadcast %cst_103 : f32 to vector<16x64xf32>
    %273 = vector.extract_strided_slice %269 {offsets = [0, 0, 0], sizes = [2, 8, 16], strides = [1, 1, 1]} : vector<2x8x192xf32> to vector<2x8x16xf32>
    %274 = arith.truncf %273 : vector<2x8x16xf32> to vector<2x8x16xbf16>
    %275 = vector.extract_strided_slice %269 {offsets = [0, 0, 64], sizes = [2, 8, 16], strides = [1, 1, 1]} : vector<2x8x192xf32> to vector<2x8x16xf32>
    %276 = arith.truncf %275 : vector<2x8x16xf32> to vector<2x8x16xbf16>
    %277 = vector.extract_strided_slice %269 {offsets = [0, 0, 128], sizes = [2, 8, 16], strides = [1, 1, 1]} : vector<2x8x192xf32> to vector<2x8x16xf32>
    %278 = arith.truncf %277 : vector<2x8x16xf32> to vector<2x8x16xbf16>
    "tpu.trace_start"() <{level = 10 : i32, message = "bqd,bkd->bqk"}> : () -> ()
    %cst_104 = arith.constant dense<0.000000e+00> : vector<2x8x8xf32>
    %279 = tpu.matmul %274, %276, %cst_104 {dimension_numbers = #tpu.dot_dimension_numbers<[2], [2], [1], [1], [0, 0, 0, 1, 1, 1], [0], [0]>} : vector<2x8x16xbf16>, vector<2x8x16xbf16>, vector<2x8x8xf32> -> vector<2x8x8xf32>
    "tpu.trace_stop"() : () -> ()
    %cst_105 = arith.constant 2.500000e-01 : f32
    %280 = vector.broadcast %cst_105 : f32 to vector<2x8x8xf32>
    %281 = arith.mulf %279, %280 : vector<2x8x8xf32>
    %282 = vector.broadcast %40 : vector<2x1x8xf32> to vector<2x8x8xf32>
    %283 = arith.addf %281, %282 : vector<2x8x8xf32>
    %cst_106 = arith.constant dense<0xFF800000> : vector<2x8xf32>
    %284 = vector.multi_reduction <maximumf>, %283, %cst_106 [2] : vector<2x8x8xf32> to vector<2x8xf32>
    %285 = vector.shape_cast %284 : vector<2x8xf32> to vector<2x8x1xf32>
    %286 = vector.broadcast %285 : vector<2x8x1xf32> to vector<2x8x8xf32>
    %287 = arith.subf %283, %286 : vector<2x8x8xf32>
    %288 = math.exp %287 : vector<2x8x8xf32>
    %cst_107 = arith.constant dense<0.000000e+00> : vector<2x8xf32>
    %289 = vector.multi_reduction <add>, %288, %cst_107 [2] : vector<2x8x8xf32> to vector<2x8xf32>
    %290 = vector.shape_cast %289 : vector<2x8xf32> to vector<2x8x1xf32>
    %291 = tpu.reciprocal %290 {approx = true} : vector<2x8x1xf32> -> vector<2x8x1xf32>
    %292 = vector.broadcast %291 : vector<2x8x1xf32> to vector<2x8x8xf32>
    %293 = arith.mulf %288, %292 : vector<2x8x8xf32>
    %294 = arith.truncf %293 : vector<2x8x8xf32> to vector<2x8x8xbf16>
    "tpu.trace_start"() <{level = 10 : i32, message = "bqk,bkd->bqd"}> : () -> ()
    %cst_108 = arith.constant dense<0.000000e+00> : vector<2x8x16xf32>
    %295 = tpu.matmul %294, %278, %cst_108 {dimension_numbers = #tpu.dot_dimension_numbers<[2], [1], [1], [2], [0, 0, 0, 1, 1, 2], [0], [0]>} : vector<2x8x8xbf16>, vector<2x8x16xbf16>, vector<2x8x16xf32> -> vector<2x8x16xf32>
    "tpu.trace_stop"() : () -> ()
    %296 = vector.shape_cast %295 : vector<2x8x16xf32> to vector<16x16xf32>
    %297 = arith.truncf %296 : vector<16x16xf32> to vector<16x16xbf16>
    %298 = vector.extract_strided_slice %271 {offsets = [0, 0], sizes = [16, 64], strides = [1, 1]} : vector<64x64xbf16> to vector<16x64xbf16>
    %cst_109 = arith.constant dense<0.000000e+00> : vector<16x64xf32>
    %299 = tpu.matmul %297, %298, %cst_109 {dimension_numbers = #tpu.dot_dimension_numbers<[1], [0], [0], [1], [0, 0, 1, 1], [], []>} : vector<16x16xbf16>, vector<16x64xbf16>, vector<16x64xf32> -> vector<16x64xf32>
    %300 = arith.addf %272, %299 : vector<16x64xf32>
    %301 = vector.extract_strided_slice %269 {offsets = [0, 0, 16], sizes = [2, 8, 16], strides = [1, 1, 1]} : vector<2x8x192xf32> to vector<2x8x16xf32>
    %302 = arith.truncf %301 : vector<2x8x16xf32> to vector<2x8x16xbf16>
    %303 = vector.extract_strided_slice %269 {offsets = [0, 0, 80], sizes = [2, 8, 16], strides = [1, 1, 1]} : vector<2x8x192xf32> to vector<2x8x16xf32>
    %304 = arith.truncf %303 : vector<2x8x16xf32> to vector<2x8x16xbf16>
    %305 = vector.extract_strided_slice %269 {offsets = [0, 0, 144], sizes = [2, 8, 16], strides = [1, 1, 1]} : vector<2x8x192xf32> to vector<2x8x16xf32>
    %306 = arith.truncf %305 : vector<2x8x16xf32> to vector<2x8x16xbf16>
    "tpu.trace_start"() <{level = 10 : i32, message = "bqd,bkd->bqk"}> : () -> ()
    %cst_110 = arith.constant dense<0.000000e+00> : vector<2x8x8xf32>
    %307 = tpu.matmul %302, %304, %cst_110 {dimension_numbers = #tpu.dot_dimension_numbers<[2], [2], [1], [1], [0, 0, 0, 1, 1, 1], [0], [0]>} : vector<2x8x16xbf16>, vector<2x8x16xbf16>, vector<2x8x8xf32> -> vector<2x8x8xf32>
    "tpu.trace_stop"() : () -> ()
    %cst_111 = arith.constant 2.500000e-01 : f32
    %308 = vector.broadcast %cst_111 : f32 to vector<2x8x8xf32>
    %309 = arith.mulf %307, %308 : vector<2x8x8xf32>
    %310 = vector.broadcast %40 : vector<2x1x8xf32> to vector<2x8x8xf32>
    %311 = arith.addf %309, %310 : vector<2x8x8xf32>
    %cst_112 = arith.constant dense<0xFF800000> : vector<2x8xf32>
    %312 = vector.multi_reduction <maximumf>, %311, %cst_112 [2] : vector<2x8x8xf32> to vector<2x8xf32>
    %313 = vector.shape_cast %312 : vector<2x8xf32> to vector<2x8x1xf32>
    %314 = vector.broadcast %313 : vector<2x8x1xf32> to vector<2x8x8xf32>
    %315 = arith.subf %311, %314 : vector<2x8x8xf32>
    %316 = math.exp %315 : vector<2x8x8xf32>
    %cst_113 = arith.constant dense<0.000000e+00> : vector<2x8xf32>
    %317 = vector.multi_reduction <add>, %316, %cst_113 [2] : vector<2x8x8xf32> to vector<2x8xf32>
    %318 = vector.shape_cast %317 : vector<2x8xf32> to vector<2x8x1xf32>
    %319 = tpu.reciprocal %318 {approx = true} : vector<2x8x1xf32> -> vector<2x8x1xf32>
    %320 = vector.broadcast %319 : vector<2x8x1xf32> to vector<2x8x8xf32>
    %321 = arith.mulf %316, %320 : vector<2x8x8xf32>
    %322 = arith.truncf %321 : vector<2x8x8xf32> to vector<2x8x8xbf16>
    "tpu.trace_start"() <{level = 10 : i32, message = "bqk,bkd->bqd"}> : () -> ()
    %cst_114 = arith.constant dense<0.000000e+00> : vector<2x8x16xf32>
    %323 = tpu.matmul %322, %306, %cst_114 {dimension_numbers = #tpu.dot_dimension_numbers<[2], [1], [1], [2], [0, 0, 0, 1, 1, 2], [0], [0]>} : vector<2x8x8xbf16>, vector<2x8x16xbf16>, vector<2x8x16xf32> -> vector<2x8x16xf32>
    "tpu.trace_stop"() : () -> ()
    %324 = vector.shape_cast %323 : vector<2x8x16xf32> to vector<16x16xf32>
    %325 = arith.truncf %324 : vector<16x16xf32> to vector<16x16xbf16>
    %326 = vector.extract_strided_slice %271 {offsets = [16, 0], sizes = [16, 64], strides = [1, 1]} : vector<64x64xbf16> to vector<16x64xbf16>
    %cst_115 = arith.constant dense<0.000000e+00> : vector<16x64xf32>
    %327 = tpu.matmul %325, %326, %cst_115 {dimension_numbers = #tpu.dot_dimension_numbers<[1], [0], [0], [1], [0, 0, 1, 1], [], []>} : vector<16x16xbf16>, vector<16x64xbf16>, vector<16x64xf32> -> vector<16x64xf32>
    %328 = arith.addf %300, %327 : vector<16x64xf32>
    %329 = vector.extract_strided_slice %269 {offsets = [0, 0, 32], sizes = [2, 8, 16], strides = [1, 1, 1]} : vector<2x8x192xf32> to vector<2x8x16xf32>
    %330 = arith.truncf %329 : vector<2x8x16xf32> to vector<2x8x16xbf16>
    %331 = vector.extract_strided_slice %269 {offsets = [0, 0, 96], sizes = [2, 8, 16], strides = [1, 1, 1]} : vector<2x8x192xf32> to vector<2x8x16xf32>
    %332 = arith.truncf %331 : vector<2x8x16xf32> to vector<2x8x16xbf16>
    %333 = vector.extract_strided_slice %269 {offsets = [0, 0, 160], sizes = [2, 8, 16], strides = [1, 1, 1]} : vector<2x8x192xf32> to vector<2x8x16xf32>
    %334 = arith.truncf %333 : vector<2x8x16xf32> to vector<2x8x16xbf16>
    "tpu.trace_start"() <{level = 10 : i32, message = "bqd,bkd->bqk"}> : () -> ()
    %cst_116 = arith.constant dense<0.000000e+00> : vector<2x8x8xf32>
    %335 = tpu.matmul %330, %332, %cst_116 {dimension_numbers = #tpu.dot_dimension_numbers<[2], [2], [1], [1], [0, 0, 0, 1, 1, 1], [0], [0]>} : vector<2x8x16xbf16>, vector<2x8x16xbf16>, vector<2x8x8xf32> -> vector<2x8x8xf32>
    "tpu.trace_stop"() : () -> ()
    %cst_117 = arith.constant 2.500000e-01 : f32
    %336 = vector.broadcast %cst_117 : f32 to vector<2x8x8xf32>
    %337 = arith.mulf %335, %336 : vector<2x8x8xf32>
    %338 = vector.broadcast %40 : vector<2x1x8xf32> to vector<2x8x8xf32>
    %339 = arith.addf %337, %338 : vector<2x8x8xf32>
    %cst_118 = arith.constant dense<0xFF800000> : vector<2x8xf32>
    %340 = vector.multi_reduction <maximumf>, %339, %cst_118 [2] : vector<2x8x8xf32> to vector<2x8xf32>
    %341 = vector.shape_cast %340 : vector<2x8xf32> to vector<2x8x1xf32>
    %342 = vector.broadcast %341 : vector<2x8x1xf32> to vector<2x8x8xf32>
    %343 = arith.subf %339, %342 : vector<2x8x8xf32>
    %344 = math.exp %343 : vector<2x8x8xf32>
    %cst_119 = arith.constant dense<0.000000e+00> : vector<2x8xf32>
    %345 = vector.multi_reduction <add>, %344, %cst_119 [2] : vector<2x8x8xf32> to vector<2x8xf32>
    %346 = vector.shape_cast %345 : vector<2x8xf32> to vector<2x8x1xf32>
    %347 = tpu.reciprocal %346 {approx = true} : vector<2x8x1xf32> -> vector<2x8x1xf32>
    %348 = vector.broadcast %347 : vector<2x8x1xf32> to vector<2x8x8xf32>
    %349 = arith.mulf %344, %348 : vector<2x8x8xf32>
    %350 = arith.truncf %349 : vector<2x8x8xf32> to vector<2x8x8xbf16>
    "tpu.trace_start"() <{level = 10 : i32, message = "bqk,bkd->bqd"}> : () -> ()
    %cst_120 = arith.constant dense<0.000000e+00> : vector<2x8x16xf32>
    %351 = tpu.matmul %350, %334, %cst_120 {dimension_numbers = #tpu.dot_dimension_numbers<[2], [1], [1], [2], [0, 0, 0, 1, 1, 2], [0], [0]>} : vector<2x8x8xbf16>, vector<2x8x16xbf16>, vector<2x8x16xf32> -> vector<2x8x16xf32>
    "tpu.trace_stop"() : () -> ()
    %352 = vector.shape_cast %351 : vector<2x8x16xf32> to vector<16x16xf32>
    %353 = arith.truncf %352 : vector<16x16xf32> to vector<16x16xbf16>
    %354 = vector.extract_strided_slice %271 {offsets = [32, 0], sizes = [16, 64], strides = [1, 1]} : vector<64x64xbf16> to vector<16x64xbf16>
    %cst_121 = arith.constant dense<0.000000e+00> : vector<16x64xf32>
    %355 = tpu.matmul %353, %354, %cst_121 {dimension_numbers = #tpu.dot_dimension_numbers<[1], [0], [0], [1], [0, 0, 1, 1], [], []>} : vector<16x16xbf16>, vector<16x64xbf16>, vector<16x64xf32> -> vector<16x64xf32>
    %356 = arith.addf %328, %355 : vector<16x64xf32>
    %357 = vector.extract_strided_slice %269 {offsets = [0, 0, 48], sizes = [2, 8, 16], strides = [1, 1, 1]} : vector<2x8x192xf32> to vector<2x8x16xf32>
    %358 = arith.truncf %357 : vector<2x8x16xf32> to vector<2x8x16xbf16>
    %359 = vector.extract_strided_slice %269 {offsets = [0, 0, 112], sizes = [2, 8, 16], strides = [1, 1, 1]} : vector<2x8x192xf32> to vector<2x8x16xf32>
    %360 = arith.truncf %359 : vector<2x8x16xf32> to vector<2x8x16xbf16>
    %361 = vector.extract_strided_slice %269 {offsets = [0, 0, 176], sizes = [2, 8, 16], strides = [1, 1, 1]} : vector<2x8x192xf32> to vector<2x8x16xf32>
    %362 = arith.truncf %361 : vector<2x8x16xf32> to vector<2x8x16xbf16>
    "tpu.trace_start"() <{level = 10 : i32, message = "bqd,bkd->bqk"}> : () -> ()
    %cst_122 = arith.constant dense<0.000000e+00> : vector<2x8x8xf32>
    %363 = tpu.matmul %358, %360, %cst_122 {dimension_numbers = #tpu.dot_dimension_numbers<[2], [2], [1], [1], [0, 0, 0, 1, 1, 1], [0], [0]>} : vector<2x8x16xbf16>, vector<2x8x16xbf16>, vector<2x8x8xf32> -> vector<2x8x8xf32>
    "tpu.trace_stop"() : () -> ()
    %cst_123 = arith.constant 2.500000e-01 : f32
    %364 = vector.broadcast %cst_123 : f32 to vector<2x8x8xf32>
    %365 = arith.mulf %363, %364 : vector<2x8x8xf32>
    %366 = vector.broadcast %40 : vector<2x1x8xf32> to vector<2x8x8xf32>
    %367 = arith.addf %365, %366 : vector<2x8x8xf32>
    %cst_124 = arith.constant dense<0xFF800000> : vector<2x8xf32>
    %368 = vector.multi_reduction <maximumf>, %367, %cst_124 [2] : vector<2x8x8xf32> to vector<2x8xf32>
    %369 = vector.shape_cast %368 : vector<2x8xf32> to vector<2x8x1xf32>
    %370 = vector.broadcast %369 : vector<2x8x1xf32> to vector<2x8x8xf32>
    %371 = arith.subf %367, %370 : vector<2x8x8xf32>
    %372 = math.exp %371 : vector<2x8x8xf32>
    %cst_125 = arith.constant dense<0.000000e+00> : vector<2x8xf32>
    %373 = vector.multi_reduction <add>, %372, %cst_125 [2] : vector<2x8x8xf32> to vector<2x8xf32>
    %374 = vector.shape_cast %373 : vector<2x8xf32> to vector<2x8x1xf32>
    %375 = tpu.reciprocal %374 {approx = true} : vector<2x8x1xf32> -> vector<2x8x1xf32>
    %376 = vector.broadcast %375 : vector<2x8x1xf32> to vector<2x8x8xf32>
    %377 = arith.mulf %372, %376 : vector<2x8x8xf32>
    %378 = arith.truncf %377 : vector<2x8x8xf32> to vector<2x8x8xbf16>
    "tpu.trace_start"() <{level = 10 : i32, message = "bqk,bkd->bqd"}> : () -> ()
    %cst_126 = arith.constant dense<0.000000e+00> : vector<2x8x16xf32>
    %379 = tpu.matmul %378, %362, %cst_126 {dimension_numbers = #tpu.dot_dimension_numbers<[2], [1], [1], [2], [0, 0, 0, 1, 1, 2], [0], [0]>} : vector<2x8x8xbf16>, vector<2x8x16xbf16>, vector<2x8x16xf32> -> vector<2x8x16xf32>
    "tpu.trace_stop"() : () -> ()
    %380 = vector.shape_cast %379 : vector<2x8x16xf32> to vector<16x16xf32>
    %381 = arith.truncf %380 : vector<16x16xf32> to vector<16x16xbf16>
    %382 = vector.extract_strided_slice %271 {offsets = [48, 0], sizes = [16, 64], strides = [1, 1]} : vector<64x64xbf16> to vector<16x64xbf16>
    %cst_127 = arith.constant dense<0.000000e+00> : vector<16x64xf32>
    %383 = tpu.matmul %381, %382, %cst_127 {dimension_numbers = #tpu.dot_dimension_numbers<[1], [0], [0], [1], [0, 0, 1, 1], [], []>} : vector<16x16xbf16>, vector<16x64xbf16>, vector<16x64xf32> -> vector<16x64xf32>
    %384 = arith.addf %356, %383 : vector<16x64xf32>
    %c1_128 = arith.constant 1 : index
    %c0_129 = arith.constant 0 : index
    %c0_130 = arith.constant 0 : index
    %385 = vector.load %arg8[%c1_128, %c0_129, %c0_130] : memref<2x1x64xf32, #tpu.memory_space<vmem>>, vector<1x1x64xf32>
    %386 = vector.shape_cast %385 : vector<1x1x64xf32> to vector<1x64xf32>
    %387 = vector.broadcast %386 : vector<1x64xf32> to vector<16x64xf32>
    %388 = arith.addf %384, %387 : vector<16x64xf32>
    %389 = vector.shape_cast %388 : vector<16x64xf32> to vector<2x8x64xf32>
    %390 = arith.addf %259, %389 : vector<2x8x64xf32>
    %c1_131 = arith.constant 1 : index
    %c0_132 = arith.constant 0 : index
    %c0_133 = arith.constant 0 : index
    %391 = vector.load %arg9[%c1_131, %c0_132, %c0_133] : memref<2x1x64xf32, #tpu.memory_space<vmem>>, vector<1x1x64xf32>
    %392 = vector.shape_cast %391 : vector<1x1x64xf32> to vector<1x64xf32>
    %c1_134 = arith.constant 1 : index
    %c0_135 = arith.constant 0 : index
    %c0_136 = arith.constant 0 : index
    %393 = vector.load %arg10[%c1_134, %c0_135, %c0_136] : memref<2x1x64xf32, #tpu.memory_space<vmem>>, vector<1x1x64xf32>
    %394 = vector.shape_cast %393 : vector<1x1x64xf32> to vector<1x64xf32>
    %cst_137 = arith.constant dense<0.000000e+00> : vector<2x8xf32>
    %395 = vector.multi_reduction <add>, %390, %cst_137 [2] : vector<2x8x64xf32> to vector<2x8xf32>
    %396 = vector.shape_cast %395 : vector<2x8xf32> to vector<2x8x1xf32>
    %cst_138 = arith.constant 6.400000e+01 : f32
    %397 = vector.broadcast %cst_138 : f32 to vector<2x8x1xf32>
    %398 = arith.divf %396, %397 : vector<2x8x1xf32>
    %399 = vector.broadcast %398 : vector<2x8x1xf32> to vector<2x8x64xf32>
    %400 = arith.subf %390, %399 : vector<2x8x64xf32>
    %401 = arith.mulf %400, %400 : vector<2x8x64xf32>
    %cst_139 = arith.constant dense<0.000000e+00> : vector<2x8xf32>
    %402 = vector.multi_reduction <add>, %401, %cst_139 [2] : vector<2x8x64xf32> to vector<2x8xf32>
    %403 = vector.shape_cast %402 : vector<2x8xf32> to vector<2x8x1xf32>
    %cst_140 = arith.constant 6.400000e+01 : f32
    %404 = vector.broadcast %cst_140 : f32 to vector<2x8x1xf32>
    %405 = arith.divf %403, %404 : vector<2x8x1xf32>
    %406 = vector.broadcast %398 : vector<2x8x1xf32> to vector<2x8x64xf32>
    %407 = arith.subf %390, %406 : vector<2x8x64xf32>
    %cst_141 = arith.constant 9.99999996E-13 : f32
    %408 = vector.broadcast %cst_141 : f32 to vector<2x8x1xf32>
    %409 = arith.addf %405, %408 : vector<2x8x1xf32>
    %410 = math.rsqrt %409 : vector<2x8x1xf32>
    %411 = vector.broadcast %410 : vector<2x8x1xf32> to vector<2x8x64xf32>
    %412 = arith.mulf %407, %411 : vector<2x8x64xf32>
    %413 = vector.shape_cast %392 : vector<1x64xf32> to vector<1x1x64xf32>
    %414 = vector.broadcast %413 : vector<1x1x64xf32> to vector<2x8x64xf32>
    %415 = arith.mulf %412, %414 : vector<2x8x64xf32>
    %416 = vector.shape_cast %394 : vector<1x64xf32> to vector<1x1x64xf32>
    %417 = vector.broadcast %416 : vector<1x1x64xf32> to vector<2x8x64xf32>
    %418 = arith.addf %415, %417 : vector<2x8x64xf32>
    %419 = vector.shape_cast %418 : vector<2x8x64xf32> to vector<16x64xf32>
    %420 = arith.truncf %419 : vector<16x64xf32> to vector<16x64xbf16>
    %c1_142 = arith.constant 1 : index
    %c0_143 = arith.constant 0 : index
    %c0_144 = arith.constant 0 : index
    %421 = vector.load %arg11[%c1_142, %c0_143, %c0_144] : memref<2x64x128xbf16, #tpu.memory_space<vmem>>, vector<1x64x128xbf16>
    %422 = vector.shape_cast %421 : vector<1x64x128xbf16> to vector<64x128xbf16>
    %cst_145 = arith.constant dense<0.000000e+00> : vector<16x128xf32>
    %423 = tpu.matmul %420, %422, %cst_145 {dimension_numbers = #tpu.dot_dimension_numbers<[1], [0], [0], [1], [0, 0, 1, 1], [], []>} : vector<16x64xbf16>, vector<64x128xbf16>, vector<16x128xf32> -> vector<16x128xf32>
    %c1_146 = arith.constant 1 : index
    %c0_147 = arith.constant 0 : index
    %c0_148 = arith.constant 0 : index
    %424 = vector.load %arg12[%c1_146, %c0_147, %c0_148] : memref<2x1x128xf32, #tpu.memory_space<vmem>>, vector<1x1x128xf32>
    %425 = vector.shape_cast %424 : vector<1x1x128xf32> to vector<1x128xf32>
    %426 = vector.broadcast %425 : vector<1x128xf32> to vector<16x128xf32>
    %427 = arith.addf %423, %426 : vector<16x128xf32>
    %428 = arith.mulf %427, %427 : vector<16x128xf32>
    %429 = arith.mulf %427, %428 : vector<16x128xf32>
    %cst_149 = arith.constant 4.471500e-02 : f32
    %430 = vector.broadcast %cst_149 : f32 to vector<16x128xf32>
    %431 = arith.mulf %430, %429 : vector<16x128xf32>
    %432 = arith.addf %427, %431 : vector<16x128xf32>
    %cst_150 = arith.constant 0.797884583 : f32
    %433 = vector.broadcast %cst_150 : f32 to vector<16x128xf32>
    %434 = arith.mulf %433, %432 : vector<16x128xf32>
    %435 = math.tanh %434 : vector<16x128xf32>
    %cst_151 = arith.constant 1.000000e+00 : f32
    %436 = vector.broadcast %cst_151 : f32 to vector<16x128xf32>
    %437 = arith.addf %436, %435 : vector<16x128xf32>
    %cst_152 = arith.constant 5.000000e-01 : f32
    %438 = vector.broadcast %cst_152 : f32 to vector<16x128xf32>
    %439 = arith.mulf %438, %437 : vector<16x128xf32>
    %440 = arith.mulf %427, %439 : vector<16x128xf32>
    %441 = arith.truncf %440 : vector<16x128xf32> to vector<16x128xbf16>
    %c1_153 = arith.constant 1 : index
    %c0_154 = arith.constant 0 : index
    %c0_155 = arith.constant 0 : index
    %442 = vector.load %arg13[%c1_153, %c0_154, %c0_155] : memref<2x128x64xbf16, #tpu.memory_space<vmem>>, vector<1x128x64xbf16>
    %443 = vector.shape_cast %442 : vector<1x128x64xbf16> to vector<128x64xbf16>
    %cst_156 = arith.constant dense<0.000000e+00> : vector<16x64xf32>
    %444 = tpu.matmul %441, %443, %cst_156 {dimension_numbers = #tpu.dot_dimension_numbers<[1], [0], [0], [1], [0, 0, 1, 1], [], []>} : vector<16x128xbf16>, vector<128x64xbf16>, vector<16x64xf32> -> vector<16x64xf32>
    %c1_157 = arith.constant 1 : index
    %c0_158 = arith.constant 0 : index
    %c0_159 = arith.constant 0 : index
    %445 = vector.load %arg14[%c1_157, %c0_158, %c0_159] : memref<2x1x64xf32, #tpu.memory_space<vmem>>, vector<1x1x64xf32>
    %446 = vector.shape_cast %445 : vector<1x1x64xf32> to vector<1x64xf32>
    %447 = vector.broadcast %446 : vector<1x64xf32> to vector<16x64xf32>
    %448 = arith.addf %444, %447 : vector<16x64xf32>
    %449 = vector.shape_cast %448 : vector<16x64xf32> to vector<2x8x64xf32>
    %450 = arith.addf %418, %449 : vector<2x8x64xf32>
    %c1_160 = arith.constant 1 : index
    %c0_161 = arith.constant 0 : index
    %c0_162 = arith.constant 0 : index
    %451 = vector.load %arg15[%c1_160, %c0_161, %c0_162] : memref<2x1x64xf32, #tpu.memory_space<vmem>>, vector<1x1x64xf32>
    %452 = vector.shape_cast %451 : vector<1x1x64xf32> to vector<1x64xf32>
    %c1_163 = arith.constant 1 : index
    %c0_164 = arith.constant 0 : index
    %c0_165 = arith.constant 0 : index
    %453 = vector.load %arg16[%c1_163, %c0_164, %c0_165] : memref<2x1x64xf32, #tpu.memory_space<vmem>>, vector<1x1x64xf32>
    %454 = vector.shape_cast %453 : vector<1x1x64xf32> to vector<1x64xf32>
    %cst_166 = arith.constant dense<0.000000e+00> : vector<2x8xf32>
    %455 = vector.multi_reduction <add>, %450, %cst_166 [2] : vector<2x8x64xf32> to vector<2x8xf32>
    %456 = vector.shape_cast %455 : vector<2x8xf32> to vector<2x8x1xf32>
    %cst_167 = arith.constant 6.400000e+01 : f32
    %457 = vector.broadcast %cst_167 : f32 to vector<2x8x1xf32>
    %458 = arith.divf %456, %457 : vector<2x8x1xf32>
    %459 = vector.broadcast %458 : vector<2x8x1xf32> to vector<2x8x64xf32>
    %460 = arith.subf %450, %459 : vector<2x8x64xf32>
    %461 = arith.mulf %460, %460 : vector<2x8x64xf32>
    %cst_168 = arith.constant dense<0.000000e+00> : vector<2x8xf32>
    %462 = vector.multi_reduction <add>, %461, %cst_168 [2] : vector<2x8x64xf32> to vector<2x8xf32>
    %463 = vector.shape_cast %462 : vector<2x8xf32> to vector<2x8x1xf32>
    %cst_169 = arith.constant 6.400000e+01 : f32
    %464 = vector.broadcast %cst_169 : f32 to vector<2x8x1xf32>
    %465 = arith.divf %463, %464 : vector<2x8x1xf32>
    %466 = vector.broadcast %458 : vector<2x8x1xf32> to vector<2x8x64xf32>
    %467 = arith.subf %450, %466 : vector<2x8x64xf32>
    %cst_170 = arith.constant 9.99999996E-13 : f32
    %468 = vector.broadcast %cst_170 : f32 to vector<2x8x1xf32>
    %469 = arith.addf %465, %468 : vector<2x8x1xf32>
    %470 = math.rsqrt %469 : vector<2x8x1xf32>
    %471 = vector.broadcast %470 : vector<2x8x1xf32> to vector<2x8x64xf32>
    %472 = arith.mulf %467, %471 : vector<2x8x64xf32>
    %473 = vector.shape_cast %452 : vector<1x64xf32> to vector<1x1x64xf32>
    %474 = vector.broadcast %473 : vector<1x1x64xf32> to vector<2x8x64xf32>
    %475 = arith.mulf %472, %474 : vector<2x8x64xf32>
    %476 = vector.shape_cast %454 : vector<1x64xf32> to vector<1x1x64xf32>
    %477 = vector.broadcast %476 : vector<1x1x64xf32> to vector<2x8x64xf32>
    %478 = arith.addf %475, %477 : vector<2x8x64xf32>
    %479 = vector.extract_strided_slice %478 {offsets = [0, 0, 0], sizes = [2, 1, 64], strides = [1, 1, 1]} : vector<2x8x64xf32> to vector<2x1x64xf32>
    %480 = vector.shape_cast %479 : vector<2x1x64xf32> to vector<2x64xf32>
    %481 = arith.truncf %480 : vector<2x64xf32> to vector<2x64xbf16>
    %c0_171 = arith.constant 0 : index
    %c0_172 = arith.constant 0 : index
    %482 = vector.load %arg17[%c0_171, %c0_172] : memref<64x128xbf16, #tpu.memory_space<vmem>>, vector<64x128xbf16>
    %cst_173 = arith.constant dense<0.000000e+00> : vector<2x128xf32>
    %483 = tpu.matmul %481, %482, %cst_173 {dimension_numbers = #tpu.dot_dimension_numbers<[1], [0], [0], [1], [0, 0, 1, 1], [], []>} : vector<2x64xbf16>, vector<64x128xbf16>, vector<2x128xf32> -> vector<2x128xf32>
    %c0_174 = arith.constant 0 : index
    %c0_175 = arith.constant 0 : index
    %484 = vector.load %arg18[%c0_174, %c0_175] : memref<1x128xf32, #tpu.memory_space<vmem>>, vector<1x128xf32>
    %485 = vector.broadcast %484 : vector<1x128xf32> to vector<2x128xf32>
    %486 = arith.addf %483, %485 : vector<2x128xf32>
    %c0_176 = arith.constant 0 : index
    %c0_177 = arith.constant 0 : index
    %487 = vector.load %arg19[%c0_176, %c0_177] : memref<2x128xf32, #tpu.memory_space<vmem>>, vector<2x128xf32>
    tpu.vector_store %arg19[%c0_176, %c0_177], %486 {strides = array<i32>} : memref<2x128xf32, #tpu.memory_space<vmem>>, vector<2x128xf32>,
    return
  }
  func.func @transform_0(%arg0: i32, %arg1: memref<2xi32, #tpu.memory_space<smem>>) -> (i32, i32, i32) {
    %c0_i32 = arith.constant 0 : i32
    %c0_i32_0 = arith.constant 0 : i32
    %c0_i32_1 = arith.constant 0 : i32
    %c0_i32_2 = arith.constant 0 : i32
    return %c0_i32, %c0_i32_0, %c0_i32_1 : i32, i32, i32
  }
  func.func @transform_1(%arg0: i32, %arg1: memref<2xi32, #tpu.memory_space<smem>>) -> (i32, i32) {
    %c0_i32 = arith.constant 0 : i32
    %c0_i32_0 = arith.constant 0 : i32
    %c0_i32_1 = arith.constant 0 : i32
    return %c0_i32, %c0_i32_0 : i32, i32
  }
  func.func @transform_2(%arg0: i32, %arg1: memref<2xi32, #tpu.memory_space<smem>>) -> (i32, i32) {
    %c0_i32 = arith.constant 0 : i32
    %c0_i32_0 = arith.constant 0 : i32
    %c0_i32_1 = arith.constant 0 : i32
    return %c0_i32, %c0_i32_0 : i32, i32
  }
  func.func @transform_3(%arg0: i32, %arg1: memref<2xi32, #tpu.memory_space<smem>>) -> (i32, i32, i32) {
    %c0_i32 = arith.constant 0 : i32
    %c0_i32_0 = arith.constant 0 : i32
    %c0_i32_1 = arith.constant 0 : i32
    %c0_i32_2 = arith.constant 0 : i32
    return %c0_i32, %c0_i32_0, %c0_i32_1 : i32, i32, i32
  }
  func.func @transform_4(%arg0: i32, %arg1: memref<2xi32, #tpu.memory_space<smem>>) -> (i32, i32, i32) {
    %c0_i32 = arith.constant 0 : i32
    %c0_i32_0 = arith.constant 0 : i32
    %c0_i32_1 = arith.constant 0 : i32
    %c0_i32_2 = arith.constant 0 : i32
    return %c0_i32, %c0_i32_0, %c0_i32_1 : i32, i32, i32
  }
  func.func @transform_5(%arg0: i32, %arg1: memref<2xi32, #tpu.memory_space<smem>>) -> (i32, i32, i32) {
    %c0_i32 = arith.constant 0 : i32
    %c0_i32_0 = arith.constant 0 : i32
    %c0_i32_1 = arith.constant 0 : i32
    %c0_i32_2 = arith.constant 0 : i32
    return %c0_i32, %c0_i32_0, %c0_i32_1 : i32, i32, i32
  }
  func.func @transform_6(%arg0: i32, %arg1: memref<2xi32, #tpu.memory_space<smem>>) -> (i32, i32, i32) {
    %c0_i32 = arith.constant 0 : i32
    %c0_i32_0 = arith.constant 0 : i32
    %c0_i32_1 = arith.constant 0 : i32
    %c0_i32_2 = arith.constant 0 : i32
    return %c0_i32, %c0_i32_0, %c0_i32_1 : i32, i32, i32
  }
  func.func @transform_7(%arg0: i32, %arg1: memref<2xi32, #tpu.memory_space<smem>>) -> (i32, i32, i32) {
    %c0_i32 = arith.constant 0 : i32
    %c0_i32_0 = arith.constant 0 : i32
    %c0_i32_1 = arith.constant 0 : i32
    %c0_i32_2 = arith.constant 0 : i32
    return %c0_i32, %c0_i32_0, %c0_i32_1 : i32, i32, i32
  }
  func.func @transform_8(%arg0: i32, %arg1: memref<2xi32, #tpu.memory_space<smem>>) -> (i32, i32, i32) {
    %c0_i32 = arith.constant 0 : i32
    %c0_i32_0 = arith.constant 0 : i32
    %c0_i32_1 = arith.constant 0 : i32
    %c0_i32_2 = arith.constant 0 : i32
    return %c0_i32, %c0_i32_0, %c0_i32_1 : i32, i32, i32
  }
  func.func @transform_9(%arg0: i32, %arg1: memref<2xi32, #tpu.memory_space<smem>>) -> (i32, i32, i32) {
    %c0_i32 = arith.constant 0 : i32
    %c0_i32_0 = arith.constant 0 : i32
    %c0_i32_1 = arith.constant 0 : i32
    %c0_i32_2 = arith.constant 0 : i32
    return %c0_i32, %c0_i32_0, %c0_i32_1 : i32, i32, i32
  }
  func.func @transform_10(%arg0: i32, %arg1: memref<2xi32, #tpu.memory_space<smem>>) -> (i32, i32, i32) {
    %c0_i32 = arith.constant 0 : i32
    %c0_i32_0 = arith.constant 0 : i32
    %c0_i32_1 = arith.constant 0 : i32
    %c0_i32_2 = arith.constant 0 : i32
    return %c0_i32, %c0_i32_0, %c0_i32_1 : i32, i32, i32
  }
  func.func @transform_11(%arg0: i32, %arg1: memref<2xi32, #tpu.memory_space<smem>>) -> (i32, i32, i32) {
    %c0_i32 = arith.constant 0 : i32
    %c0_i32_0 = arith.constant 0 : i32
    %c0_i32_1 = arith.constant 0 : i32
    %c0_i32_2 = arith.constant 0 : i32
    return %c0_i32, %c0_i32_0, %c0_i32_1 : i32, i32, i32
  }
  func.func @transform_12(%arg0: i32, %arg1: memref<2xi32, #tpu.memory_space<smem>>) -> (i32, i32, i32) {
    %c0_i32 = arith.constant 0 : i32
    %c0_i32_0 = arith.constant 0 : i32
    %c0_i32_1 = arith.constant 0 : i32
    %c0_i32_2 = arith.constant 0 : i32
    return %c0_i32, %c0_i32_0, %c0_i32_1 : i32, i32, i32
  }
  func.func @transform_13(%arg0: i32, %arg1: memref<2xi32, #tpu.memory_space<smem>>) -> (i32, i32, i32) {
    %c0_i32 = arith.constant 0 : i32
    %c0_i32_0 = arith.constant 0 : i32
    %c0_i32_1 = arith.constant 0 : i32
    %c0_i32_2 = arith.constant 0 : i32
    return %c0_i32, %c0_i32_0, %c0_i32_1 : i32, i32, i32
  }
  func.func @transform_14(%arg0: i32, %arg1: memref<2xi32, #tpu.memory_space<smem>>) -> (i32, i32, i32) {
    %c0_i32 = arith.constant 0 : i32
    %c0_i32_0 = arith.constant 0 : i32
    %c0_i32_1 = arith.constant 0 : i32
    %c0_i32_2 = arith.constant 0 : i32
    return %c0_i32, %c0_i32_0, %c0_i32_1 : i32, i32, i32
  }
  func.func @transform_15(%arg0: i32, %arg1: memref<2xi32, #tpu.memory_space<smem>>) -> (i32, i32) {
    %c0_i32 = arith.constant 0 : i32
    %c0_i32_0 = arith.constant 0 : i32
    %c0_i32_1 = arith.constant 0 : i32
    return %c0_i32, %c0_i32_0 : i32, i32
  }
  func.func @transform_16(%arg0: i32, %arg1: memref<2xi32, #tpu.memory_space<smem>>) -> (i32, i32) {
    %c0_i32 = arith.constant 0 : i32
    %c0_i32_0 = arith.constant 0 : i32
    %c0_i32_1 = arith.constant 0 : i32
    return %c0_i32, %c0_i32_0 : i32, i32
  }
  func.func @transform_17(%arg0: i32, %arg1: memref<2xi32, #tpu.memory_space<smem>>) -> (i32, i32) {
    %c0_i32 = arith.constant 0 : i32
    %c0_i32_0 = arith.constant 0 : i32
    %c0_i32_1 = arith.constant 0 : i32
    return %c0_i32, %c0_i32_0 : i32, i32
  }
}

</mosaic_0001>

<bundles_post_ra>
// kernel: linguistic_bert_forward.1
= control target key start
LH: loop header
LB: loop body
LE: loop exit
PB: predicated region body
PF: predicated region fallthrough
CT: control target
= control target key end

     0   :  { %s4949_s0 = inlined_call_operand.vmem [shape: s32[2], index: 0, kind: input, shape index: {}]   ;;  %s4950_s1 = inlined_call_operand.vmem [shape: f32[2,8,64], index: 1, kind: input, shape index: {}]   ;;  %s4951_s2 = inlined_call_operand.vmem [shape: f32[1,64], index: 2, kind: input, shape index: {}]   ;;  %s4952_s3 = inlined_call_operand.vmem [shape: f32[1,64], index: 3, kind: input, shape index: {}]   ;;  %s4953_s4 = inlined_call_operand.vmem [shape: bf16[2,64,192], index: 4, kind: input, shape index: {}]   ;;  %s4954_s5 = inlined_call_operand.vmem [shape: f32[2,1,192], index: 5, kind: input, shape index: {}]   ;;  %s4955_s6 = inlined_call_operand.vmem [shape: bf16[2,64,64], index: 6, kind: input, shape index: {}]   ;;  %s4956_s7 = inlined_call_operand.vmem [shape: f32[2,1,64], index: 7, kind: input, shape index: {}]   ;;  %s4957_s8 = inlined_call_operand.vmem [shape: f32[2,1,64], index: 8, kind: input, shape index: {}]   ;;  %s4958_s9 = inlined_call_operand.vmem [shape: f32[2,1,64], index: 9, kind: input, shape index: {}]   ;;  %s4959_s10 = inlined_call_operand.vmem [shape: bf16[2,64,128], index: 10, kind: input, shape index: {}]   ;;  %s4960_s11 = inlined_call_operand.vmem [shape: f32[2,1,128], index: 11, kind: input, shape index: {}]   ;;  %s4961_s12 = inlined_call_operand.vmem [shape: bf16[2,128,64], index: 12, kind: input, shape index: {}]   ;;  %s4962_s13 = inlined_call_operand.vmem [shape: f32[2,1,64], index: 13, kind: input, shape index: {}]   ;;  %s4963_s14 = inlined_call_operand.vmem [shape: f32[2,1,64], index: 14, kind: input, shape index: {}]   ;;  %s4964_s15 = inlined_call_operand.vmem [shape: f32[2,1,64], index: 15, kind: input, shape index: {}]   ;;  %s4965_s16 = inlined_call_operand.vmem [shape: bf16[64,128], index: 16, kind: input, shape index: {}]   ;;  %s4966_s17 = inlined_call_operand.vmem [shape: f32[1,128], index: 17, kind: input, shape index: {}]   ;;  %s4967_s18 = inlined_call_operand.hbm [shape: f32[2,128], index: 18, kind: output, shape index: {}]  }
   0x1   :  { %4972 = sst [smem:[#allocation8_spill]] %s4949_s0 }
   0x2   :  { %4973 = sst [smem:[#allocation9_spill]] %s4950_s1  ;;  %s4976_s29 = sld [smem:[#allocation8_spill]] }
   0x3   :  { %4974 = sst [smem:[#allocation10_spill]] %s4951_s2 }
   0x4   :  { %4975 = sst [smem:[#allocation11_spill]] %s4960_s11 }
   0x8   :  { %s23_s11 = sshll.u32 %s4976_s29, 4  ;;  %s24_s11 = int_to_ptr.vmem [resolvable:$true] %s23_s11 }
   0x9   :  { %s4080_s30 = scalar_lea.vmem %s24_s11, 16  ;;  %p4085_p1 = scmp.lt.s32.totalorder %s24_s11, %s24_s11 }
   0xa   :  { %p4081_p0 = scmp.ne.s32.totalorder %s24_s11, %s4080_s30  ;;  %p4086_p2 = scmp.lt.s32.totalorder %s4080_s30, %s4080_s30 }
   0xc   :  { %p4087_p3 = por %p4086_p2, %p4085_p1 }
   0xe   :  { %p4088_p4 = pnand %p4087_p3, %p4081_p0 }
  0x10   :  { %4091 = shalt.err (!%p4088_p4)  }
  0x11   :  { %s4118_s0 = smov [#allocation3]  }
  0x12   :  { %26 = dma.vmem_to_smem %s24_s11, 16, %s4118_s0, [#allocation2] }
  0x13   :  { %4114 = dma.done.wait [#allocation2], 16 }
  0x14   :  { %4115 = vsyncadd [#allocation2], 4294967280 }
  0x15   :  { %28 = sfence }
  0x16   :  { %s4977_s20 = sld [smem:[#allocation9_spill]]  ;;  %vm69_vm0 = vcmask 523264  }
  0x1c   :  { %v65_v0 = vld [vmem:[%s4977_s20] sm:$0xff]  ;;  %v66_v1 = vld [vmem:[%s4977_s20 + $0x8] sm:$0xff] }
  0x1d   :  { %v70_v2 = vsel %vm69_vm0, %v65_v0, 0.0  ;;  %v73_v3 = vsel %vm69_vm0, %v66_v1, 0.0 }
  0x1e   :  { %71 = vadd.xlane.f32.xlu0 %v70_v2 }
  0x22   :  { %74 = vadd.xlane.f32.xlu0 %v73_v3 }
  0x23   :  { %29 = vsyncpa [#allocation5], 0  ;;  %v3928_v14 = vld [vmem:[%s4953_s4 + $0x4] ss:$8 sps:$4 sm:$0xff]   ;;  %v3930_v15 = vld [vmem:[%s4953_s4] ss:$8 sps:$4 sm:$0xff]   ;;  %v113_v41 = vlaneseq }
  0x24   :  { %187 = vmatprep.subr.bf16.mxu0 %v3928_v14  ;;  %v3931_v16 = vld [vmem:[%s4953_s4 + $0x14] ss:$8 sps:$4 sm:$0xff]   ;;  %v3933_v17 = vld [vmem:[%s4953_s4 + $0x10] ss:$8 sps:$4 sm:$0xff]   ;;  %v3934_v18 = vld [vmem:[%s4953_s4 + $0x24] ss:$8 sps:$4 sm:$0xff]  }
  0x25   :  { %188 = vmatpush1.bf16.msra.mxu0 %v3930_v15  ;;  %v3936_v19 = vld [vmem:[%s4953_s4 + $0x20] ss:$8 sps:$4 sm:$0xff]   ;;  %v3937_v20 = vld [vmem:[%s4953_s4 + $0x34] ss:$8 sps:$4 sm:$0xff]   ;;  %v3939_v21 = vld [vmem:[%s4953_s4 + $0x30] ss:$8 sps:$4 sm:$0xff]  }
  0x26   :  { %189 = vmatprep.subr.bf16.mxu0 %v3931_v16  ;;  %v4119_v22 = vmov 0   ;;  %s4978_s23 = sld [smem:[#allocation10_spill]]  ;;  %v3324_v35 = vld [vmem:[%s4952_s3] ss:$0 sm:$0xff]  ;;  %v4120_v40 = vmov 0.0   ;;  %v4279_v42 = vshrl.u32 %v113_v41, 7 }
  0x27   :  { %219 = vmatprep.mubr.bf16.mxu0 %v4119_v22  ;;  %3599 = vmatprep.subr.bf16.mxu1 %v4120_v40  ;;  %v132_v44 = vld [vmem:[%s4954_s5] sm:$0x3]  ;;  %vm4121_vm1 = vmmov 0   ;;  %vm381_vm2 = vcmask 1043456   ;;  %s4122_s27 = smov 64   ;;  %vm245_vm3 = vcmask 130048  }
  0x28   :  { %v4282_v43 = vsub.s32 0, %v4279_v42  ;;  %v140_v45 = vsub.s32 1, %v4279_v42  ;;  %3601 = vmatprep.mubr.msk.bf16.mxu1 %vm4121_vm1, %v4120_v40  ;;  %s115_s28 = sld [smem:[#allocation3]]  ;;  %v114_v2 = vand.u32 127, %v113_v41  ;;  %s3325_s29 = sld [smem:[#allocation3 + $0x1]]  ;;  %vm353_vm6 = vcmask 64512  }
  0x29   :  { %190 = vmatpush1.bf16.msra.mxu0 %v3933_v17  ;;  %s4124_s30 = smov 48   ;;  %s4125_s0 = smov 112   ;;  %vm3238_vm7 = vcmask 1041409  }
  0x2a   :  { %191 = vmatprep.subr.bf16.mxu0 %v3934_v18  ;;  %v137_v46 = vrot.slane %v132_v44, %v4282_v43  ;;  %v141_v47 = vrot.slane %v132_v44, %v140_v45  ;;  %s4126_s19 = smov 32   ;;  %s4127_s1 = smov 96  }
  0x2b   :  { %s4128_s2 = smov 16   ;;  %s4979_s20 = sld [smem:[#allocation11_spill]] }
  0x2c   :  { %v3323_v31 = vld [vmem:[%s4978_s23] ss:$0 sm:$0xff]  ;;  %s4970_s23 = smov 80  }
  0x2d   :  { %192 = vmatpush1.bf16.msra.mxu0 %v3936_v19 }
  0x2e   :  { %193 = vmatprep.subr.bf16.mxu0 %v3937_v20  ;;  %v116_v3 = vstv %s115_s28 }
  0x2f   :  { %vm117_vm4 = vcmp.lt.s32.totalorder %v114_v2, %v116_v3 }
  0x31   :  { %194 = vmatpush1.bf16.msra.mxu0 %v3939_v21 }
  0x32   :  { %3611 = vmatprep.subr.bf16.mxu0 %v4120_v40 }
  0xab   :  { %v72_v4 = vpop.xlane.xlu0 %71 }
  0xac   :  { %v77_v5 = vmul.f32 0.015625, %v72_v4  ;;  %v4123_v4 = vmov -1e+09  }
  0xae   :  { %v79_v6 = vsub.f32 %v65_v0, %v77_v5  ;;  %v118_v5 = vsel %vm117_vm4, 0.0, %v4123_v4 }
  0xaf   :  { %v75_v7 = vpop.xlane.xlu0 %74 }
  0xb0   :  { %v78_v8 = vmul.f32 0.015625, %v75_v7  ;;  %v81_v9 = vmul.f32 %v79_v6, %v79_v6  ;;  %v4326_v7 = vrot.slane %v118_v5, %v4282_v43 }
  0xb2   :  { %v80_v10 = vsub.f32 %v66_v1, %v78_v8  ;;  %v83_v11 = vsel %vm69_vm0, %v81_v9, 0.0 }
  0xb3   :  { %84 = vadd.xlane.f32.xlu1 %v83_v11 }
  0xb4   :  { %v82_v12 = vmul.f32 %v80_v10, %v80_v10 }
  0xb6   :  { %v86_v13 = vsel %vm69_vm0, %v82_v12, 0.0 }
  0xb7   :  { %87 = vadd.xlane.f32.xlu1 %v86_v13 }
 0x140   :  { %v85_v23 = vpop.xlane.xlu1 %84 }
 0x141   :  { %v89_v24 = vmul.f32 0.015625, %v85_v23 }
 0x143   :  { %v91_v25 = vadd.f32 1e-12, %v89_v24 }
 0x144   :  { %v88_v26 = vpop.xlane.xlu1 %87 }
 0x145   :  { %3988 = vrsqrt.f32 %v91_v25  ;;  %v90_v27 = vmul.f32 0.015625, %v88_v26 }
 0x147   :  { %v92_v28 = vadd.f32 1e-12, %v90_v27 }
 0x149   :  { %3990 = vrsqrt.f32 %v92_v28 }
 0x14f   :  { %v3989_v29 = vpop.eup %3988 }
 0x150   :  { %v95_v30 = vmul.f32 %v3989_v29, %v79_v6  ;;  %v120_v6 = vstv %s3325_s29 }
 0x151   :  { %vm121_vm5 = vcmp.lt.s32.totalorder %v114_v2, %v120_v6 }
 0x152   :  { %v103_v34 = vmul.f32 %v3323_v31, %v95_v30  ;;  %v122_v14 = vsel %vm121_vm5, 0.0, %v4123_v4 }
 0x153   :  { %v3991_v32 = vpop.eup %3990  ;;  %v4331_v16 = vrot.slane %v122_v14, %v4282_v43 }
 0x154   :  { %v96_v33 = vmul.f32 %v3991_v32, %v80_v10  ;;  %v4270_v37 = vadd.f32 %v3324_v35, %v103_v34 }
 0x156   :  { %v104_v36 = vmul.f32 %v3323_v31, %v96_v33 }
 0x158   :  { %v4272_v38 = vadd.f32 %v3324_v35, %v104_v36 }
 0x15a   :  { %v123_v39 = vpack.c.bf16 %v4272_v38, %v4270_v37 }
 0x15c   :  { %3334 = vmatmul.mubr.msk.bf16.vlgmr.msra.gmra.mrb[0].mxu0 %vm69_vm0, %v123_v39 }
 0x15d   :  { %3613 = vmatprep.mubr.msk.bf16.mxu0 %vm4121_vm1, %v4120_v40 }
 0x22f   :  { %v221_v48 = vpop.f32.mrb[0].mxu0 }
 0x230   :  { %v222_v49 = vadd.f32 %v221_v48, %v137_v46  ;;  %v223_v50 = vpop.f32.mrb[1].mxu0 }
 0x231   :  { %v224_v51 = vadd.f32 %v223_v50, %v141_v47  ;;  %v225_v52 = vpop.f32.mrb[2].mxu0 }
 0x232   :  { %v4295_v53 = vpack.c.bf16 %v222_v49, %v222_v49  ;;  %v226_v54 = vadd.f32 %v225_v52, %v137_v46  ;;  %v227_v55 = vpop.f32.mrb[3].mxu0 }
 0x233   :  { %v4297_v56 = vpack.c.bf16 %v224_v51, %v224_v51  ;;  %v228_v57 = vadd.f32 %v227_v55, %v141_v47 }
 0x234   :  { %v4299_v58 = vpack.c.bf16 %v226_v54, %v226_v54  ;;  %243 = vrot.lane.b32.xlu0 %v4295_v53, %s4122_s27 }
 0x235   :  { %v383_v59 = vsel %vm381_vm2, %v4297_v56, 0  ;;  %v4316_v0 = vpack.c.bf16 %v228_v57, %v228_v57 }
 0x236   :  { %293 = vrot.lane.b32.xlu1 %v4299_v58, %s4122_s27  ;;  %3612 = vmatpush3.bf16.msra.mxu0 %v383_v59 }
 0x237   :  { %3623 = vmatprep.subr.bf16.mxu0 %v4120_v40  ;;  %v429_v1 = vsel %vm381_vm2, %v4316_v0, 0 }
 0x2a6   :  { %v244_v60 = vpop.permute.xlu0 %243 }
 0x2a7   :  { %v250_v61 = vsel %vm245_vm3, %v244_v60, 0 }
 0x2a8   :  { %3600 = vmatpush3.bf16.xpose.msra.mxu1 %v250_v61  ;;  %v294_v62 = vpop.permute.xlu1 %293 }
 0x2a9   :  { %3605 = vmatprep.subr.bf16.mxu1 %v4120_v40  ;;  %v299_v63 = vsel %vm245_vm3, %v294_v62, 0 }
 0x2af   :  { %3602 = vmatmul.mubr.msk.bf16.vlgmr.msra.gmra.mrb[0].mxu1 %vm245_vm3, %v4295_v53 }
 0x2b0   :  { %3606 = vmatpush3.bf16.xpose.msra.mxu1 %v299_v63  ;;  %3607 = vmatprep.mubr.msk.bf16.mxu1 %vm4121_vm1, %v4120_v40 }
 0x2b1   :  { %3617 = vmatprep.subr.bf16.mxu1 %v4120_v40 }
 0x2b7   :  { %3608 = vmatmul.mubr.msk.bf16.vlgmr.msra.gmra.mrb[4].mxu1 %vm245_vm3, %v4299_v58 }
 0x2b8   :  { %3618 = vmatpush3.bf16.msra.mxu1 %v429_v1  ;;  %3619 = vmatprep.mubr.msk.bf16.mxu1 %vm4121_vm1, %v4120_v40 }
 0x2b9   :  { %3629 = vmatprep.subr.bf16.mxu1 %v4120_v40 }
 0x382   :  { %v286_v8 = vpop.f32.mrb[0].mxu1 }
 0x383   :  { %v341_v9 = vmul.f32 0.25, %v286_v8  ;;  %v3603_v10 = vpop.f32.mrb[1].mxu1 }
 0x384   :  { %v289_v11 = vpop.f32.mrb[2].mxu1 }
 0x385   :  { %v3604_v12 = vpop.f32.mrb[3].mxu1  ;;  %v351_v13 = vadd.f32 %v4326_v7, %v341_v9 }
 0x387   :  { %v354_v15 = vsel %vm353_vm6, %v351_v13, -inf }
 0x388   :  { %355 = vmax.xlane.f32.xlu1 %v354_v15 }
 0x38a   :  { %v335_v17 = vpop.f32.mrb[4].mxu1 }
 0x38b   :  { %v342_v18 = vmul.f32 0.25, %v335_v17  ;;  %v3609_v19 = vpop.f32.mrb[5].mxu1 }
 0x38c   :  { %v338_v20 = vpop.f32.mrb[6].mxu1 }
 0x38d   :  { %v3610_v21 = vpop.f32.mrb[7].mxu1  ;;  %v352_v23 = vadd.f32 %v4331_v16, %v342_v18 }
 0x38f   :  { %v357_v24 = vsel %vm353_vm6, %v352_v23, -inf }
 0x390   :  { %358 = vmax.xlane.f32.xlu0 %v357_v24 }
 0x399   :  { %524 = vrot.lane.b32.xlu1 %v4299_v58, %s4124_s30 }
 0x415   :  { %v356_v25 = vpop.xlane.xlu1 %355 }
 0x416   :  { %v360_v26 = vsub.f32 %v351_v13, %v356_v25 }
 0x418   :  { %v362_v27 = vmul.f32 1.442695, %v360_v26 }
 0x419   :  { %v525_v36 = vpop.permute.xlu1 %524 }
 0x41a   :  { %3992 = vpow2.f32 %v362_v27  ;;  %v530_v54 = vsel %vm245_vm3, %v525_v36, 0 }
 0x41d   :  { %v359_v28 = vpop.xlane.xlu0 %358 }
 0x41e   :  { %v361_v29 = vsub.f32 %v352_v23, %v359_v28 }
 0x420   :  { %v364_v30 = vmul.f32 1.442695, %v361_v29 }
 0x422   :  { %3994 = vpow2.f32 %v364_v30 }
 0x424   :  { %v3993_v31 = vpop.eup %3992 }
 0x425   :  { %v366_v32 = vsel %vm353_vm6, %v3993_v31, 0.0 }
 0x426   :  { %367 = vadd.xlane.f32.xlu0 %v366_v32 }
 0x42c   :  { %v3995_v33 = vpop.eup %3994 }
 0x42d   :  { %v369_v34 = vsel %vm353_vm6, %v3995_v33, 0.0 }
 0x42e   :  { %370 = vadd.xlane.f32.xlu1 %v369_v34 }
 0x43c   :  { %474 = vrot.lane.b32.xlu0 %v4295_v53, %s4124_s30 }
 0x43f   :  { %472 = vrot.lane.b32.xlu1 %v4295_v53, %s4125_s0 }
 0x443   :  { %522 = vrot.lane.b32.xlu1 %v4299_v58, %s4125_s0 }
 0x4b3   :  { %v368_v35 = vpop.xlane.xlu0 %367 }
 0x4b4   :  { %3996 = vrcp.f32 %v368_v35 }
 0x4b7   :  { %v475_v46 = vpop.permute.xlu0 %474 }
 0x4b8   :  { %v480_v48 = vsel %vm245_vm3, %v475_v46, 0 }
 0x4bb   :  { %v371_v39 = vpop.xlane.xlu1 %370 }
 0x4bc   :  { %3998 = vrcp.f32 %v371_v39 }
 0x4be   :  { %v3997_v41 = vpop.eup %3996 }
 0x4bf   :  { %v374_v44 = vmul.f32 %v3997_v41, %v3993_v31  ;;  %v473_v52 = vpop.permute.xlu1 %472 }
 0x4c1   :  { %v376_v47 = vpack.c.bf16 %v374_v44, %v374_v44 }
 0x4c3   :  { %3614 = vmatmul.mubr.msk.bf16.vlgmr.msra.gmra.mrb[4].mxu0 %vm353_vm6, %v376_v47  ;;  %v523_v55 = vpop.permute.xlu1 %522 }
 0x4c4   :  { %3624 = vmatpush3.bf16.xpose.msra.mxu0 %v480_v48  ;;  %3625 = vmatprep.mubr.msk.bf16.mxu0 %vm4121_vm1, %v4120_v40  ;;  %v3940_v48 = vld [vmem:[%s4955_s6] sm:$0xff]  }
 0x4c5   :  { %3635 = vmatprep.subr.bf16.mxu0 %v4120_v40 }
 0x4c6   :  { %v3999_v49 = vpop.eup %3998 }
 0x4c7   :  { %v375_v50 = vmul.f32 %v3999_v49, %v3995_v33 }
 0x4c9   :  { %v377_v51 = vpack.c.bf16 %v375_v50, %v375_v50 }
 0x4cb   :  { %3620 = vmatmul.mubr.msk.bf16.vlgmr.msra.gmra.mrb[8].mxu1 %vm353_vm6, %v377_v51  ;;  %3626 = vmatmul.mubr.msk.bf16.vlgmr.msra.gmra.mrb[8].mxu0 %vm245_vm3, %v473_v52 }
 0x4cc   :  { %3630 = vmatpush3.bf16.xpose.msra.mxu1 %v530_v54  ;;  %3631 = vmatprep.mubr.msk.bf16.mxu1 %vm4121_vm1, %v4120_v40 }
 0x4cd   :  { %3641 = vmatprep.subr.bf16.mxu1 %v4120_v40  ;;  %3637 = vmatprep.mubr.msk.bf16.mxu0 %vm4121_vm1, %v4120_v40 }
 0x4d3   :  { %3632 = vmatmul.mubr.msk.bf16.vlgmr.msra.gmra.mrb[12].mxu1 %vm245_vm3, %v523_v55  ;;  %v3941_v55 = vld [vmem:[%s4955_s6 + $0x8] sm:$0xff]  }
 0x4d4   :  { %3643 = vmatprep.mubr.msk.bf16.mxu1 %vm4121_vm1, %v4120_v40 }
 0x596   :  { %v4361_v57 = vpop.f32.mrb[4].mxu0 }
 0x597   :  { %v3615_v59 = vpop.f32.mrb[5].mxu0 }
 0x598   :  { %v422_v60 = vpop.f32.mrb[6].mxu0 }
 0x599   :  { %v3616_v61 = vpop.f32.mrb[7].mxu0 }
 0x59e   :  { %v4363_v62 = vpop.f32.mrb[8].mxu1  ;;  %v516_v63 = vpop.f32.mrb[8].mxu0 }
 0x59f   :  { %v471_v1 = vpack.c.bf16 %v4363_v62, %v4361_v57  ;;  %v572_v2 = vmul.f32 0.25, %v516_v63  ;;  %v3621_v3 = vpop.f32.mrb[9].mxu1  ;;  %v3627_v4 = vpop.f32.mrb[9].mxu0 }
 0x5a0   :  { %v468_v5 = vpop.f32.mrb[10].mxu1  ;;  %v519_v6 = vpop.f32.mrb[10].mxu0 }
 0x5a1   :  { %v3622_v8 = vpop.f32.mrb[11].mxu1  ;;  %v3628_v9 = vpop.f32.mrb[11].mxu0  ;;  %v574_v10 = vadd.f32 %v572_v2, %v4326_v7 }
 0x5a3   :  { %v576_v11 = vsel %vm353_vm6, %v574_v10, -inf }
 0x5a4   :  { %577 = vmax.xlane.f32.xlu0 %v576_v11 }
 0x5a6   :  { %v566_v12 = vpop.f32.mrb[12].mxu1 }
 0x5a7   :  { %v573_v13 = vmul.f32 0.25, %v566_v12  ;;  %v3633_v14 = vpop.f32.mrb[13].mxu1 }
 0x5a8   :  { %v569_v15 = vpop.f32.mrb[14].mxu1 }
 0x5a9   :  { %v3634_v17 = vpop.f32.mrb[15].mxu1  ;;  %v575_v18 = vadd.f32 %v573_v13, %v4331_v16 }
 0x5ab   :  { %v579_v19 = vsel %vm353_vm6, %v575_v18, -inf }
 0x5ac   :  { %580 = vmax.xlane.f32.xlu1 %v579_v19 }
 0x5bd   :  { %650 = vrot.lane.b32.xlu1 %v4316_v0, %s4125_s0 }
 0x5c1   :  { %801 = vrot.lane.b32.xlu1 %v4295_v53, %s4126_s19 }
 0x5c5   :  { %851 = vrot.lane.b32.xlu1 %v4299_v58, %s4126_s19 }
 0x5c9   :  { %849 = vrot.lane.b32.xlu1 %v4299_v58, %s4127_s1 }
 0x631   :  { %v578_v20 = vpop.xlane.xlu0 %577 }
 0x632   :  { %v582_v21 = vsub.f32 %v574_v10, %v578_v20 }
 0x634   :  { %v584_v23 = vmul.f32 1.442695, %v582_v21 }
 0x636   :  { %4000 = vpow2.f32 %v584_v23 }
 0x639   :  { %v581_v24 = vpop.xlane.xlu1 %580 }
 0x63a   :  { %v583_v25 = vsub.f32 %v575_v18, %v581_v24 }
 0x63c   :  { %v586_v26 = vmul.f32 1.442695, %v583_v25 }
 0x63d   :  { %v651_v27 = vpop.permute.xlu1 %650 }
 0x63e   :  { %4002 = vpow2.f32 %v586_v26  ;;  %v656_v28 = vsel %vm381_vm2, %v651_v27, 0 }
 0x63f   :  { %3642 = vmatpush3.bf16.msra.mxu1 %v656_v28 }
 0x640   :  { %v4001_v29 = vpop.eup %4000  ;;  %3653 = vmatprep.subr.bf16.mxu1 %v4120_v40 }
 0x641   :  { %v588_v30 = vsel %vm353_vm6, %v4001_v29, 0.0  ;;  %v802_v50 = vpop.permute.xlu1 %801 }
 0x642   :  { %589 = vadd.xlane.f32.xlu0 %v588_v30  ;;  %v807_v3 = vsel %vm245_vm3, %v802_v50, 0 }
 0x645   :  { %v852_v51 = vpop.permute.xlu1 %851 }
 0x646   :  { %v857_v52 = vsel %vm245_vm3, %v852_v51, 0 }
 0x648   :  { %v4003_v31 = vpop.eup %4002 }
 0x649   :  { %v591_v32 = vsel %vm353_vm6, %v4003_v31, 0.0  ;;  %v850_v54 = vpop.permute.xlu1 %849 }
 0x64a   :  { %592 = vadd.xlane.f32.xlu0 %v591_v32 }
 0x660   :  { %601 = vrot.lane.b32.xlu0 %v4297_v56, %s4125_s0 }
 0x664   :  { %799 = vrot.lane.b32.xlu0 %v4295_v53, %s4127_s1 }
 0x6cf   :  { %v590_v33 = vpop.xlane.xlu0 %589 }
 0x6d0   :  { %4004 = vrcp.f32 %v590_v33 }
 0x6d7   :  { %v593_v34 = vpop.xlane.xlu0 %592 }
 0x6d8   :  { %4006 = vrcp.f32 %v593_v34 }
 0x6da   :  { %v4005_v35 = vpop.eup %4004 }
 0x6db   :  { %v596_v36 = vmul.f32 %v4005_v35, %v4001_v29  ;;  %v602_v39 = vpop.permute.xlu0 %601 }
 0x6dc   :  { %v607_v41 = vsel %vm381_vm2, %v602_v39, 0 }
 0x6dd   :  { %3636 = vmatpush3.bf16.msra.mxu0 %v607_v41  ;;  %v598_v44 = vpack.c.bf16 %v596_v36, %v596_v36 }
 0x6de   :  { %3647 = vmatprep.subr.bf16.mxu0 %v4120_v40 }
 0x6df   :  { %v800_v8 = vpop.permute.xlu0 %799 }
 0x6e0   :  { %3638 = vmatmul.mubr.msk.bf16.vlgmr.msra.gmra.mrb[12].mxu0 %vm353_vm6, %v598_v44 }
 0x6e1   :  { %3649 = vmatprep.mubr.msk.bf16.mxu0 %vm4121_vm1, %v4120_v40  ;;  %3648 = vmatpush3.bf16.msra.mxu0 %v3941_v55 }
 0x6e2   :  { %v4007_v46 = vpop.eup %4006  ;;  %3659 = vmatprep.subr.bf16.mxu0 %v4120_v40 }
 0x6e3   :  { %v597_v47 = vmul.f32 %v4007_v46, %v4003_v31 }
 0x6e5   :  { %v599_v49 = vpack.c.bf16 %v597_v47, %v597_v47 }
 0x6e7   :  { %3644 = vmatmul.mubr.msk.bf16.vlgmr.msra.gmra.mrb[16].mxu1 %vm353_vm6, %v599_v49 }
 0x6e8   :  { %3654 = vmatpush3.bf16.msra.mxu1 %v3940_v48  ;;  %3655 = vmatprep.mubr.msk.bf16.mxu1 %vm4121_vm1, %v4120_v40 }
 0x6e9   :  { %3665 = vmatprep.subr.bf16.mxu1 %v4120_v40 }
 0x6ef   :  { %3656 = vmatmul.mubr.msk.bf16.vlgmr.msra.gmra.mrb[20].mxu1 %vm245_vm3, %v471_v1 }
 0x6f0   :  { %3667 = vmatprep.mubr.msk.bf16.mxu1 %vm4121_vm1, %v4120_v40 }
 0x6f1   :  { %3666 = vmatpush3.bf16.xpose.msra.mxu1 %v857_v52 }
 0x6f2   :  { %3677 = vmatprep.subr.bf16.mxu1 %v4120_v40 }
 0x6f8   :  { %3668 = vmatmul.mubr.msk.bf16.vlgmr.msra.gmra.mrb[24].mxu1 %vm245_vm3, %v850_v54 }
 0x6f9   :  { %3679 = vmatprep.mubr.msk.bf16.mxu1 %vm4121_vm1, %v4120_v40 }
 0x7b3   :  { %v643_v57 = vpop.f32.mrb[12].mxu0 }
 0x7b4   :  { %v3639_v59 = vpop.f32.mrb[13].mxu0 }
 0x7b5   :  { %v646_v60 = vpop.f32.mrb[14].mxu0 }
 0x7b6   :  { %v3640_v61 = vpop.f32.mrb[15].mxu0 }
 0x7ba   :  { %v692_v62 = vpop.f32.mrb[16].mxu1 }
 0x7bb   :  { %v698_v63 = vpack.c.bf16 %v692_v62, %v643_v57  ;;  %v3645_v1 = vpop.f32.mrb[17].mxu1 }
 0x7bc   :  { %v695_v2 = vpop.f32.mrb[18].mxu1 }
 0x7bd   :  { %v3646_v4 = vpop.f32.mrb[19].mxu1  ;;  %3650 = vmatmul.mubr.msk.bf16.vlgmr.msra.gmra.mrb[16].mxu0 %vm245_vm3, %v698_v63 }
 0x7be   :  { %3660 = vmatpush3.bf16.xpose.msra.mxu0 %v807_v3  ;;  %3661 = vmatprep.mubr.msk.bf16.mxu0 %vm4121_vm1, %v4120_v40 }
 0x7bf   :  { %3671 = vmatprep.subr.bf16.mxu0 %v4120_v40 }
 0x7c2   :  { %v792_v5 = vpop.f32.mrb[20].mxu1 }
 0x7c3   :  { %v3657_v6 = vpop.f32.mrb[21].mxu1 }
 0x7c4   :  { %v795_v9 = vpop.f32.mrb[22].mxu1  ;;  %v3942_v6 = vld [vmem:[%s4955_s6 + $0x10] sm:$0xff]  }
 0x7c5   :  { %v3658_v10 = vpop.f32.mrb[23].mxu1  ;;  %3662 = vmatmul.mubr.msk.bf16.vlgmr.msra.gmra.mrb[20].mxu0 %vm245_vm3, %v800_v8 }
 0x7c6   :  { %3673 = vmatprep.mubr.msk.bf16.mxu0 %vm4121_vm1, %v4120_v40 }
 0x7cb   :  { %v893_v11 = vpop.f32.mrb[24].mxu1 }
 0x7cc   :  { %v900_v12 = vmul.f32 0.25, %v893_v11  ;;  %v3669_v13 = vpop.f32.mrb[25].mxu1 }
 0x7cd   :  { %v896_v14 = vpop.f32.mrb[26].mxu1 }
 0x7ce   :  { %v3670_v15 = vpop.f32.mrb[27].mxu1  ;;  %v902_v17 = vadd.f32 %v900_v12, %v4331_v16 }
 0x7d0   :  { %v906_v18 = vsel %vm353_vm6, %v902_v17, -inf }
 0x7d1   :  { %907 = vmax.xlane.f32.xlu1 %v906_v18 }
 0x7e2   :  { %975 = vrot.lane.b32.xlu1 %v4316_v0, %s4127_s1 }
 0x7e6   :  { %1078 = vrot.lane.b32.xlu1 %v4295_v53, %s4128_s2 }
 0x7ea   :  { %1128 = vrot.lane.b32.xlu1 %v4299_v58, %s4128_s2 }
 0x7ee   :  { %1126 = vrot.lane.b32.xlu1 %v4299_v58, %s4970_s23 }
 0x85e   :  { %v908_v19 = vpop.xlane.xlu1 %907 }
 0x85f   :  { %v910_v23 = vsub.f32 %v902_v17, %v908_v19 }
 0x861   :  { %v913_v24 = vmul.f32 1.442695, %v910_v23 }
 0x862   :  { %v976_v20 = vpop.permute.xlu1 %975 }
 0x863   :  { %v981_v21 = vsel %vm381_vm2, %v976_v20, 0  ;;  %4008 = vpow2.f32 %v913_v24 }
 0x864   :  { %3678 = vmatpush3.bf16.msra.mxu1 %v981_v21 }
 0x865   :  { %3689 = vmatprep.subr.bf16.mxu1 %v4120_v40 }
 0x866   :  { %v1079_v54 = vpop.permute.xlu1 %1078 }
 0x867   :  { %v1084_v57 = vsel %vm245_vm3, %v1079_v54, 0 }
 0x86a   :  { %v1129_v15 = vpop.permute.xlu1 %1128 }
 0x86b   :  { %v1134_v21 = vsel %vm245_vm3, %v1129_v15, 0 }
 0x86d   :  { %v4009_v39 = vpop.eup %4008 }
 0x86e   :  { %v918_v41 = vsel %vm353_vm6, %v4009_v39, 0.0  ;;  %v1127_v24 = vpop.permute.xlu1 %1126 }
 0x890   :  { %v742_v25 = vpop.f32.mrb[16].mxu0 }
 0x891   :  { %v4434_v26 = vadd.f32 %v792_v5, %v742_v25  ;;  %v3651_v27 = vpop.f32.mrb[17].mxu0 }
 0x892   :  { %v745_v28 = vpop.f32.mrb[18].mxu0 }
 0x893   :  { %v4436_v29 = vadd.f32 %v795_v9, %v745_v28  ;;  %v3652_v30 = vpop.f32.mrb[19].mxu0 }
 0x898   :  { %v843_v31 = vpop.f32.mrb[20].mxu0 }
 0x899   :  { %v899_v58 = vmul.f32 0.25, %v843_v31  ;;  %v3663_v32 = vpop.f32.mrb[21].mxu0 }
 0x89a   :  { %v846_v33 = vpop.f32.mrb[22].mxu0 }
 0x89b   :  { %v3664_v34 = vpop.f32.mrb[23].mxu0  ;;  %v901_v35 = vadd.f32 %v899_v58, %v4326_v7 }
 0x89d   :  { %v903_v36 = vsel %vm353_vm6, %v901_v35, -inf }
 0x89e   :  { %904 = vmax.xlane.f32.xlu0 %v903_v36 }
 0x8a2   :  { %919 = vadd.xlane.f32.xlu0 %v918_v41 }
 0x92b   :  { %v905_v44 = vpop.xlane.xlu0 %904 }
 0x92c   :  { %v909_v46 = vsub.f32 %v901_v35, %v905_v44 }
 0x92e   :  { %v911_v47 = vmul.f32 1.442695, %v909_v46 }
 0x92f   :  { %v920_v48 = vpop.xlane.xlu0 %919 }
 0x930   :  { %4010 = vpow2.f32 %v911_v47 }
 0x931   :  { %4012 = vrcp.f32 %v920_v48 }
 0x93a   :  { %v4011_v49 = vpop.eup %4010 }
 0x93b   :  { %v4013_v50 = vpop.eup %4012  ;;  %v915_v51 = vsel %vm353_vm6, %v4011_v49, 0.0 }
 0x93c   :  { %v924_v52 = vmul.f32 %v4013_v50, %v4009_v39  ;;  %916 = vadd.xlane.f32.xlu0 %v915_v51 }
 0x93e   :  { %v926_v55 = vpack.c.bf16 %v924_v52, %v924_v52 }
 0x940   :  { %3680 = vmatmul.mubr.msk.bf16.vlgmr.msra.gmra.mrb[28].mxu1 %vm353_vm6, %v926_v55 }
 0x941   :  { %3690 = vmatpush3.bf16.xpose.msra.mxu1 %v1084_v57  ;;  %3691 = vmatprep.mubr.msk.bf16.mxu1 %vm4121_vm1, %v4120_v40 }
 0x942   :  { %3701 = vmatprep.subr.bf16.mxu1 %v4120_v40 }
 0x952   :  { %927 = vrot.lane.b32.xlu0 %v4297_v56, %s4127_s1 }
 0x956   :  { %1076 = vrot.lane.b32.xlu0 %v4295_v53, %s4970_s23 }
 0x9c9   :  { %v917_v59 = vpop.xlane.xlu0 %916 }
 0x9ca   :  { %4014 = vrcp.f32 %v917_v59 }
 0x9cd   :  { %v928_v60 = vpop.permute.xlu0 %927 }
 0x9ce   :  { %v933_v61 = vsel %vm381_vm2, %v928_v60, 0 }
 0x9cf   :  { %3672 = vmatpush3.bf16.msra.mxu0 %v933_v61 }
 0x9d0   :  { %3683 = vmatprep.subr.bf16.mxu0 %v4120_v40 }
 0x9d1   :  { %v1077_v62 = vpop.permute.xlu0 %1076 }
 0x9d2   :  { %3692 = vmatmul.mubr.msk.bf16.vlgmr.msra.gmra.mrb[32].mxu1 %vm245_vm3, %v1077_v62 }
 0x9d3   :  { %3703 = vmatprep.mubr.msk.bf16.mxu1 %vm4121_vm1, %v4120_v40 }
 0x9d4   :  { %v4015_v63 = vpop.eup %4014 }
 0x9d5   :  { %v923_v1 = vmul.f32 %v4015_v63, %v4011_v49 }
 0x9d7   :  { %v925_v2 = vpack.c.bf16 %v923_v1, %v923_v1 }
 0x9d9   :  { %3674 = vmatmul.mubr.msk.bf16.vlgmr.msra.gmra.mrb[24].mxu0 %vm353_vm6, %v925_v2 }
 0x9da   :  { %3685 = vmatprep.mubr.msk.bf16.mxu0 %vm4121_vm1, %v4120_v40  ;;  %3684 = vmatpush3.bf16.msra.mxu0 %v3942_v6 }
 0x9db   :  { %3695 = vmatprep.subr.bf16.mxu0 %v4120_v40 }
 0xa13   :  { %v1017_v53 = vpop.f32.mrb[28].mxu1 }
 0xa14   :  { %v3681_v3 = vpop.f32.mrb[29].mxu1 }
 0xa15   :  { %v1020_v4 = vpop.f32.mrb[30].mxu1 }
 0xa16   :  { %v3682_v5 = vpop.f32.mrb[31].mxu1 }
 0xaa5   :  { %v1120_v8 = vpop.f32.mrb[32].mxu1 }
 0xaa6   :  { %v1176_v9 = vmul.f32 0.25, %v1120_v8  ;;  %v3693_v10 = vpop.f32.mrb[33].mxu1 }
 0xaa7   :  { %v1123_v11 = vpop.f32.mrb[34].mxu1 }
 0xaa8   :  { %v3694_v12 = vpop.f32.mrb[35].mxu1  ;;  %v1178_v13 = vadd.f32 %v1176_v9, %v4326_v7 }
 0xaaa   :  { %v1180_v14 = vsel %vm353_vm6, %v1178_v13, -inf }
 0xaab   :  { %1181 = vmax.xlane.f32.xlu0 %v1180_v14  ;;  %v3359_v14 = vld [vmem:[%s4956_s7] ss:$0 sm:$0xff] }
 0xaac   :  { %v969_v17 = vpop.f32.mrb[24].mxu0 }
 0xaad   :  { %v1023_v18 = vpack.c.bf16 %v1017_v53, %v969_v17  ;;  %v3675_v19 = vpop.f32.mrb[25].mxu0  ;;  %v3943_v53 = vld [vmem:[%s4955_s6 + $0x18] sm:$0xff]  }
 0xaae   :  { %v972_v20 = vpop.f32.mrb[26].mxu0 }
 0xaaf   :  { %v3676_v23 = vpop.f32.mrb[27].mxu0  ;;  %3686 = vmatmul.mubr.msk.bf16.vlgmr.msra.gmra.mrb[28].mxu0 %vm245_vm3, %v1023_v18 }
 0xab0   :  { %3696 = vmatpush3.bf16.xpose.msra.mxu0 %v1134_v21  ;;  %3697 = vmatprep.mubr.msk.bf16.mxu0 %vm4121_vm1, %v4120_v40 }
 0xab1   :  { %3707 = vmatprep.subr.bf16.mxu0 %v4120_v40 }
 0xab7   :  { %3698 = vmatmul.mubr.msk.bf16.vlgmr.msra.gmra.mrb[32].mxu0 %vm245_vm3, %v1127_v24 }
 0xab8   :  { %3709 = vmatprep.mubr.msk.bf16.mxu0 %vm4121_vm1, %v4120_v40 }
 0xb38   :  { %v1182_v25 = vpop.xlane.xlu0 %1181 }
 0xb39   :  { %v1186_v27 = vsub.f32 %v1178_v13, %v1182_v25 }
 0xb3b   :  { %v1188_v28 = vmul.f32 1.442695, %v1186_v27 }
 0xb3d   :  { %4016 = vpow2.f32 %v1188_v28 }
 0xb47   :  { %v4017_v30 = vpop.eup %4016 }
 0xb48   :  { %v1192_v31 = vsel %vm353_vm6, %v4017_v30, 0.0 }
 0xb49   :  { %1193 = vadd.xlane.f32.xlu0 %v1192_v31 }
 0xb82   :  { %v1067_v58 = vpop.f32.mrb[28].mxu0 }
 0xb83   :  { %v1074_v32 = vadd.f32 %v1067_v58, %v4434_v26  ;;  %v3687_v33 = vpop.f32.mrb[29].mxu0 }
 0xb84   :  { %v1070_v34 = vpop.f32.mrb[30].mxu0 }
 0xb85   :  { %v1075_v35 = vadd.f32 %v1070_v34, %v4436_v29  ;;  %v3688_v36 = vpop.f32.mrb[31].mxu0 }
 0xb8a   :  { %v1170_v39 = vpop.f32.mrb[32].mxu0 }
 0xb8b   :  { %v1177_v41 = vmul.f32 0.25, %v1170_v39  ;;  %v3699_v44 = vpop.f32.mrb[33].mxu0 }
 0xb8c   :  { %v1173_v46 = vpop.f32.mrb[34].mxu0  ;;  %v3946_v44 = vld [vmem:[%s4959_s10 + $0x10] sm:$0xff]  }
 0xb8d   :  { %v3700_v47 = vpop.f32.mrb[35].mxu0  ;;  %v1179_v48 = vadd.f32 %v1177_v41, %v4331_v16  ;;  %v3945_v41 = vld [vmem:[%s4959_s10 + $0x8] sm:$0xff]   ;;  %v3947_v46 = vld [vmem:[%s4959_s10 + $0x18] sm:$0xff]  }
 0xb8f   :  { %v1183_v49 = vsel %vm353_vm6, %v1179_v48, -inf }
 0xb90   :  { %1184 = vmax.xlane.f32.xlu1 %v1183_v49 }
 0xba1   :  { %1252 = vrot.lane.b32.xlu1 %v4316_v0, %s4970_s23 }
 0xbd6   :  { %v1194_v57 = vpop.xlane.xlu0 %1193 }
 0xc1d   :  { %v1185_v50 = vpop.xlane.xlu1 %1184 }
 0xc1e   :  { %v1187_v26 = vsub.f32 %v1179_v48, %v1185_v50 }
 0xc20   :  { %v1190_v51 = vmul.f32 1.442695, %v1187_v26 }
 0xc21   :  { %v1253_v52 = vpop.permute.xlu1 %1252 }
 0xc22   :  { %4018 = vpow2.f32 %v1190_v51  ;;  %v1258_v29 = vsel %vm381_vm2, %v1253_v52, 0 }
 0xc23   :  { %3708 = vmatpush3.bf16.msra.mxu0 %v1258_v29  ;;  %4020 = vrcp.f32 %v1194_v57  ;;  %v3360_v29 = vld [vmem:[%s4957_s8] ss:$0 sm:$0xff] }
 0xc24   :  { %3719 = vmatprep.subr.bf16.mxu0 %v4120_v40 }
 0xc2c   :  { %v4019_v54 = vpop.eup %4018 }
 0xc2d   :  { %v1195_v55 = vsel %vm353_vm6, %v4019_v54, 0.0  ;;  %v4021_v0 = vpop.eup %4020 }
 0xc2e   :  { %1196 = vadd.xlane.f32.xlu0 %v1195_v55  ;;  %v1200_v60 = vmul.f32 %v4021_v0, %v4017_v30 }
 0xc30   :  { %v1202_v63 = vpack.c.bf16 %v1200_v60, %v1200_v60 }
 0xc44   :  { %1204 = vrot.lane.b32.xlu0 %v4297_v56, %s4970_s23 }
 0xcbb   :  { %v1197_v59 = vpop.xlane.xlu0 %1196 }
 0xcbc   :  { %4022 = vrcp.f32 %v1197_v59  ;;  %v3361_v59 = vld [vmem:[%s4958_s9] ss:$0 sm:$0xff] }
 0xcbf   :  { %v1205_v61 = vpop.permute.xlu0 %1204 }
 0xcc0   :  { %v1210_v62 = vsel %vm381_vm2, %v1205_v61, 0 }
 0xcc1   :  { %3702 = vmatpush3.bf16.msra.mxu1 %v1210_v62 }
 0xcc2   :  { %3713 = vmatprep.subr.bf16.mxu1 %v4120_v40 }
 0xcc4   :  { %3704 = vmatmul.mubr.msk.bf16.vlgmr.msra.gmra.mrb[36].mxu1 %vm353_vm6, %v1202_v63 }
 0xcc5   :  { %3715 = vmatprep.mubr.msk.bf16.mxu1 %vm4121_vm1, %v4120_v40  ;;  %3714 = vmatpush3.bf16.msra.mxu1 %v3943_v53  ;;  %v3952_v53 = vld [vmem:[%s4961_s12 + $0x20] sm:$0xff]  }
 0xcc6   :  { %v4023_v1 = vpop.eup %4022  ;;  %3731 = vmatprep.subr.bf16.mxu1 %v4120_v40 }
 0xcc7   :  { %v1201_v56 = vmul.f32 %v4023_v1, %v4019_v54  ;;  %v3948_v1 = vld [vmem:[%s4961_s12] sm:$0xff]  }
 0xcc9   :  { %v1203_v2 = vpack.c.bf16 %v1201_v56, %v1201_v56  ;;  %v3949_v56 = vld [vmem:[%s4961_s12 + $0x8] sm:$0xff]  }
 0xccb   :  { %3710 = vmatmul.mubr.msk.bf16.vlgmr.msra.gmra.mrb[36].mxu0 %vm353_vm6, %v1203_v2  ;;  %v3950_v2 = vld [vmem:[%s4961_s12 + $0x10] sm:$0xff]  }
 0xccc   :  { %3727 = vmatprep.mubr.msk.bf16.mxu0 %vm4121_vm1, %v4120_v40 }
 0xd97   :  { %v1246_v3 = vpop.f32.mrb[36].mxu1 }
 0xd98   :  { %v3705_v4 = vpop.f32.mrb[37].mxu1 }
 0xd99   :  { %v1249_v5 = vpop.f32.mrb[38].mxu1  ;;  %v3954_v4 = vld [vmem:[%s4961_s12 + $0x30] sm:$0xff]  }
 0xd9a   :  { %v3706_v6 = vpop.f32.mrb[39].mxu1  ;;  %v3955_v5 = vld [vmem:[%s4961_s12 + $0x38] sm:$0xff]  }
 0xd9b   :  { %v3362_v6 = vld [vmem:[%s4979_s20] ss:$0 sm:$0xff] }
 0xd9e   :  { %v1294_v8 = vpop.f32.mrb[36].mxu0 }
 0xd9f   :  { %v1300_v9 = vpack.c.bf16 %v1294_v8, %v1246_v3  ;;  %v3711_v10 = vpop.f32.mrb[37].mxu0  ;;  %v3953_v3 = vld [vmem:[%s4961_s12 + $0x28] sm:$0xff]  }
 0xda0   :  { %v1297_v11 = vpop.f32.mrb[38].mxu0 }
 0xda1   :  { %v3712_v12 = vpop.f32.mrb[39].mxu0  ;;  %3716 = vmatmul.mubr.msk.bf16.vlgmr.msra.gmra.mrb[40].mxu1 %vm245_vm3, %v1300_v9 }
 0xda2   :  { %3747 = vmatprep.mubr.msk.bf16.mxu1 %vm4121_vm1, %v4120_v40  ;;  %3732 = vmatpush3.bf16.msra.mxu1 %v3948_v1  ;;  %v3959_v1 = vld [vmem:[%s4953_s4 + $0x50] ss:$8 sps:$4 sm:$0xff]  }
 0xda3   :  { %3733 = vmatprep.subr.bf16.mxu1 %v4120_v40 }
 0xda6   :  { %3734 = vmatpush3.bf16.msra.mxu1 %v3949_v56  ;;  %v3964_v56 = vld [vmem:[%s4953_s4 + $0x64] ss:$8 sps:$4 sm:$0xff]  }
 0xda7   :  { %3735 = vmatprep.subr.bf16.mxu1 %v4120_v40 }
 0xdaa   :  { %3736 = vmatpush3.bf16.msra.mxu1 %v3950_v2  ;;  %v3962_v2 = vld [vmem:[%s4953_s4 + $0x60] ss:$8 sps:$4 sm:$0xff]  }
 0xdab   :  { %3737 = vmatprep.subr.bf16.mxu1 %v4120_v40 }
 0xe74   :  { %v1344_v13 = vpop.f32.mrb[40].mxu1 }
 0xe75   :  { %v1351_v15 = vadd.f32 %v1344_v13, %v1074_v32  ;;  %v3717_v17 = vpop.f32.mrb[41].mxu1 }
 0xe76   :  { %v1347_v18 = vpop.f32.mrb[42].mxu1 }
 0xe77   :  { %v1360_v19 = vadd.f32 %v3359_v14, %v1351_v15  ;;  %v1352_v20 = vadd.f32 %v1347_v18, %v1075_v35  ;;  %v3718_v21 = vpop.f32.mrb[43].mxu1 }
 0xe79   :  { %v1361_v23 = vadd.f32 %v3359_v14, %v1352_v20  ;;  %v1362_v24 = vadd.f32 %v1360_v19, %v4270_v37 }
 0xe7b   :  { %v1366_v25 = vsel %vm69_vm0, %v1362_v24, 0.0  ;;  %v1363_v27 = vadd.f32 %v1361_v23, %v4272_v38  ;;  %v3944_v38 = vld [vmem:[%s4959_s10] sm:$0xff]  }
 0xe7c   :  { %1367 = vadd.xlane.f32.xlu1 %v1366_v25  ;;  %3720 = vmatpush3.bf16.msra.mxu0 %v3944_v38 }
 0xe7d   :  { %v1369_v28 = vsel %vm69_vm0, %v1363_v27, 0.0  ;;  %3721 = vmatprep.subr.bf16.mxu0 %v4120_v40 }
 0xe7e   :  { %1370 = vadd.xlane.f32.xlu0 %v1369_v28 }
 0xe80   :  { %3722 = vmatpush3.bf16.msra.mxu0 %v3945_v41 }
 0xe81   :  { %3723 = vmatprep.subr.bf16.mxu0 %v4120_v40 }
 0xe84   :  { %3724 = vmatpush3.bf16.msra.mxu0 %v3946_v44 }
 0xe85   :  { %3725 = vmatprep.subr.bf16.mxu0 %v4120_v40 }
 0xe88   :  { %3726 = vmatpush3.bf16.msra.mxu0 %v3947_v46 }
 0xf09   :  { %v1368_v30 = vpop.xlane.xlu1 %1367 }
 0xf0a   :  { %v1372_v31 = vmul.f32 0.015625, %v1368_v30 }
 0xf0b   :  { %v1371_v58 = vpop.xlane.xlu0 %1370 }
 0xf0c   :  { %v1374_v32 = vsub.f32 %v1362_v24, %v1372_v31  ;;  %v1373_v33 = vmul.f32 0.015625, %v1371_v58 }
 0xf0e   :  { %v1375_v34 = vsub.f32 %v1363_v27, %v1373_v33  ;;  %v1376_v36 = vmul.f32 %v1374_v32, %v1374_v32 }
 0xf10   :  { %v1378_v35 = vsel %vm69_vm0, %v1376_v36, 0.0  ;;  %v1377_v39 = vmul.f32 %v1375_v34, %v1375_v34 }
 0xf11   :  { %1379 = vadd.xlane.f32.xlu0 %v1378_v35  ;;  %v3368_v35 = vld [vmem:[%s4962_s13] ss:$0 sm:$0xff] }
 0xf12   :  { %v1381_v37 = vsel %vm69_vm0, %v1377_v39, 0.0 }
 0xf13   :  { %1382 = vadd.xlane.f32.xlu1 %v1381_v37 }
 0xf9e   :  { %v1380_v47 = vpop.xlane.xlu0 %1379 }
 0xf9f   :  { %v1384_v48 = vmul.f32 0.015625, %v1380_v47 }
 0xfa0   :  { %v1383_v49 = vpop.xlane.xlu1 %1382 }
 0xfa1   :  { %v1386_v50 = vadd.f32 1e-12, %v1384_v48  ;;  %v1385_v26 = vmul.f32 0.015625, %v1383_v49 }
 0xfa3   :  { %4024 = vrsqrt.f32 %v1386_v50  ;;  %v1387_v51 = vadd.f32 1e-12, %v1385_v26 }
 0xfa5   :  { %4026 = vrsqrt.f32 %v1387_v51 }
 0xfad   :  { %v4025_v52 = vpop.eup %4024 }
 0xfae   :  { %v1390_v54 = vmul.f32 %v4025_v52, %v1374_v32 }
 0xfaf   :  { %v4027_v55 = vpop.eup %4026 }
 0xfb0   :  { %v1398_v57 = vmul.f32 %v3360_v29, %v1390_v54  ;;  %v1391_v0 = vmul.f32 %v4027_v55, %v1375_v34 }
 0xfb2   :  { %v1399_v60 = vmul.f32 %v3360_v29, %v1391_v0  ;;  %v4530_v61 = vadd.f32 %v3361_v59, %v1398_v57 }
 0xfb4   :  { %v4532_v62 = vadd.f32 %v3361_v59, %v1399_v60 }
 0xfb6   :  { %v1408_v63 = vpack.c.bf16 %v4532_v62, %v4530_v61 }
 0xfb8   :  { %3728 = vmatmul.mubr.msk.bf16.vlgmr.msra.gmra.mrb[40].mxu0 %vm69_vm0, %v1408_v63  ;;  %v3961_v63 = vld [vmem:[%s4953_s4 + $0x54] ss:$8 sps:$4 sm:$0xff]  }
 0xfb9   :  { %1767 = vmatprep.mubr.bf16.mxu0 %v4119_v22  ;;  %v3951_v22 = vld [vmem:[%s4961_s12 + $0x18] sm:$0xff]  }
 0xfba   :  { %3738 = vmatpush3.bf16.msra.mxu1 %v3951_v22  ;;  %v3967_v22 = vld [vmem:[%s4953_s4 + $0x74] ss:$8 sps:$4 sm:$0xff]  }
 0xfbb   :  { %3739 = vmatprep.subr.bf16.mxu1 %v4120_v40 }
 0xfbe   :  { %3740 = vmatpush3.bf16.msra.mxu1 %v3952_v53  ;;  %v3965_v53 = vld [vmem:[%s4953_s4 + $0x70] ss:$8 sps:$4 sm:$0xff]  }
 0xfbf   :  { %3741 = vmatprep.subr.bf16.mxu1 %v4120_v40 }
 0xfc2   :  { %3742 = vmatpush3.bf16.msra.mxu1 %v3953_v3 }
 0xfc3   :  { %3743 = vmatprep.subr.bf16.mxu1 %v4120_v40 }
 0xfc6   :  { %3744 = vmatpush3.bf16.msra.mxu1 %v3954_v4 }
 0xfc7   :  { %3745 = vmatprep.subr.bf16.mxu1 %v4120_v40 }
 0xfca   :  { %3746 = vmatpush3.bf16.msra.mxu1 %v3955_v5 }
 0xfcb   :  { %3757 = vmatprep.subr.bf16.mxu1 %v4120_v40 }
0x108b   :  { %v1485_v8 = vpop.f32.mrb[40].mxu0 }
0x108c   :  { %v1486_v9 = vadd.f32 %v3362_v6, %v1485_v8  ;;  %v3729_v10 = vpop.f32.mrb[41].mxu0 }
0x108d   :  { %v1488_v11 = vpop.f32.mrb[42].mxu0 }
0x108e   :  { %v1492_v12 = vmul.f32 %v1486_v9, %v1486_v9  ;;  %v1489_v13 = vadd.f32 %v3362_v6, %v1488_v11  ;;  %v3730_v14 = vpop.f32.mrb[43].mxu0  ;;  %v3377_v11 = vld [vmem:[%s4963_s14] ss:$0 sm:$0xff] }
0x1090   :  { %v1494_v15 = vmul.f32 %v1492_v12, %v1486_v9  ;;  %v1493_v17 = vmul.f32 %v1489_v13, %v1489_v13 }
0x1092   :  { %v1496_v18 = vmul.f32 0.044715, %v1494_v15  ;;  %v1495_v19 = vmul.f32 %v1493_v17, %v1489_v13  ;;  %v3378_v17 = vld [vmem:[%s4964_s15] ss:$0 sm:$0xff] }
0x1094   :  { %v1498_v20 = vadd.f32 %v1496_v18, %v1486_v9  ;;  %v1497_v21 = vmul.f32 0.044715, %v1495_v19 }
0x1096   :  { %v1500_v23 = vmul.f32 0.7978846, %v1498_v20  ;;  %v1499_v24 = vadd.f32 %v1497_v21, %v1489_v13 }
0x1098   :  { %4028 = vtanh.f32 %v1500_v23  ;;  %v1501_v25 = vmul.f32 0.7978846, %v1499_v24  ;;  %v3387_v23 = vld [vmem:[%s4954_s5 + $0x2] sm:$0x3] }
0x1099   :  { %v1685_v24 = vrot.slane %v3387_v23, %v4282_v43 }
0x109a   :  { %4030 = vtanh.f32 %v1501_v25 }
0x10a2   :  { %v4029_v27 = vpop.eup %4028 }
0x10a3   :  { %v1504_v28 = vadd.f32 1.0, %v4029_v27 }
0x10a4   :  { %v4031_v30 = vpop.eup %4030 }
0x10a5   :  { %v1506_v31 = vmul.f32 0.5, %v1504_v28  ;;  %v1505_v58 = vadd.f32 1.0, %v4031_v30 }
0x10a7   :  { %v1507_v32 = vmul.f32 0.5, %v1505_v58  ;;  %v1508_v33 = vmul.f32 %v1506_v31, %v1486_v9 }
0x10a9   :  { %v1509_v34 = vmul.f32 %v1507_v32, %v1489_v13 }
0x10ab   :  { %v1510_v36 = vpack.c.bf16 %v1509_v34, %v1508_v33  ;;  %v1689_v34 = vrot.slane %v3387_v23, %v140_v45 }
0x10ad   :  { %3748 = vmatmul.mubr.bf16.vlgmr.msra.gmra.mrb[44].mxu1 %v1510_v36 }
0x10ae   :  { %3759 = vmatprep.mubr.msk.bf16.mxu1 %vm4121_vm1, %v4120_v40 }
0x1180   :  { %v1616_v39 = vpop.f32.mrb[44].mxu1 }
0x1181   :  { %v1617_v37 = vadd.f32 %v3368_v35, %v1616_v39  ;;  %v3749_v38 = vpop.f32.mrb[45].mxu1 }
0x1182   :  { %v1619_v41 = vpop.f32.mrb[46].mxu1 }
0x1183   :  { %v1620_v44 = vadd.f32 %v3368_v35, %v1619_v41  ;;  %v3750_v46 = vpop.f32.mrb[47].mxu1  ;;  %v1623_v47 = vadd.f32 %v1617_v37, %v4530_v61  ;;  %v3958_v61 = vld [vmem:[%s4953_s4 + $0x44] ss:$8 sps:$4 sm:$0xff]  }
0x1184   :  { %1735 = vmatprep.subr.bf16.mxu0 %v3958_v61 }
0x1185   :  { %v1627_v48 = vsel %vm69_vm0, %v1623_v47, 0.0  ;;  %v1624_v49 = vadd.f32 %v1620_v44, %v4532_v62  ;;  %v3956_v62 = vld [vmem:[%s4953_s4 + $0x40] ss:$8 sps:$4 sm:$0xff]  }
0x1186   :  { %1628 = vadd.xlane.f32.xlu0 %v1627_v48  ;;  %1736 = vmatpush1.bf16.msra.mxu0 %v3956_v62 }
0x1187   :  { %v1630_v50 = vsel %vm69_vm0, %v1624_v49, 0.0  ;;  %1737 = vmatprep.subr.bf16.mxu0 %v3961_v63 }
0x1188   :  { %1631 = vadd.xlane.f32.xlu1 %v1630_v50 }
0x118a   :  { %1738 = vmatpush1.bf16.msra.mxu0 %v3959_v1 }
0x118b   :  { %1739 = vmatprep.subr.bf16.mxu0 %v3964_v56 }
0x118e   :  { %1740 = vmatpush1.bf16.msra.mxu0 %v3962_v2 }
0x118f   :  { %1741 = vmatprep.subr.bf16.mxu0 %v3967_v22 }
0x1192   :  { %1742 = vmatpush1.bf16.msra.mxu0 %v3965_v53 }
0x1193   :  { %3751 = vmatprep.subr.bf16.mxu0 %v4120_v40 }
0x1213   :  { %v1629_v26 = vpop.xlane.xlu0 %1628 }
0x1214   :  { %v1633_v51 = vmul.f32 0.015625, %v1629_v26 }
0x1215   :  { %v1632_v52 = vpop.xlane.xlu1 %1631 }
0x1216   :  { %v1635_v29 = vsub.f32 %v1623_v47, %v1633_v51  ;;  %v1634_v54 = vmul.f32 0.015625, %v1632_v52 }
0x1218   :  { %v1636_v55 = vsub.f32 %v1624_v49, %v1634_v54  ;;  %v1637_v57 = vmul.f32 %v1635_v29, %v1635_v29 }
0x121a   :  { %v1639_v0 = vsel %vm69_vm0, %v1637_v57, 0.0  ;;  %v1638_v59 = vmul.f32 %v1636_v55, %v1636_v55 }
0x121b   :  { %1640 = vadd.xlane.f32.xlu0 %v1639_v0 }
0x121c   :  { %v1642_v60 = vsel %vm69_vm0, %v1638_v59, 0.0 }
0x121d   :  { %1643 = vadd.xlane.f32.xlu1 %v1642_v60 }
0x12a8   :  { %v1641_v3 = vpop.xlane.xlu0 %1640 }
0x12a9   :  { %v1645_v4 = vmul.f32 0.015625, %v1641_v3 }
0x12aa   :  { %v1644_v5 = vpop.xlane.xlu1 %1643 }
0x12ab   :  { %v1647_v6 = vadd.f32 1e-12, %v1645_v4  ;;  %v1646_v8 = vmul.f32 0.015625, %v1644_v5 }
0x12ad   :  { %4032 = vrsqrt.f32 %v1647_v6  ;;  %v1648_v9 = vadd.f32 1e-12, %v1646_v8 }
0x12af   :  { %4034 = vrsqrt.f32 %v1648_v9 }
0x12b7   :  { %v4033_v10 = vpop.eup %4032 }
0x12b8   :  { %v1651_v12 = vmul.f32 %v4033_v10, %v1635_v29 }
0x12b9   :  { %v4035_v13 = vpop.eup %4034 }
0x12ba   :  { %v1659_v14 = vmul.f32 %v3377_v11, %v1651_v12  ;;  %v1652_v15 = vmul.f32 %v4035_v13, %v1636_v55 }
0x12bc   :  { %v1660_v18 = vmul.f32 %v3377_v11, %v1652_v15  ;;  %v4615_v19 = vadd.f32 %v3378_v17, %v1659_v14 }
0x12be   :  { %v4617_v20 = vadd.f32 %v3378_v17, %v1660_v18 }
0x12c0   :  { %v1669_v21 = vpack.c.bf16 %v4617_v20, %v4615_v19 }
0x12c2   :  { %3396 = vmatmul.mubr.msk.bf16.vlgmr.msra.gmra.mrb[44].mxu0 %vm69_vm0, %v1669_v21 }
0x12c3   :  { %3753 = vmatprep.mubr.msk.bf16.mxu0 %vm4121_vm1, %v4120_v40 }
0x1395   :  { %v1769_v25 = vpop.f32.mrb[44].mxu0 }
0x1396   :  { %v1770_v27 = vadd.f32 %v1769_v25, %v1685_v24  ;;  %v1771_v28 = vpop.f32.mrb[45].mxu0 }
0x1397   :  { %v1773_v30 = vpop.f32.mrb[46].mxu0  ;;  %v1772_v36 = vadd.f32 %v1771_v28, %v1689_v34 }
0x1398   :  { %v4628_v31 = vpack.c.bf16 %v1770_v27, %v1770_v27  ;;  %v1774_v58 = vadd.f32 %v1773_v30, %v1685_v24  ;;  %v1775_v32 = vpop.f32.mrb[47].mxu0 }
0x1399   :  { %v1776_v37 = vadd.f32 %v1775_v32, %v1689_v34  ;;  %v4641_v41 = vpack.c.bf16 %v1772_v36, %v1772_v36 }
0x139a   :  { %v4630_v33 = vpack.c.bf16 %v1774_v58, %v1774_v58  ;;  %1792 = vrot.lane.b32.xlu0 %v4628_v31, %s4122_s27 }
0x139b   :  { %v4644_v44 = vpack.c.bf16 %v1776_v37, %v1776_v37  ;;  %v1921_v42 = vsel %vm381_vm2, %v4641_v41, 0 }
0x139c   :  { %1841 = vrot.lane.b32.xlu1 %v4630_v33, %s4122_s27 }
0x139d   :  { %v1967_v45 = vsel %vm381_vm2, %v4644_v44, 0 }
0x140c   :  { %v1793_v43 = vpop.permute.xlu0 %1792 }
0x140d   :  { %v1798_v35 = vsel %vm245_vm3, %v1793_v43, 0 }
0x140e   :  { %v1842_v39 = vpop.permute.xlu1 %1841  ;;  %3752 = vmatpush3.bf16.xpose.msra.mxu0 %v1798_v35 }
0x140f   :  { %v1847_v38 = vsel %vm245_vm3, %v1842_v39, 0  ;;  %3763 = vmatprep.subr.bf16.mxu0 %v4120_v40 }
0x1410   :  { %3758 = vmatpush3.bf16.xpose.msra.mxu1 %v1847_v38 }
0x1411   :  { %3769 = vmatprep.subr.bf16.mxu1 %v4120_v40 }
0x1415   :  { %3754 = vmatmul.mubr.msk.bf16.vlgmr.msra.gmra.mrb[48].mxu0 %vm245_vm3, %v4628_v31 }
0x1416   :  { %3764 = vmatpush3.bf16.msra.mxu0 %v1921_v42  ;;  %3765 = vmatprep.mubr.msk.bf16.mxu0 %vm4121_vm1, %v4120_v40 }
0x1417   :  { %3760 = vmatmul.mubr.msk.bf16.vlgmr.msra.gmra.mrb[48].mxu1 %vm245_vm3, %v4630_v33  ;;  %3775 = vmatprep.subr.bf16.mxu0 %v4120_v40 }
0x1418   :  { %3770 = vmatpush3.bf16.msra.mxu1 %v1967_v45  ;;  %3771 = vmatprep.mubr.msk.bf16.mxu1 %vm4121_vm1, %v4120_v40 }
0x1419   :  { %3781 = vmatprep.subr.bf16.mxu1 %v4120_v40 }
0x14e8   :  { %v1834_v46 = vpop.f32.mrb[48].mxu0 }
0x14e9   :  { %v1889_v47 = vmul.f32 0.25, %v1834_v46  ;;  %v3755_v48 = vpop.f32.mrb[49].mxu0 }
0x14ea   :  { %v1837_v49 = vpop.f32.mrb[50].mxu0  ;;  %v1883_v50 = vpop.f32.mrb[48].mxu1 }
0x14eb   :  { %v1890_v26 = vmul.f32 0.25, %v1883_v50  ;;  %v3756_v51 = vpop.f32.mrb[51].mxu0  ;;  %v3761_v52 = vpop.f32.mrb[49].mxu1  ;;  %v1891_v29 = vadd.f32 %v1889_v47, %v4326_v7 }
0x14ec   :  { %v1886_v54 = vpop.f32.mrb[50].mxu1 }
0x14ed   :  { %v3762_v55 = vpop.f32.mrb[51].mxu1  ;;  %v1893_v57 = vsel %vm353_vm6, %v1891_v29, -inf  ;;  %v1892_v0 = vadd.f32 %v1890_v26, %v4331_v16 }
0x14ee   :  { %1894 = vmax.xlane.f32.xlu1 %v1893_v57 }
0x14ef   :  { %v1896_v59 = vsel %vm353_vm6, %v1892_v0, -inf }
0x14f0   :  { %1897 = vmax.xlane.f32.xlu0 %v1896_v59 }
0x14ff   :  { %2062 = vrot.lane.b32.xlu1 %v4630_v33, %s4124_s30 }
0x157b   :  { %v1895_v60 = vpop.xlane.xlu1 %1894 }
0x157c   :  { %v1899_v61 = vsub.f32 %v1891_v29, %v1895_v60 }
0x157d   :  { %v1898_v62 = vpop.xlane.xlu0 %1897 }
0x157e   :  { %v1901_v63 = vmul.f32 1.442695, %v1899_v61  ;;  %v1900_v1 = vsub.f32 %v1892_v0, %v1898_v62 }
0x157f   :  { %v2063_v4 = vpop.permute.xlu1 %2062 }
0x1580   :  { %4036 = vpow2.f32 %v1901_v63  ;;  %v1903_v56 = vmul.f32 1.442695, %v1900_v1  ;;  %v2068_v17 = vsel %vm245_vm3, %v2063_v4, 0  ;;  %v3969_v4 = vld [vmem:[%s4955_s6 + $0x28] sm:$0xff]  }
0x1582   :  { %4038 = vpow2.f32 %v1903_v56 }
0x158a   :  { %v4037_v2 = vpop.eup %4036 }
0x158b   :  { %v1905_v22 = vsel %vm353_vm6, %v4037_v2, 0.0 }
0x158c   :  { %v4039_v53 = vpop.eup %4038  ;;  %1906 = vadd.xlane.f32.xlu0 %v1905_v22 }
0x158d   :  { %v1908_v3 = vsel %vm353_vm6, %v4039_v53, 0.0 }
0x158e   :  { %1909 = vadd.xlane.f32.xlu1 %v1908_v3 }
0x159f   :  { %2010 = vrot.lane.b32.xlu1 %v4628_v31, %s4125_s0 }
0x15a2   :  { %2012 = vrot.lane.b32.xlu0 %v4628_v31, %s4124_s30 }
0x15a3   :  { %2060 = vrot.lane.b32.xlu1 %v4630_v33, %s4125_s0 }
0x1619   :  { %v1907_v5 = vpop.xlane.xlu0 %1906 }
0x161a   :  { %4040 = vrcp.f32 %v1907_v5 }
0x161b   :  { %v1910_v6 = vpop.xlane.xlu1 %1909 }
0x161c   :  { %4042 = vrcp.f32 %v1910_v6 }
0x161d   :  { %v2013_v11 = vpop.permute.xlu0 %2012 }
0x161e   :  { %v2018_v14 = vsel %vm245_vm3, %v2013_v11, 0 }
0x161f   :  { %v2011_v18 = vpop.permute.xlu1 %2010 }
0x1623   :  { %v2061_v21 = vpop.permute.xlu1 %2060 }
0x1624   :  { %v4041_v8 = vpop.eup %4040 }
0x1625   :  { %v1913_v9 = vmul.f32 %v4041_v8, %v4037_v2 }
0x1626   :  { %v4043_v10 = vpop.eup %4042 }
0x1627   :  { %v1914_v12 = vmul.f32 %v4043_v10, %v4039_v53  ;;  %v1915_v13 = vpack.c.bf16 %v1913_v9, %v1913_v9  ;;  %v3968_v9 = vld [vmem:[%s4955_s6 + $0x20] sm:$0xff]  }
0x1629   :  { %3766 = vmatmul.mubr.msk.bf16.vlgmr.msra.gmra.mrb[52].mxu0 %vm353_vm6, %v1915_v13  ;;  %v1916_v15 = vpack.c.bf16 %v1914_v12, %v1914_v12 }
0x162a   :  { %3776 = vmatpush3.bf16.xpose.msra.mxu0 %v2018_v14  ;;  %3777 = vmatprep.mubr.msk.bf16.mxu0 %vm4121_vm1, %v4120_v40 }
0x162b   :  { %3772 = vmatmul.mubr.msk.bf16.vlgmr.msra.gmra.mrb[52].mxu1 %vm353_vm6, %v1916_v15  ;;  %3787 = vmatprep.subr.bf16.mxu0 %v4120_v40 }
0x162c   :  { %3782 = vmatpush3.bf16.xpose.msra.mxu1 %v2068_v17  ;;  %3783 = vmatprep.mubr.msk.bf16.mxu1 %vm4121_vm1, %v4120_v40 }
0x162d   :  { %3793 = vmatprep.subr.bf16.mxu1 %v4120_v40 }
0x1631   :  { %3778 = vmatmul.mubr.msk.bf16.vlgmr.msra.gmra.mrb[56].mxu0 %vm245_vm3, %v2011_v18 }
0x1632   :  { %3789 = vmatprep.mubr.msk.bf16.mxu0 %vm4121_vm1, %v4120_v40 }
0x1633   :  { %3784 = vmatmul.mubr.msk.bf16.vlgmr.msra.gmra.mrb[56].mxu1 %vm245_vm3, %v2061_v21 }
0x1634   :  { %3795 = vmatprep.mubr.msk.bf16.mxu1 %vm4121_vm1, %v4120_v40 }
0x16fc   :  { %v4690_v23 = vpop.f32.mrb[52].mxu0 }
0x16fd   :  { %v3767_v24 = vpop.f32.mrb[53].mxu0 }
0x16fe   :  { %v1960_v25 = vpop.f32.mrb[54].mxu0  ;;  %v4692_v27 = vpop.f32.mrb[52].mxu1 }
0x16ff   :  { %v2009_v28 = vpack.c.bf16 %v4692_v27, %v4690_v23  ;;  %v3768_v30 = vpop.f32.mrb[55].mxu0  ;;  %v3773_v58 = vpop.f32.mrb[53].mxu1 }
0x1700   :  { %v2006_v32 = vpop.f32.mrb[54].mxu1 }
0x1701   :  { %v3774_v34 = vpop.f32.mrb[55].mxu1 }
0x1704   :  { %v2054_v43 = vpop.f32.mrb[56].mxu0 }
0x1705   :  { %v2110_v36 = vmul.f32 0.25, %v2054_v43  ;;  %v3779_v35 = vpop.f32.mrb[57].mxu0 }
0x1706   :  { %v2057_v39 = vpop.f32.mrb[58].mxu0  ;;  %v2104_v37 = vpop.f32.mrb[56].mxu1 }
0x1707   :  { %v2111_v38 = vmul.f32 0.25, %v2104_v37  ;;  %v3780_v42 = vpop.f32.mrb[59].mxu0  ;;  %v3785_v45 = vpop.f32.mrb[57].mxu1  ;;  %v2112_v46 = vadd.f32 %v2110_v36, %v4326_v7 }
0x1708   :  { %v2107_v47 = vpop.f32.mrb[58].mxu1 }
0x1709   :  { %v3786_v48 = vpop.f32.mrb[59].mxu1  ;;  %v2114_v49 = vsel %vm353_vm6, %v2112_v46, -inf  ;;  %v2113_v50 = vadd.f32 %v2111_v38, %v4331_v16 }
0x170a   :  { %2115 = vmax.xlane.f32.xlu0 %v2114_v49 }
0x170b   :  { %v2117_v26 = vsel %vm353_vm6, %v2113_v50, -inf }
0x170c   :  { %2118 = vmax.xlane.f32.xlu1 %v2117_v26 }
0x171d   :  { %2188 = vrot.lane.b32.xlu1 %v4644_v44, %s4125_s0 }
0x1721   :  { %2339 = vrot.lane.b32.xlu1 %v4628_v31, %s4126_s19 }
0x1725   :  { %2389 = vrot.lane.b32.xlu1 %v4630_v33, %s4126_s19  ;;  %s4980_s19 = smov 80  }
0x1729   :  { %2387 = vrot.lane.b32.xlu1 %v4630_v33, %s4127_s1 }
0x1797   :  { %v2116_v51 = vpop.xlane.xlu0 %2115 }
0x1798   :  { %v2120_v52 = vsub.f32 %v2112_v46, %v2116_v51 }
0x1799   :  { %v2119_v29 = vpop.xlane.xlu1 %2118 }
0x179a   :  { %v2122_v54 = vmul.f32 1.442695, %v2120_v52  ;;  %v2121_v55 = vsub.f32 %v2113_v50, %v2119_v29 }
0x179c   :  { %4044 = vpow2.f32 %v2122_v54  ;;  %v2124_v57 = vmul.f32 1.442695, %v2121_v55 }
0x179d   :  { %v2189_v0 = vpop.permute.xlu1 %2188 }
0x179e   :  { %4046 = vpow2.f32 %v2124_v57  ;;  %v2194_v59 = vsel %vm381_vm2, %v2189_v0, 0 }
0x179f   :  { %3794 = vmatpush3.bf16.msra.mxu1 %v2194_v59 }
0x17a0   :  { %3805 = vmatprep.subr.bf16.mxu1 %v4120_v40 }
0x17a1   :  { %v2340_v11 = vpop.permute.xlu1 %2339 }
0x17a5   :  { %v2390_v12 = vpop.permute.xlu1 %2389 }
0x17a6   :  { %v4045_v60 = vpop.eup %4044  ;;  %v2395_v13 = vsel %vm245_vm3, %v2390_v12, 0 }
0x17a7   :  { %v2126_v61 = vsel %vm353_vm6, %v4045_v60, 0.0 }
0x17a8   :  { %v4047_v62 = vpop.eup %4046  ;;  %2127 = vadd.xlane.f32.xlu0 %v2126_v61 }
0x17a9   :  { %v2129_v63 = vsel %vm353_vm6, %v4047_v62, 0.0  ;;  %v2388_v14 = vpop.permute.xlu1 %2387 }
0x17ac   :  { %2130 = vadd.xlane.f32.xlu0 %v2129_v63 }
0x17c2   :  { %2139 = vrot.lane.b32.xlu0 %v4641_v41, %s4125_s0 }
0x17c6   :  { %2337 = vrot.lane.b32.xlu0 %v4628_v31, %s4127_s1 }
0x1835   :  { %v2128_v1 = vpop.xlane.xlu0 %2127 }
0x1836   :  { %4048 = vrcp.f32 %v2128_v1 }
0x1839   :  { %v2131_v56 = vpop.xlane.xlu0 %2130 }
0x183a   :  { %4050 = vrcp.f32 %v2131_v56 }
0x183d   :  { %v2140_v2 = vpop.permute.xlu0 %2139 }
0x183e   :  { %v2145_v22 = vsel %vm381_vm2, %v2140_v2, 0 }
0x183f   :  { %3788 = vmatpush3.bf16.msra.mxu0 %v2145_v22 }
0x1840   :  { %v4049_v53 = vpop.eup %4048  ;;  %3799 = vmatprep.subr.bf16.mxu0 %v4120_v40 }
0x1841   :  { %v2134_v3 = vmul.f32 %v4049_v53, %v4045_v60  ;;  %v2338_v34 = vpop.permute.xlu0 %2337 }
0x1843   :  { %v2136_v5 = vpack.c.bf16 %v2134_v3, %v2134_v3 }
0x1844   :  { %v4051_v6 = vpop.eup %4050 }
0x1845   :  { %v2135_v8 = vmul.f32 %v4051_v6, %v4047_v62  ;;  %3790 = vmatmul.mubr.msk.bf16.vlgmr.msra.gmra.mrb[60].mxu0 %vm353_vm6, %v2136_v5 }
0x1846   :  { %3800 = vmatpush3.bf16.msra.mxu0 %v3969_v4  ;;  %3801 = vmatprep.mubr.msk.bf16.mxu0 %vm4121_vm1, %v4120_v40 }
0x1847   :  { %v2137_v10 = vpack.c.bf16 %v2135_v8, %v2135_v8  ;;  %3811 = vmatprep.subr.bf16.mxu0 %v4120_v40 }
0x1849   :  { %3796 = vmatmul.mubr.msk.bf16.vlgmr.msra.gmra.mrb[60].mxu1 %vm353_vm6, %v2137_v10 }
0x184a   :  { %3806 = vmatpush3.bf16.msra.mxu1 %v3968_v9  ;;  %3807 = vmatprep.mubr.msk.bf16.mxu1 %vm4121_vm1, %v4120_v40 }
0x184b   :  { %3817 = vmatprep.subr.bf16.mxu1 %v4120_v40 }
0x1851   :  { %3808 = vmatmul.mubr.msk.bf16.vlgmr.msra.gmra.mrb[64].mxu1 %vm245_vm3, %v2009_v28  ;;  %v2345_v28 = vsel %vm245_vm3, %v2340_v11, 0 }
0x1852   :  { %3819 = vmatprep.mubr.msk.bf16.mxu1 %vm4121_vm1, %v4120_v40 }
0x1853   :  { %3818 = vmatpush3.bf16.xpose.msra.mxu1 %v2395_v13 }
0x1854   :  { %3829 = vmatprep.subr.bf16.mxu1 %v4120_v40 }
0x185a   :  { %3820 = vmatmul.mubr.msk.bf16.vlgmr.msra.gmra.mrb[68].mxu1 %vm245_vm3, %v2388_v14 }
0x185b   :  { %3831 = vmatprep.mubr.msk.bf16.mxu1 %vm4121_vm1, %v4120_v40 }
0x1918   :  { %v2181_v15 = vpop.f32.mrb[60].mxu0 }
0x1919   :  { %v3791_v17 = vpop.f32.mrb[61].mxu0 }
0x191a   :  { %v2184_v18 = vpop.f32.mrb[62].mxu0 }
0x191b   :  { %v3792_v21 = vpop.f32.mrb[63].mxu0 }
0x191c   :  { %v2230_v23 = vpop.f32.mrb[60].mxu1 }
0x191d   :  { %v2236_v24 = vpack.c.bf16 %v2230_v23, %v2181_v15  ;;  %v3797_v25 = vpop.f32.mrb[61].mxu1 }
0x191e   :  { %v2233_v27 = vpop.f32.mrb[62].mxu1 }
0x191f   :  { %v3798_v30 = vpop.f32.mrb[63].mxu1  ;;  %3802 = vmatmul.mubr.msk.bf16.vlgmr.msra.gmra.mrb[64].mxu0 %vm245_vm3, %v2236_v24  ;;  %v3970_v27 = vld [vmem:[%s4955_s6 + $0x30] sm:$0xff]  }
0x1920   :  { %3812 = vmatpush3.bf16.xpose.msra.mxu0 %v2345_v28  ;;  %3813 = vmatprep.mubr.msk.bf16.mxu0 %vm4121_vm1, %v4120_v40 }
0x1921   :  { %3823 = vmatprep.subr.bf16.mxu0 %v4120_v40 }
0x1924   :  { %v2330_v58 = vpop.f32.mrb[64].mxu1 }
0x1925   :  { %v3809_v32 = vpop.f32.mrb[65].mxu1 }
0x1926   :  { %v2333_v43 = vpop.f32.mrb[66].mxu1 }
0x1927   :  { %v3810_v36 = vpop.f32.mrb[67].mxu1  ;;  %3814 = vmatmul.mubr.msk.bf16.vlgmr.msra.gmra.mrb[68].mxu0 %vm245_vm3, %v2338_v34 }
0x1928   :  { %3825 = vmatprep.mubr.msk.bf16.mxu0 %vm4121_vm1, %v4120_v40 }
0x192d   :  { %v2431_v35 = vpop.f32.mrb[68].mxu1 }
0x192e   :  { %v2438_v39 = vmul.f32 0.25, %v2431_v35  ;;  %v3821_v37 = vpop.f32.mrb[69].mxu1 }
0x192f   :  { %v2434_v38 = vpop.f32.mrb[70].mxu1 }
0x1930   :  { %v3822_v42 = vpop.f32.mrb[71].mxu1  ;;  %v2440_v45 = vadd.f32 %v2438_v39, %v4331_v16 }
0x1932   :  { %v2444_v46 = vsel %vm353_vm6, %v2440_v45, -inf }
0x1933   :  { %2445 = vmax.xlane.f32.xlu1 %v2444_v46 }
0x1944   :  { %2513 = vrot.lane.b32.xlu1 %v4644_v44, %s4127_s1 }
0x1948   :  { %2616 = vrot.lane.b32.xlu1 %v4628_v31, %s4128_s2 }
0x194c   :  { %2666 = vrot.lane.b32.xlu1 %v4630_v33, %s4128_s2 }
0x1950   :  { %2664 = vrot.lane.b32.xlu1 %v4630_v33, %s4980_s19 }
0x19c0   :  { %v2446_v47 = vpop.xlane.xlu1 %2445 }
0x19c1   :  { %v2448_v50 = vsub.f32 %v2440_v45, %v2446_v47 }
0x19c3   :  { %v2451_v26 = vmul.f32 1.442695, %v2448_v50 }
0x19c4   :  { %v2514_v48 = vpop.permute.xlu1 %2513 }
0x19c5   :  { %v2519_v49 = vsel %vm381_vm2, %v2514_v48, 0  ;;  %4052 = vpow2.f32 %v2451_v26 }
0x19c6   :  { %3830 = vmatpush3.bf16.msra.mxu1 %v2519_v49 }
0x19c7   :  { %3841 = vmatprep.subr.bf16.mxu1 %v4120_v40 }
0x19c8   :  { %v2617_v9 = vpop.permute.xlu1 %2616 }
0x19c9   :  { %v2622_v11 = vsel %vm245_vm3, %v2617_v9, 0 }
0x19cc   :  { %v2667_v35 = vpop.permute.xlu1 %2666 }
0x19cd   :  { %v2672_v45 = vsel %vm245_vm3, %v2667_v35, 0 }
0x19cf   :  { %v4053_v1 = vpop.eup %4052 }
0x19d0   :  { %v2456_v56 = vsel %vm353_vm6, %v4053_v1, 0.0 }
0x19f2   :  { %v2280_v51 = vpop.f32.mrb[64].mxu0 }
0x19f3   :  { %v4763_v52 = vadd.f32 %v2330_v58, %v2280_v51  ;;  %v3803_v29 = vpop.f32.mrb[65].mxu0 }
0x19f4   :  { %v2283_v54 = vpop.f32.mrb[66].mxu0 }
0x19f5   :  { %v4765_v55 = vadd.f32 %v2333_v43, %v2283_v54  ;;  %v3804_v57 = vpop.f32.mrb[67].mxu0 }
0x19fa   :  { %v2381_v0 = vpop.f32.mrb[68].mxu0 }
0x19fb   :  { %v2437_v33 = vmul.f32 0.25, %v2381_v0  ;;  %v3815_v59 = vpop.f32.mrb[69].mxu0 }
0x19fc   :  { %v2384_v60 = vpop.f32.mrb[70].mxu0 }
0x19fd   :  { %v3816_v61 = vpop.f32.mrb[71].mxu0  ;;  %v2439_v62 = vadd.f32 %v2437_v33, %v4326_v7 }
0x19ff   :  { %v2441_v63 = vsel %vm353_vm6, %v2439_v62, -inf }
0x1a00   :  { %2442 = vmax.xlane.f32.xlu0 %v2441_v63 }
0x1a04   :  { %2457 = vadd.xlane.f32.xlu0 %v2456_v56 }
0x1a8d   :  { %v2443_v2 = vpop.xlane.xlu0 %2442 }
0x1a8e   :  { %v2447_v22 = vsub.f32 %v2439_v62, %v2443_v2 }
0x1a90   :  { %v2449_v53 = vmul.f32 1.442695, %v2447_v22 }
0x1a91   :  { %v2458_v3 = vpop.xlane.xlu0 %2457 }
0x1a92   :  { %4054 = vpow2.f32 %v2449_v53 }
0x1a93   :  { %4056 = vrcp.f32 %v2458_v3 }
0x1a9c   :  { %v4055_v4 = vpop.eup %4054 }
0x1a9d   :  { %v4057_v5 = vpop.eup %4056  ;;  %v2453_v6 = vsel %vm353_vm6, %v4055_v4, 0.0 }
0x1a9e   :  { %v2462_v8 = vmul.f32 %v4057_v5, %v4053_v1  ;;  %2454 = vadd.xlane.f32.xlu0 %v2453_v6 }
0x1aa0   :  { %v2464_v10 = vpack.c.bf16 %v2462_v8, %v2462_v8 }
0x1aa2   :  { %3832 = vmatmul.mubr.msk.bf16.vlgmr.msra.gmra.mrb[72].mxu1 %vm353_vm6, %v2464_v10 }
0x1aa3   :  { %3842 = vmatpush3.bf16.xpose.msra.mxu1 %v2622_v11  ;;  %3843 = vmatprep.mubr.msk.bf16.mxu1 %vm4121_vm1, %v4120_v40 }
0x1aa4   :  { %3853 = vmatprep.subr.bf16.mxu1 %v4120_v40 }
0x1ab4   :  { %2465 = vrot.lane.b32.xlu0 %v4641_v41, %s4127_s1 }
0x1ab8   :  { %2614 = vrot.lane.b32.xlu0 %v4628_v31, %s4980_s19 }
0x1b2b   :  { %v2455_v12 = vpop.xlane.xlu0 %2454 }
0x1b2c   :  { %4058 = vrcp.f32 %v2455_v12 }
0x1b2f   :  { %v2466_v13 = vpop.permute.xlu0 %2465 }
0x1b30   :  { %v2471_v14 = vsel %vm381_vm2, %v2466_v13, 0  ;;  %v3971_v13 = vld [vmem:[%s4955_s6 + $0x38] sm:$0xff]  }
0x1b31   :  { %3824 = vmatpush3.bf16.msra.mxu0 %v2471_v14 }
0x1b32   :  { %3835 = vmatprep.subr.bf16.mxu0 %v4120_v40 }
0x1b33   :  { %v2615_v15 = vpop.permute.xlu0 %2614 }
0x1b34   :  { %3844 = vmatmul.mubr.msk.bf16.vlgmr.msra.gmra.mrb[76].mxu1 %vm245_vm3, %v2615_v15 }
0x1b35   :  { %3855 = vmatprep.mubr.msk.bf16.mxu1 %vm4121_vm1, %v4120_v40 }
0x1b36   :  { %v4059_v17 = vpop.eup %4058 }
0x1b37   :  { %v2461_v18 = vmul.f32 %v4059_v17, %v4055_v4 }
0x1b39   :  { %v2463_v21 = vpack.c.bf16 %v2461_v18, %v2461_v18 }
0x1b3b   :  { %3826 = vmatmul.mubr.msk.bf16.vlgmr.msra.gmra.mrb[72].mxu0 %vm353_vm6, %v2463_v21 }
0x1b3c   :  { %3837 = vmatprep.mubr.msk.bf16.mxu0 %vm4121_vm1, %v4120_v40  ;;  %3836 = vmatpush3.bf16.msra.mxu0 %v3970_v27 }
0x1b3d   :  { %3847 = vmatprep.subr.bf16.mxu0 %v4120_v40 }
0x1b75   :  { %v2555_v31 = vpop.f32.mrb[72].mxu1 }
0x1b76   :  { %v3833_v23 = vpop.f32.mrb[73].mxu1 }
0x1b77   :  { %v2558_v24 = vpop.f32.mrb[74].mxu1 }
0x1b78   :  { %v3834_v25 = vpop.f32.mrb[75].mxu1 }
0x1c07   :  { %v2658_v28 = vpop.f32.mrb[76].mxu1 }
0x1c08   :  { %v2714_v30 = vmul.f32 0.25, %v2658_v28  ;;  %v3845_v58 = vpop.f32.mrb[77].mxu1  ;;  %v3430_v28 = vld [vmem:[%s4956_s7 + $0x1] ss:$0 sm:$0xff] }
0x1c09   :  { %v2661_v32 = vpop.f32.mrb[78].mxu1 }
0x1c0a   :  { %v3846_v34 = vpop.f32.mrb[79].mxu1  ;;  %v2716_v43 = vadd.f32 %v2714_v30, %v4326_v7  ;;  %v2665_v7 = vpop.permute.xlu1 %2664 }
0x1c0c   :  { %v2718_v36 = vsel %vm353_vm6, %v2716_v43, -inf }
0x1c0d   :  { %2719 = vmax.xlane.f32.xlu0 %v2718_v36 }
0x1c0e   :  { %v2507_v39 = vpop.f32.mrb[72].mxu0 }
0x1c0f   :  { %v2561_v37 = vpack.c.bf16 %v2555_v31, %v2507_v39  ;;  %v3827_v38 = vpop.f32.mrb[73].mxu0 }
0x1c10   :  { %v2510_v42 = vpop.f32.mrb[74].mxu0 }
0x1c11   :  { %v3828_v46 = vpop.f32.mrb[75].mxu0  ;;  %3838 = vmatmul.mubr.msk.bf16.vlgmr.msra.gmra.mrb[76].mxu0 %vm245_vm3, %v2561_v37 }
0x1c12   :  { %3848 = vmatpush3.bf16.xpose.msra.mxu0 %v2672_v45  ;;  %3849 = vmatprep.mubr.msk.bf16.mxu0 %vm4121_vm1, %v4120_v40 }
0x1c13   :  { %3859 = vmatprep.subr.bf16.mxu0 %v4120_v40 }
0x1c19   :  { %3850 = vmatmul.mubr.msk.bf16.vlgmr.msra.gmra.mrb[80].mxu0 %vm245_vm3, %v2665_v7 }
0x1c1a   :  { %3861 = vmatprep.mubr.msk.bf16.mxu0 %vm4121_vm1, %v4120_v40 }
0x1c9a   :  { %v2720_v47 = vpop.xlane.xlu0 %2719 }
0x1c9b   :  { %v2724_v48 = vsub.f32 %v2716_v43, %v2720_v47 }
0x1c9d   :  { %v2726_v49 = vmul.f32 1.442695, %v2724_v48 }
0x1c9f   :  { %4060 = vpow2.f32 %v2726_v49 }
0x1ca9   :  { %v4061_v50 = vpop.eup %4060 }
0x1caa   :  { %v2730_v26 = vsel %vm353_vm6, %v4061_v50, 0.0 }
0x1cab   :  { %2731 = vadd.xlane.f32.xlu0 %v2730_v26 }
0x1ce4   :  { %v2605_v51 = vpop.f32.mrb[76].mxu0 }
0x1ce5   :  { %v2612_v29 = vadd.f32 %v2605_v51, %v4763_v52  ;;  %v3839_v54 = vpop.f32.mrb[77].mxu0 }
0x1ce6   :  { %v2608_v57 = vpop.f32.mrb[78].mxu0  ;;  %v3974_v54 = vld [vmem:[%s4959_s10 + $0x30] sm:$0xff]  }
0x1ce7   :  { %v2613_v0 = vadd.f32 %v2608_v57, %v4765_v55  ;;  %v3840_v33 = vpop.f32.mrb[79].mxu0  ;;  %v3975_v57 = vld [vmem:[%s4959_s10 + $0x38] sm:$0xff]  }
0x1cec   :  { %v2708_v59 = vpop.f32.mrb[80].mxu0 }
0x1ced   :  { %v2715_v60 = vmul.f32 0.25, %v2708_v59  ;;  %v3851_v61 = vpop.f32.mrb[81].mxu0 }
0x1cee   :  { %v2711_v62 = vpop.f32.mrb[82].mxu0 }
0x1cef   :  { %v3852_v63 = vpop.f32.mrb[83].mxu0  ;;  %v2717_v1 = vadd.f32 %v2715_v60, %v4331_v16 }
0x1cf1   :  { %v2721_v56 = vsel %vm353_vm6, %v2717_v1, -inf }
0x1cf2   :  { %2722 = vmax.xlane.f32.xlu1 %v2721_v56 }
0x1d03   :  { %2790 = vrot.lane.b32.xlu1 %v4644_v44, %s4980_s19 }
0x1d38   :  { %v2732_v16 = vpop.xlane.xlu0 %2731 }
0x1d7f   :  { %v2723_v2 = vpop.xlane.xlu1 %2722 }
0x1d80   :  { %v2725_v52 = vsub.f32 %v2717_v1, %v2723_v2  ;;  %v3433_v1 = vld [vmem:[%s4957_s8 + $0x1] ss:$0 sm:$0xff] }
0x1d82   :  { %v2728_v22 = vmul.f32 1.442695, %v2725_v52 }
0x1d83   :  { %v2791_v53 = vpop.permute.xlu1 %2790 }
0x1d84   :  { %4062 = vpow2.f32 %v2728_v22  ;;  %v2796_v55 = vsel %vm381_vm2, %v2791_v53, 0  ;;  %v3434_v53 = vld [vmem:[%s4958_s9 + $0x1] ss:$0 sm:$0xff] }
0x1d85   :  { %3860 = vmatpush3.bf16.msra.mxu0 %v2796_v55  ;;  %4064 = vrcp.f32 %v2732_v16 }
0x1d86   :  { %3871 = vmatprep.subr.bf16.mxu0 %v4120_v40 }
0x1d8e   :  { %v4063_v3 = vpop.eup %4062 }
0x1d8f   :  { %v2733_v4 = vsel %vm353_vm6, %v4063_v3, 0.0  ;;  %v4065_v44 = vpop.eup %4064 }
0x1d90   :  { %2734 = vadd.xlane.f32.xlu0 %v2733_v4  ;;  %v2738_v6 = vmul.f32 %v4065_v44, %v4061_v50  ;;  %v3976_v44 = vld [vmem:[%s4961_s12 + $0x40] sm:$0xff]  }
0x1d92   :  { %v2740_v10 = vpack.c.bf16 %v2738_v6, %v2738_v6  ;;  %v3978_v6 = vld [vmem:[%s4961_s12 + $0x50] sm:$0xff]  }
0x1da6   :  { %2742 = vrot.lane.b32.xlu0 %v4641_v41, %s4980_s19 }
0x1e1d   :  { %v2735_v5 = vpop.xlane.xlu0 %2734 }
0x1e1e   :  { %4066 = vrcp.f32 %v2735_v5  ;;  %v3977_v5 = vld [vmem:[%s4961_s12 + $0x48] sm:$0xff]  }
0x1e21   :  { %v2743_v8 = vpop.permute.xlu0 %2742 }
0x1e22   :  { %v2748_v9 = vsel %vm381_vm2, %v2743_v8, 0  ;;  %v3979_v8 = vld [vmem:[%s4961_s12 + $0x58] sm:$0xff]  }
0x1e23   :  { %3854 = vmatpush3.bf16.msra.mxu1 %v2748_v9  ;;  %v3980_v9 = vld [vmem:[%s4961_s12 + $0x60] sm:$0xff]  }
0x1e24   :  { %3865 = vmatprep.subr.bf16.mxu1 %v4120_v40 }
0x1e26   :  { %3856 = vmatmul.mubr.msk.bf16.vlgmr.msra.gmra.mrb[80].mxu1 %vm353_vm6, %v2740_v10  ;;  %v3981_v10 = vld [vmem:[%s4961_s12 + $0x68] sm:$0xff]  }
0x1e27   :  { %3867 = vmatprep.mubr.msk.bf16.mxu1 %vm4121_vm1, %v4120_v40  ;;  %3866 = vmatpush3.bf16.msra.mxu1 %v3971_v13 }
0x1e28   :  { %v4067_v11 = vpop.eup %4066  ;;  %3883 = vmatprep.subr.bf16.mxu1 %v4120_v40 }
0x1e29   :  { %v2739_v41 = vmul.f32 %v4067_v11, %v4063_v3  ;;  %v3982_v11 = vld [vmem:[%s4961_s12 + $0x70] sm:$0xff]  }
0x1e2b   :  { %v2741_v12 = vpack.c.bf16 %v2739_v41, %v2739_v41  ;;  %v3983_v41 = vld [vmem:[%s4961_s12 + $0x78] sm:$0xff]  }
0x1e2d   :  { %3862 = vmatmul.mubr.msk.bf16.vlgmr.msra.gmra.mrb[84].mxu0 %vm353_vm6, %v2741_v12  ;;  %v3444_v12 = vld [vmem:[%s4979_s20 + $0x1] ss:$0 sm:$0xff] }
0x1e2e   :  { %3879 = vmatprep.mubr.msk.bf16.mxu0 %vm4121_vm1, %v4120_v40 }
0x1ef9   :  { %v2784_v14 = vpop.f32.mrb[80].mxu1 }
0x1efa   :  { %v3857_v15 = vpop.f32.mrb[81].mxu1 }
0x1efb   :  { %v2787_v17 = vpop.f32.mrb[82].mxu1 }
0x1efc   :  { %v3858_v18 = vpop.f32.mrb[83].mxu1 }
0x1f00   :  { %v2832_v21 = vpop.f32.mrb[84].mxu0 }
0x1f01   :  { %v2838_v31 = vpack.c.bf16 %v2832_v21, %v2784_v14  ;;  %v3863_v23 = vpop.f32.mrb[85].mxu0 }
0x1f02   :  { %v2835_v24 = vpop.f32.mrb[86].mxu0 }
0x1f03   :  { %v3864_v25 = vpop.f32.mrb[87].mxu0  ;;  %3868 = vmatmul.mubr.msk.bf16.vlgmr.msra.gmra.mrb[84].mxu1 %vm245_vm3, %v2838_v31 }
0x1f04   :  { %3899 = vmatprep.mubr.msk.bf16.mxu1 %vm4121_vm1, %v4120_v40  ;;  %3884 = vmatpush3.bf16.msra.mxu1 %v3976_v44 }
0x1f05   :  { %3885 = vmatprep.subr.bf16.mxu1 %v4120_v40 }
0x1f08   :  { %3886 = vmatpush3.bf16.msra.mxu1 %v3977_v5 }
0x1f09   :  { %3887 = vmatprep.subr.bf16.mxu1 %v4120_v40 }
0x1f0c   :  { %3888 = vmatpush3.bf16.msra.mxu1 %v3978_v6 }
0x1f0d   :  { %3889 = vmatprep.subr.bf16.mxu1 %v4120_v40 }
0x1f10   :  { %3890 = vmatpush3.bf16.msra.mxu1 %v3979_v8  ;;  %v3478_v8 = vld [vmem:[%s4963_s14 + $0x1] ss:$0 sm:$0xff] }
0x1f11   :  { %3891 = vmatprep.subr.bf16.mxu1 %v4120_v40 }
0x1f14   :  { %3892 = vmatpush3.bf16.msra.mxu1 %v3980_v9 }
0x1f15   :  { %3893 = vmatprep.subr.bf16.mxu1 %v4120_v40 }
0x1f18   :  { %3894 = vmatpush3.bf16.msra.mxu1 %v3981_v10 }
0x1f19   :  { %3895 = vmatprep.subr.bf16.mxu1 %v4120_v40 }
0x1f1c   :  { %3896 = vmatpush3.bf16.msra.mxu1 %v3982_v11 }
0x1f1d   :  { %3897 = vmatprep.subr.bf16.mxu1 %v4120_v40 }
0x1f20   :  { %3898 = vmatpush3.bf16.msra.mxu1 %v3983_v41 }
0x1fd6   :  { %v2882_v27 = vpop.f32.mrb[84].mxu1 }
0x1fd7   :  { %v2889_v30 = vadd.f32 %v2882_v27, %v2612_v29  ;;  %v3869_v58 = vpop.f32.mrb[85].mxu1  ;;  %v3973_v29 = vld [vmem:[%s4959_s10 + $0x28] sm:$0xff]  }
0x1fd8   :  { %v2885_v32 = vpop.f32.mrb[86].mxu1 }
0x1fd9   :  { %v2899_v34 = vadd.f32 %v3430_v28, %v2889_v30  ;;  %v2890_v43 = vadd.f32 %v2885_v32, %v2613_v0  ;;  %v3870_v36 = vpop.f32.mrb[87].mxu1 }
0x1fdb   :  { %v2900_v35 = vadd.f32 %v3430_v28, %v2890_v43  ;;  %v2901_v39 = vadd.f32 %v2899_v34, %v4615_v19 }
0x1fdd   :  { %v2907_v37 = vsel %vm69_vm0, %v2901_v39, 0.0  ;;  %v2902_v38 = vadd.f32 %v2900_v35, %v4617_v20  ;;  %v3972_v20 = vld [vmem:[%s4959_s10 + $0x20] sm:$0xff]  }
0x1fde   :  { %2908 = vadd.xlane.f32.xlu1 %v2907_v37  ;;  %3872 = vmatpush3.bf16.msra.mxu0 %v3972_v20 }
0x1fdf   :  { %v2910_v42 = vsel %vm69_vm0, %v2902_v38, 0.0  ;;  %3873 = vmatprep.subr.bf16.mxu0 %v4120_v40 }
0x1fe0   :  { %2911 = vadd.xlane.f32.xlu0 %v2910_v42 }
0x1fe2   :  { %3874 = vmatpush3.bf16.msra.mxu0 %v3973_v29 }
0x1fe3   :  { %3875 = vmatprep.subr.bf16.mxu0 %v4120_v40 }
0x1fe6   :  { %3876 = vmatpush3.bf16.msra.mxu0 %v3974_v54 }
0x1fe7   :  { %3877 = vmatprep.subr.bf16.mxu0 %v4120_v40 }
0x1fea   :  { %3878 = vmatpush3.bf16.msra.mxu0 %v3975_v57 }
0x1feb   :  { %3903 = vmatprep.subr.bf16.mxu0 %v4120_v40 }
0x206b   :  { %v2909_v45 = vpop.xlane.xlu1 %2908 }
0x206c   :  { %v2913_v46 = vmul.f32 0.015625, %v2909_v45 }
0x206d   :  { %v2912_v7 = vpop.xlane.xlu0 %2911 }
0x206e   :  { %v2915_v47 = vsub.f32 %v2901_v39, %v2913_v46  ;;  %v2914_v48 = vmul.f32 0.015625, %v2912_v7  ;;  %v3467_v7 = vld [vmem:[%s4962_s13 + $0x1] ss:$0 sm:$0xff] }
0x2070   :  { %v2916_v49 = vsub.f32 %v2902_v38, %v2914_v48  ;;  %v2917_v50 = vmul.f32 %v2915_v47, %v2915_v47 }
0x2072   :  { %v2919_v26 = vsel %vm69_vm0, %v2917_v50, 0.0  ;;  %v2918_v51 = vmul.f32 %v2916_v49, %v2916_v49 }
0x2073   :  { %2920 = vadd.xlane.f32.xlu0 %v2919_v26 }
0x2074   :  { %v2922_v19 = vsel %vm69_vm0, %v2918_v51, 0.0 }
0x2075   :  { %2923 = vadd.xlane.f32.xlu1 %v2922_v19 }
0x2100   :  { %v2921_v0 = vpop.xlane.xlu0 %2920 }
0x2101   :  { %v2925_v33 = vmul.f32 0.015625, %v2921_v0 }
0x2102   :  { %v2924_v59 = vpop.xlane.xlu1 %2923 }
0x2103   :  { %v2927_v60 = vadd.f32 1e-12, %v2925_v33  ;;  %v2926_v61 = vmul.f32 0.015625, %v2924_v59 }
0x2105   :  { %4068 = vrsqrt.f32 %v2927_v60  ;;  %v2928_v62 = vadd.f32 1e-12, %v2926_v61 }
0x2107   :  { %4070 = vrsqrt.f32 %v2928_v62 }
0x210f   :  { %v4069_v63 = vpop.eup %4068 }
0x2110   :  { %v2931_v56 = vmul.f32 %v4069_v63, %v2915_v47 }
0x2111   :  { %v4071_v2 = vpop.eup %4070 }
0x2112   :  { %v2939_v52 = vmul.f32 %v3433_v1, %v2931_v56  ;;  %v2932_v22 = vmul.f32 %v4071_v2, %v2916_v49  ;;  %v3984_v2 = vld [vmem:[%s4965_s16] sm:$0xff]  }
0x2114   :  { %v2940_v55 = vmul.f32 %v3433_v1, %v2932_v22  ;;  %v4860_v3 = vadd.f32 %v3434_v53, %v2939_v52  ;;  %v3985_v52 = vld [vmem:[%s4965_s16 + $0x8] sm:$0xff]   ;;  %v3986_v22 = vld [vmem:[%s4965_s16 + $0x10] sm:$0xff]  }
0x2116   :  { %v4862_v4 = vadd.f32 %v3434_v53, %v2940_v55  ;;  %v3987_v53 = vld [vmem:[%s4965_s16 + $0x18] sm:$0xff]  }
0x2118   :  { %v2949_v16 = vpack.c.bf16 %v4862_v4, %v4860_v3 }
0x211a   :  { %3880 = vmatmul.mubr.msk.bf16.vlgmr.msra.gmra.mrb[88].mxu0 %vm69_vm0, %v2949_v16 }
0x211b   :  { %3911 = vmatprep.mubr.msk.bf16.mxu0 %vm4121_vm1, %v4120_v40  ;;  %3904 = vmatpush3.bf16.msra.mxu0 %v3984_v2 }
0x211c   :  { %3905 = vmatprep.subr.bf16.mxu0 %v4120_v40 }
0x211f   :  { %3906 = vmatpush3.bf16.msra.mxu0 %v3985_v52 }
0x2120   :  { %3907 = vmatprep.subr.bf16.mxu0 %v4120_v40 }
0x2123   :  { %3908 = vmatpush3.bf16.msra.mxu0 %v3986_v22 }
0x2124   :  { %3909 = vmatprep.subr.bf16.mxu0 %v4120_v40  ;;  %v3479_v40 = vld [vmem:[%s4964_s15 + $0x1] ss:$0 sm:$0xff]  ;;  %s4130_s15 = smov [#allocation4]  }
0x2125   :  { %s3315_s2 = sshll.u32 %s4130_s15, 4  ;;  %s3316_s2 = int_to_ptr.vmem [resolvable:$true] %s3315_s2 }
0x2126   :  { %s4092_s24 = scalar_lea.vmem %s3316_s2, 32  ;;  %p4097_p6 = scmp.lt.s32.totalorder %s3316_s2, %s3316_s2 }
0x2127   :  { %3910 = vmatpush3.bf16.msra.mxu0 %v3987_v53  ;;  %p4093_p5 = scmp.ne.s32.totalorder %s3316_s2, %s4092_s24  ;;  %p4098_p7 = scmp.lt.s32.totalorder %s4092_s24, %s4092_s24 }
0x2129   :  { %p4099_p8 = por %p4098_p7, %p4097_p6 }
0x212b   :  { %p4100_p9 = pnand %p4099_p8, %p4093_p5 }
0x21ed   :  { %v3028_v13 = vpop.f32.mrb[88].mxu0 }
0x21ee   :  { %v3029_v14 = vadd.f32 %v3444_v12, %v3028_v13  ;;  %v3881_v15 = vpop.f32.mrb[89].mxu0 }
0x21ef   :  { %v3031_v17 = vpop.f32.mrb[90].mxu0 }
0x21f0   :  { %v3035_v18 = vmul.f32 %v3029_v14, %v3029_v14  ;;  %v3032_v21 = vadd.f32 %v3444_v12, %v3031_v17  ;;  %v3882_v31 = vpop.f32.mrb[91].mxu0 }
0x21f2   :  { %v3037_v23 = vmul.f32 %v3035_v18, %v3029_v14  ;;  %v3036_v24 = vmul.f32 %v3032_v21, %v3032_v21 }
0x21f4   :  { %v3039_v25 = vmul.f32 0.044715, %v3037_v23  ;;  %v3038_v27 = vmul.f32 %v3036_v24, %v3032_v21 }
0x21f6   :  { %v3041_v28 = vadd.f32 %v3039_v25, %v3029_v14  ;;  %v3040_v30 = vmul.f32 0.044715, %v3038_v27  ;;  %v3480_v25 = vld [vmem:[%s4966_s17] ss:$0 sm:$0xff] }
0x21f8   :  { %v3043_v58 = vmul.f32 0.7978846, %v3041_v28  ;;  %v3042_v32 = vadd.f32 %v3040_v30, %v3032_v21 }
0x21fa   :  { %4072 = vtanh.f32 %v3043_v58  ;;  %v3044_v34 = vmul.f32 0.7978846, %v3042_v32 }
0x21fc   :  { %4074 = vtanh.f32 %v3044_v34 }
0x2204   :  { %v4073_v43 = vpop.eup %4072 }
0x2205   :  { %v3047_v36 = vadd.f32 1.0, %v4073_v43 }
0x2206   :  { %v4075_v35 = vpop.eup %4074 }
0x2207   :  { %v3049_v39 = vmul.f32 0.5, %v3047_v36  ;;  %v3048_v37 = vadd.f32 1.0, %v4075_v35 }
0x2209   :  { %v3050_v38 = vmul.f32 0.5, %v3048_v37  ;;  %v3051_v42 = vmul.f32 %v3049_v39, %v3029_v14 }
0x220b   :  { %v3052_v45 = vmul.f32 %v3050_v38, %v3032_v21 }
0x220d   :  { %v3053_v46 = vpack.c.bf16 %v3052_v45, %v3051_v42 }
0x220f   :  { %3900 = vmatmul.mubr.bf16.vlgmr.msra.gmra.mrb[88].mxu1 %v3053_v46 }
0x22e2   :  { %v3161_v47 = vpop.f32.mrb[88].mxu1 }
0x22e3   :  { %v3162_v48 = vadd.f32 %v3467_v7, %v3161_v47  ;;  %v3901_v49 = vpop.f32.mrb[89].mxu1 }
0x22e4   :  { %v3164_v50 = vpop.f32.mrb[90].mxu1 }
0x22e5   :  { %v3165_v26 = vadd.f32 %v3467_v7, %v3164_v50  ;;  %v3902_v51 = vpop.f32.mrb[91].mxu1  ;;  %v3168_v19 = vadd.f32 %v3162_v48, %v4860_v3 }
0x22e7   :  { %v3174_v20 = vsel %vm69_vm0, %v3168_v19, 0.0  ;;  %v3169_v29 = vadd.f32 %v3165_v26, %v4862_v4 }
0x22e8   :  { %3175 = vadd.xlane.f32.xlu1 %v3174_v20 }
0x22e9   :  { %v3177_v54 = vsel %vm69_vm0, %v3169_v29, 0.0 }
0x22ea   :  { %3178 = vadd.xlane.f32.xlu0 %v3177_v54 }
0x2375   :  { %v3176_v57 = vpop.xlane.xlu1 %3175 }
0x2376   :  { %v3180_v0 = vmul.f32 0.015625, %v3176_v57 }
0x2377   :  { %v3179_v33 = vpop.xlane.xlu0 %3178 }
0x2378   :  { %v3182_v59 = vsub.f32 %v3168_v19, %v3180_v0  ;;  %v3181_v60 = vmul.f32 0.015625, %v3179_v33 }
0x237a   :  { %v3183_v61 = vsub.f32 %v3169_v29, %v3181_v60  ;;  %v3184_v62 = vmul.f32 %v3182_v59, %v3182_v59 }
0x237c   :  { %v3186_v63 = vsel %vm69_vm0, %v3184_v62, 0.0  ;;  %v3185_v1 = vmul.f32 %v3183_v61, %v3183_v61 }
0x237d   :  { %3187 = vadd.xlane.f32.xlu1 %v3186_v63 }
0x237e   :  { %v3189_v56 = vsel %vm69_vm0, %v3185_v1, 0.0 }
0x237f   :  { %3190 = vadd.xlane.f32.xlu0 %v3189_v56 }
0x240a   :  { %v3188_v55 = vpop.xlane.xlu1 %3187 }
0x240b   :  { %v3192_v3 = vmul.f32 0.015625, %v3188_v55 }
0x240c   :  { %v3191_v4 = vpop.xlane.xlu0 %3190 }
0x240d   :  { %v3194_v16 = vadd.f32 1e-12, %v3192_v3  ;;  %v3193_v44 = vmul.f32 0.015625, %v3191_v4 }
0x240f   :  { %4076 = vrsqrt.f32 %v3194_v16  ;;  %v3195_v5 = vadd.f32 1e-12, %v3193_v44 }
0x2411   :  { %4078 = vrsqrt.f32 %v3195_v5 }
0x2419   :  { %v4077_v6 = vpop.eup %4076 }
0x241a   :  { %v3198_v9 = vmul.f32 %v4077_v6, %v3182_v59 }
0x241b   :  { %v4079_v10 = vpop.eup %4078 }
0x241c   :  { %v3206_v11 = vmul.f32 %v3478_v8, %v3198_v9  ;;  %v3199_v41 = vmul.f32 %v4079_v10, %v3183_v61 }
0x241e   :  { %v3214_v12 = vadd.f32 %v3479_v40, %v3206_v11  ;;  %v3207_v13 = vmul.f32 %v3478_v8, %v3199_v41 }
0x2420   :  { %v3215_v14 = vadd.f32 %v3479_v40, %v3207_v13  ;;  %v3216_v15 = vpack.c.bf16 %v3214_v12, %v3214_v12 }
0x2422   :  { %v3217_v17 = vpack.c.bf16 %v3215_v14, %v3215_v14  ;;  %v3235_v21 = vunpack.c.l.b16 %v3216_v15 }
0x2424   :  { %v3236_v18 = vunpack.c.l.b16 %v3217_v17 }
0x2426   :  { %v3237_v31 = vrot.slane %v3236_v18, 7 }
0x2428   :  { %v3239_v23 = vsel %vm3238_vm7, %v3237_v31, %v3235_v21 }
0x2429   :  { %v3240_v24 = vpack.c.b16 %v3239_v23, %v3239_v23 }
0x242b   :  { %3912 = vmatmul.mubr.msk.bf16.vlgmr.msra.gmra.mrb[92].mxu0 %vm69_vm0, %v3240_v24 }
0x24fe   :  { %v3302_v27 = vpop.f32.mrb[92].mxu0 }
0x24ff   :  { %v3303_v28 = vadd.f32 %v3480_v25, %v3302_v27  ;;  %v3913_v30 = vpop.f32.mrb[93].mxu0 }
0x2500   :  { %v3305_v58 = vpop.f32.mrb[94].mxu0 }
0x2501   :  { %3308 = vst [vmem:[#allocation4] sm:$0x3] %v3303_v28  ;;  %v3914_v32 = vpop.f32.mrb[95].mxu0 }
0x2502   :  { %4103 = shalt.err (!%p4100_p9)
}
0x2503   :  { %s4104_s17 = scalar_lea.hbm %s4967_s18, 32 }
0x2504   :  { %p4105_p10 = scmp.ne.s32.totalorder %s4967_s18, %s4104_s17  ;;  %p4108_p11 = scmp.lt.u32.totalorder %s4104_s17, %s4967_s18 }
0x2506   :  { %p4110_p12 = pnand %p4108_p11, %p4105_p10 }
0x2508   :  { %4113 = shalt.err (!%p4110_p12)
}
0x2509   :  { %3318 = dma.vmem_to_hbm [thread:$0]  %s3316_s2, 32, %s4967_s18, [#allocation5]  }
0x250a   :  { %4116 = dma.done.wait [#allocation5], 32  }
0x250b   :  { %4117 = vsyncadd [#allocation5], 4294967264 }
0x250c   :  { %3322 = vsyncpa [#allocation5], 1 }

</bundles_post_ra>
